<compile_context>
chip_gen: v7x
topology: tpu7x:2x2x1
jax: 0.10.0
libtpu: 0.0.40
codegen_flags: <defaults>
</compile_context>

<pallas_src>
import functools

import jax
import jax.numpy as jnp
from jax.experimental import pallas as pl
from jax.experimental.pallas import tpu as pltpu


# ----------------------------- Pallas kernel ------------------------------ #

def cnn_kernel(x_ref, w1t_ref, w2t_ref, w3t_ref, wbig_ref, b1_ref, w2l_ref,
               b2_ref, out_ref, a2_s, g_s, *, nb, l_pad, p_feat, lp, pad):
    P = p_feat
    rows = nb * l_pad
    r1, r2, r3 = rows - 2, rows - 6, rows - 14

    x = x_ref[...]                                   # (rows, c_in)

    # ---- stage 1: k=3, d=1 convs, 3 branches share the input ----------------
    a1 = jnp.dot(x[0:r1, :], w1t_ref[0], preferred_element_type=jnp.float32)
    a1 += jnp.dot(x[1:1 + r1, :], w1t_ref[1], preferred_element_type=jnp.float32)
    a1 += jnp.dot(x[2:2 + r1, :], w1t_ref[2], preferred_element_type=jnp.float32)
    a1 = jnp.maximum(a1, 0.0)                        # (r1, 3*c_out)

    # ---- stage 2: k=3, d=2 convs, per-tap block-diagonal over branches ------
    a2 = jnp.dot(a1[0:r2, :], w2t_ref[0], preferred_element_type=jnp.float32)
    a2 += jnp.dot(a1[2:2 + r2, :], w2t_ref[1], preferred_element_type=jnp.float32)
    a2 += jnp.dot(a1[4:4 + r2, :], w2t_ref[2], preferred_element_type=jnp.float32)
    a2 = jnp.maximum(a2, 0.0)            # (r2, P+4C): [m7 | b10 hidden | b15 hidden]

    # ---- stage 3: k=3, d=4 convs of branches 10/15 (m7 weight rows are 0) ---
    g = jnp.dot(a2[0:r3, :], w3t_ref[0], preferred_element_type=jnp.float32)
    g += jnp.dot(a2[4:4 + r3, :], w3t_ref[1], preferred_element_type=jnp.float32)
    g += jnp.dot(a2[8:8 + r3, :], w3t_ref[2], preferred_element_type=jnp.float32)
    g = jnp.maximum(g, 0.0)                          # (r3, 2P): [g10 | g15]

    # ---- stash pooling sources in VMEM so MaxPool+Flatten uses strided loads
    a2_s[...] = a2[:, 0:P]
    g_s[...] = g

    # ---- MaxPool1d(2) + (1x1 conv + Flatten + Linear1), accumulated per t ---
    # hid[n] = sum_t pooled(n, t) @ wbig_rows(t) + b1_eff.
    # Each pooled(n=0..nb-1, t) is fetched with ONE pair of sublane-strided
    # loads (stride = padded sequence length), so the op count here is O(lp),
    # independent of the batch block size.
    hid = jnp.zeros((nb, 2 * P), jnp.float32)
    for t in range(lp):                              # m7 branch, times 0..lp-1
        even = a2_s[pl.ds(2 * t, nb, stride=l_pad), :]
        odd = a2_s[pl.ds(2 * t + 1, nb, stride=l_pad), :]
        pooled = jnp.maximum(even, odd)              # (nb, P)
        hid += jnp.dot(pooled, wbig_ref[t * P:(t + 1) * P, :],
                       preferred_element_type=jnp.float32)
    base = lp * P
    for s in range(lp - pad // 2):                   # padded branches, t = s + pad/2
        even = g_s[pl.ds(2 * s, nb, stride=l_pad), :]
        odd = g_s[pl.ds(2 * s + 1, nb, stride=l_pad), :]
        pooled = jnp.maximum(even, odd)              # (nb, 2P)
        hid += jnp.dot(pooled,
                       wbig_ref[base + s * 2 * P: base + (s + 1) * 2 * P, :],
                       preferred_element_type=jnp.float32)
    # Dropout(p=0.5) is eval-mode identity.
    # TODO(synk): training-mode dropout RNG not implemented.
    hid += b1_ref[...]

    logits = (jnp.dot(hid, w2l_ref[...], preferred_element_type=jnp.float32)
              + b2_ref[...])                         # (nb, P)

    # ---- Softmax(dim=-1): EUP reciprocal + one Newton refinement ------------
    m = jnp.max(logits, axis=-1, keepdims=True)
    e = jnp.exp(logits - m)
    denom = jnp.sum(e, axis=-1, keepdims=True)
    inv = pl.reciprocal(denom, approx=True)
    inv = inv * (2.0 - denom * inv)                  # Newton step -> ~f32 exact
    out_ref[...] = e * inv


# ------------------------------ JAX wrapper -------------------------------- #

def _pick_block(n):
    """Largest multiple-of-8 divisor of n (capped at 128); back off to keep
    >= 2 grid steps when possible (v7x has 2 TensorCores). Falls back to n."""
    divs = [d for d in range(8, min(128, n) + 1, 8) if n % d == 0]
    if not divs:
        return n
    nb = divs[-1]
    if n // nb == 1:
        smaller = [d for d in divs if n // d >= 2]
        if smaller:
            nb = smaller[-1]
    return nb


def cnn_pallas(x_ncl, params):
    """x_ncl: (N, C_in, L) float32 (PyTorch NCL). Returns (N, pool_features)."""
    N, c_in, L = x_ncl.shape
    p_feat = params['bc'].shape[0]
    c_out = params['w7_1'].shape[0]
    lp = (L - 6) // 2
    pad = 8

    # Architecture checks: fail loudly instead of silently mixing elements.
    assert lp * p_feat == params['w1'].shape[1], \
        "requires (L-6)//2 * pool_features == w1.in_features"
    assert 2 * lp + 6 <= L, "pooled window would read past valid conv output"
    assert pad % 2 == 0 and pad // 2 <= lp

    l_pad = ((L + 7) // 8) * 8                # per-element rows, multiple of 8
    nb = _pick_block(N)
    grid = (N // nb,)
    rows = nb * l_pad
    r2, r3 = rows - 6, rows - 14

    # Activations: NCL -> (N, L, C) -> zero-pad L to l_pad -> (N*l_pad, C).
    # Padding isolates batch elements: no conv row ever reads across a
    # boundary, and all strided loads are 8-aligned.
    x_nlc = jnp.transpose(x_ncl, (0, 2, 1)).astype(jnp.float32)
    x_nlc = jnp.pad(x_nlc, ((0, 0), (0, l_pad - L), (0, 0)))
    x_2d = x_nlc.reshape(N * l_pad, c_in)

    f32 = jnp.float32
    C = c_out

    # ---- per-tap conv weights ------------------------------------------------
    def taps_shared(ws):                      # shared input -> concat outputs
        return jnp.stack(
            [jnp.concatenate([w[:, :, k].T.astype(f32) for w in ws], axis=1)
             for k in range(3)], axis=0)

    def taps_blockdiag(ws, in_offs, in_total, out_offs, out_total):
        taps = []
        for k in range(3):
            m = jnp.zeros((in_total, out_total), f32)
            for w, io, oo in zip(ws, in_offs, out_offs):
                o_i, c_i, _ = w.shape
                m = m.at[io:io + c_i, oo:oo + o_i].set(w[:, :, k].T.astype(f32))
            taps.append(m)
        return jnp.stack(taps, axis=0)

    w1t = taps_shared([params['w7_1'], params['w10_1'], params['w15_1']])
    w2t = taps_blockdiag([params['w7_3'], params['w10_3'], params['w15_3']],
                         in_offs=[0, C, 2 * C], in_total=3 * C,
                         out_offs=[0, p_feat, p_feat + 2 * C],
                         out_total=p_feat + 4 * C)
    w3t = taps_blockdiag([params['w10_5'], params['w15_5']],
                         in_offs=[p_feat, p_feat + 2 * C],
                         in_total=p_feat + 4 * C,
                         out_offs=[0, p_feat], out_total=2 * p_feat)

    # ---- fold 1x1 Conv1d + Flatten + Linear1 into one (448, 2P) matrix ------
    hi = jax.lax.Precision.HIGHEST
    wc2 = params['wc'][:, :, 0].astype(f32)                       # (P, 3P)
    w1r = params['w1'].astype(f32).reshape(2 * p_feat, p_feat, lp)
    m_full = jnp.einsum('opt,pc->tco', w1r, wc2, precision=hi)    # (lp, 3P, 2P)
    wbig = jnp.concatenate(
        [m_full[:, :p_feat, :].reshape(lp * p_feat, 2 * p_feat),
         m_full[pad // 2:, p_feat:, :].reshape((lp - pad // 2) * 2 * p_feat,
                                               2 * p_feat)],
        axis=0)                                                   # (448, 2P)
    b1_eff = (params['b1'].astype(f32)
              + jnp.einsum('opt,p->o', w1r, params['bc'].astype(f32),
                           precision=hi)).reshape(1, -1)          # (1, 2P)
    w2l = jnp.transpose(params['w2']).astype(f32)                 # (2P, P)
    b2 = params['b2'].reshape(1, -1).astype(f32)                  # (1, P)

    operands = [x_2d, w1t, w2t, w3t, wbig, b1_eff, w2l, b2]

    def const_spec(a):                        # constant index_map -> resident
        nd = a.ndim
        return pl.BlockSpec(a.shape, lambda i, _nd=nd: (0,) * _nd)

    in_specs = [pl.BlockSpec((rows, c_in), lambda i: (i, 0))]
    in_specs += [const_spec(a) for a in operands[1:]]

    out = pl.pallas_call(
        functools.partial(cnn_kernel, nb=nb, l_pad=l_pad, p_feat=p_feat,
                          lp=lp, pad=pad),
        out_shape=jax.ShapeDtypeStruct((N, p_feat), jnp.float32),
        grid=grid,
        in_specs=in_specs,
        out_specs=pl.BlockSpec((nb, p_feat), lambda i: (i, 0)),
        scratch_shapes=[pltpu.VMEM((r2, p_feat), jnp.float32),
                        pltpu.VMEM((r3, 2 * p_feat), jnp.float32)],
        compiler_params=pltpu.CompilerParams(
            dimension_semantics=("parallel",)),
    )(*operands)
    return out


# ------------------------- deterministic parameters ------------------------ #

def make_params(key, c_in, c_out, p_feat):
    ks = jax.random.split(key, 14)

    def w(k, shape, scale=0.1):
        return (scale * jax.random.normal(k, shape)).astype(jnp.float32)

    return dict(
        w7_1=w(ks[0], (c_out, c_in, 3)),
        w7_3=w(ks[1], (p_feat, c_out, 3)),
        w10_1=w(ks[2], (c_out, c_in, 3)),
        w10_3=w(ks[3], (2 * c_out, c_out, 3)),
        w10_5=w(ks[4], (p_feat, 2 * c_out, 3)),
        w15_1=w(ks[5], (c_out, c_in, 3)),
        w15_3=w(ks[6], (2 * c_out, c_out, 3)),
        w15_5=w(ks[7], (p_feat, 2 * c_out, 3)),
        wc=w(ks[8], (p_feat, 3 * p_feat, 1)),
        bc=w(ks[9], (p_feat,)),
        w1=w(ks[10], (2 * p_feat, 12 * p_feat)),
        b1=w(ks[11], (2 * p_feat,)),
        w2=w(ks[12], (p_feat, 2 * p_feat)),
        b2=w(ks[13], (p_feat,)),
    )


# --------------------------- pure-JAX reference ---------------------------- #

def cnn_ref(x_ncl, params):
    def conv(x, w, d):
        return jax.lax.conv_general_dilated(
            x, w, window_strides=(1,), padding='VALID',
            rhs_dilation=(d,), dimension_numbers=('NCH', 'OIH', 'NCH'))

    relu = jax.nn.relu
    m7 = relu(conv(relu(conv(x_ncl, params['w7_1'], 1)), params['w7_3'], 2))
    t10 = relu(conv(relu(conv(x_ncl, params['w10_1'], 1)), params['w10_3'], 2))
    m10 = relu(jnp.pad(conv(t10, params['w10_5'], 4), ((0, 0), (0, 0), (8, 0))))
    t15 = relu(conv(relu(conv(x_ncl, params['w15_1'], 1)), params['w15_3'], 2))
    m15 = relu(jnp.pad(conv(t15, params['w15_5'], 4), ((0, 0), (0, 0), (8, 0))))
    y = jnp.concatenate([m7, m10, m15], axis=1)                 # (N, 3P, L-6)
    lp = y.shape[-1] // 2
    pooled = jnp.maximum(y[:, :, 0:2 * lp:2], y[:, :, 1:2 * lp:2])
    z = (jnp.einsum('pc,ncl->npl', params['wc'][:, :, 0], pooled)
         + params['bc'][None, :, None])
    flat = z.reshape(z.shape[0], -1)
    h = flat @ params['w1'].T + params['b1']
    logits = h @ params['w2'].T + params['b2']
    return jax.nn.softmax(logits, axis=-1)


# ---------------------------------- main ----------------------------------- #

if __name__ == "__main__":
    key = jax.random.PRNGKey(0)
    k_x, k_p = jax.random.split(key)

    # L=31 is required by the architecture: Linear expects pool_features*12
    # inputs and the flattened length is pool_features * ((L-6)//2).
    # N=16 exercises nb=8 with a 2-step "parallel" grid (both v7x TCs).
    N, C_IN, C_OUT, P_FEAT, L = 16, 4, 8, 16, 31

    params = make_params(k_p, C_IN, C_OUT, P_FEAT)
    x = jax.random.normal(k_x, (N, C_IN, L), dtype=jnp.float32)   # PyTorch NCL

    out = jax.block_until_ready(cnn_pallas(x, params))
    ref = jax.block_until_ready(cnn_ref(x, params))

    assert out.shape == (N, P_FEAT)
    if not jnp.allclose(out, ref, rtol=2e-4, atol=2e-5):
        raise AssertionError(
            f"mismatch vs reference, max abs diff {jnp.max(jnp.abs(out - ref))}")
    print("KERNEL_OK")
</pallas_src>

<mosaic_0001>
module attributes {stable_mosaic.version = 11 : i64} {
  func.func @cnn_kernel(%arg0: i32, %arg1: memref<256x4xf32, #tpu.memory_space<vmem>>, %arg2: memref<3x4x24xf32, #tpu.memory_space<vmem>>, %arg3: memref<3x24x48xf32, #tpu.memory_space<vmem>>, %arg4: memref<3x48x32xf32, #tpu.memory_space<vmem>>, %arg5: memref<448x32xf32, #tpu.memory_space<vmem>>, %arg6: memref<1x32xf32, #tpu.memory_space<vmem>>, %arg7: memref<32x16xf32, #tpu.memory_space<vmem>>, %arg8: memref<1x16xf32, #tpu.memory_space<vmem>>, %arg9: memref<8x16xf32, #tpu.memory_space<vmem>>, %arg10: memref<250x16xf32, #tpu.memory_space<vmem>>, %arg11: memref<242x32xf32, #tpu.memory_space<vmem>>) attributes {dimension_semantics = [#tpu.dimension_semantics<parallel>], iteration_bounds = array<i64: 2>, scalar_prefetch = 0 : i64, scratch_operands = 2 : i64, tpu.core_type = #tpu.core_type<tc>, window_params = [{transform_indices = @transform_0, window_bounds = array<i64: 256, 4>}, {pipeline_mode = #tpu.pipeline_mode<synchronous>, transform_indices = @transform_1, window_bounds = array<i64: 3, 4, 24>}, {pipeline_mode = #tpu.pipeline_mode<synchronous>, transform_indices = @transform_2, window_bounds = array<i64: 3, 24, 48>}, {pipeline_mode = #tpu.pipeline_mode<synchronous>, transform_indices = @transform_3, window_bounds = array<i64: 3, 48, 32>}, {pipeline_mode = #tpu.pipeline_mode<synchronous>, transform_indices = @transform_4, window_bounds = array<i64: 448, 32>}, {pipeline_mode = #tpu.pipeline_mode<synchronous>, transform_indices = @transform_5, window_bounds = array<i64: 1, 32>}, {pipeline_mode = #tpu.pipeline_mode<synchronous>, transform_indices = @transform_6, window_bounds = array<i64: 32, 16>}, {pipeline_mode = #tpu.pipeline_mode<synchronous>, transform_indices = @transform_7, window_bounds = array<i64: 1, 16>}, {transform_indices = @transform_8, window_bounds = array<i64: 8, 16>}]} {
    %c0 = arith.constant 0 : index
    %c0_0 = arith.constant 0 : index
    %0 = vector.load %arg1[%c0, %c0_0] : memref<256x4xf32, #tpu.memory_space<vmem>>, vector<256x4xf32>
    %1 = vector.extract_strided_slice %0 {offsets = [0, 0], sizes = [254, 4], strides = [1, 1]} : vector<256x4xf32> to vector<254x4xf32>
    %c0_1 = arith.constant 0 : index
    %c0_2 = arith.constant 0 : index
    %c0_3 = arith.constant 0 : index
    %2 = vector.load %arg2[%c0_1, %c0_2, %c0_3] : memref<3x4x24xf32, #tpu.memory_space<vmem>>, vector<1x4x24xf32>
    %3 = vector.shape_cast %2 : vector<1x4x24xf32> to vector<4x24xf32>
    %cst = arith.constant dense<0.000000e+00> : vector<254x24xf32>
    %4 = tpu.matmul %1, %3, %cst {dimension_numbers = #tpu.dot_dimension_numbers<[1], [0], [0], [1], [0, 0, 1, 1], [], []>} : vector<254x4xf32>, vector<4x24xf32>, vector<254x24xf32> -> vector<254x24xf32>
    %5 = vector.extract_strided_slice %0 {offsets = [1, 0], sizes = [254, 4], strides = [1, 1]} : vector<256x4xf32> to vector<254x4xf32>
    %c1 = arith.constant 1 : index
    %c0_4 = arith.constant 0 : index
    %c0_5 = arith.constant 0 : index
    %6 = vector.load %arg2[%c1, %c0_4, %c0_5] : memref<3x4x24xf32, #tpu.memory_space<vmem>>, vector<1x4x24xf32>
    %7 = vector.shape_cast %6 : vector<1x4x24xf32> to vector<4x24xf32>
    %cst_6 = arith.constant dense<0.000000e+00> : vector<254x24xf32>
    %8 = tpu.matmul %5, %7, %cst_6 {dimension_numbers = #tpu.dot_dimension_numbers<[1], [0], [0], [1], [0, 0, 1, 1], [], []>} : vector<254x4xf32>, vector<4x24xf32>, vector<254x24xf32> -> vector<254x24xf32>
    %9 = arith.addf %4, %8 : vector<254x24xf32>
    %10 = vector.extract_strided_slice %0 {offsets = [2, 0], sizes = [254, 4], strides = [1, 1]} : vector<256x4xf32> to vector<254x4xf32>
    %c2 = arith.constant 2 : index
    %c0_7 = arith.constant 0 : index
    %c0_8 = arith.constant 0 : index
    %11 = vector.load %arg2[%c2, %c0_7, %c0_8] : memref<3x4x24xf32, #tpu.memory_space<vmem>>, vector<1x4x24xf32>
    %12 = vector.shape_cast %11 : vector<1x4x24xf32> to vector<4x24xf32>
    %cst_9 = arith.constant dense<0.000000e+00> : vector<254x24xf32>
    %13 = tpu.matmul %10, %12, %cst_9 {dimension_numbers = #tpu.dot_dimension_numbers<[1], [0], [0], [1], [0, 0, 1, 1], [], []>} : vector<254x4xf32>, vector<4x24xf32>, vector<254x24xf32> -> vector<254x24xf32>
    %14 = arith.addf %9, %13 : vector<254x24xf32>
    %cst_10 = arith.constant 0.000000e+00 : f32
    %15 = vector.broadcast %cst_10 : f32 to vector<254x24xf32>
    %16 = arith.maximumf %14, %15 : vector<254x24xf32>
    %17 = vector.extract_strided_slice %16 {offsets = [0, 0], sizes = [250, 24], strides = [1, 1]} : vector<254x24xf32> to vector<250x24xf32>
    %c0_11 = arith.constant 0 : index
    %c0_12 = arith.constant 0 : index
    %c0_13 = arith.constant 0 : index
    %18 = vector.load %arg3[%c0_11, %c0_12, %c0_13] : memref<3x24x48xf32, #tpu.memory_space<vmem>>, vector<1x24x48xf32>
    %19 = vector.shape_cast %18 : vector<1x24x48xf32> to vector<24x48xf32>
    %cst_14 = arith.constant dense<0.000000e+00> : vector<250x48xf32>
    %20 = tpu.matmul %17, %19, %cst_14 {dimension_numbers = #tpu.dot_dimension_numbers<[1], [0], [0], [1], [0, 0, 1, 1], [], []>} : vector<250x24xf32>, vector<24x48xf32>, vector<250x48xf32> -> vector<250x48xf32>
    %21 = vector.extract_strided_slice %16 {offsets = [2, 0], sizes = [250, 24], strides = [1, 1]} : vector<254x24xf32> to vector<250x24xf32>
    %c1_15 = arith.constant 1 : index
    %c0_16 = arith.constant 0 : index
    %c0_17 = arith.constant 0 : index
    %22 = vector.load %arg3[%c1_15, %c0_16, %c0_17] : memref<3x24x48xf32, #tpu.memory_space<vmem>>, vector<1x24x48xf32>
    %23 = vector.shape_cast %22 : vector<1x24x48xf32> to vector<24x48xf32>
    %cst_18 = arith.constant dense<0.000000e+00> : vector<250x48xf32>
    %24 = tpu.matmul %21, %23, %cst_18 {dimension_numbers = #tpu.dot_dimension_numbers<[1], [0], [0], [1], [0, 0, 1, 1], [], []>} : vector<250x24xf32>, vector<24x48xf32>, vector<250x48xf32> -> vector<250x48xf32>
    %25 = arith.addf %20, %24 : vector<250x48xf32>
    %26 = vector.extract_strided_slice %16 {offsets = [4, 0], sizes = [250, 24], strides = [1, 1]} : vector<254x24xf32> to vector<250x24xf32>
    %c2_19 = arith.constant 2 : index
    %c0_20 = arith.constant 0 : index
    %c0_21 = arith.constant 0 : index
    %27 = vector.load %arg3[%c2_19, %c0_20, %c0_21] : memref<3x24x48xf32, #tpu.memory_space<vmem>>, vector<1x24x48xf32>
    %28 = vector.shape_cast %27 : vector<1x24x48xf32> to vector<24x48xf32>
    %cst_22 = arith.constant dense<0.000000e+00> : vector<250x48xf32>
    %29 = tpu.matmul %26, %28, %cst_22 {dimension_numbers = #tpu.dot_dimension_numbers<[1], [0], [0], [1], [0, 0, 1, 1], [], []>} : vector<250x24xf32>, vector<24x48xf32>, vector<250x48xf32> -> vector<250x48xf32>
    %30 = arith.addf %25, %29 : vector<250x48xf32>
    %cst_23 = arith.constant 0.000000e+00 : f32
    %31 = vector.broadcast %cst_23 : f32 to vector<250x48xf32>
    %32 = arith.maximumf %30, %31 : vector<250x48xf32>
    %33 = vector.extract_strided_slice %32 {offsets = [0, 0], sizes = [242, 48], strides = [1, 1]} : vector<250x48xf32> to vector<242x48xf32>
    %c0_24 = arith.constant 0 : index
    %c0_25 = arith.constant 0 : index
    %c0_26 = arith.constant 0 : index
    %34 = vector.load %arg4[%c0_24, %c0_25, %c0_26] : memref<3x48x32xf32, #tpu.memory_space<vmem>>, vector<1x48x32xf32>
    %35 = vector.shape_cast %34 : vector<1x48x32xf32> to vector<48x32xf32>
    %cst_27 = arith.constant dense<0.000000e+00> : vector<242x32xf32>
    %36 = tpu.matmul %33, %35, %cst_27 {dimension_numbers = #tpu.dot_dimension_numbers<[1], [0], [0], [1], [0, 0, 1, 1], [], []>} : vector<242x48xf32>, vector<48x32xf32>, vector<242x32xf32> -> vector<242x32xf32>
    %37 = vector.extract_strided_slice %32 {offsets = [4, 0], sizes = [242, 48], strides = [1, 1]} : vector<250x48xf32> to vector<242x48xf32>
    %c1_28 = arith.constant 1 : index
    %c0_29 = arith.constant 0 : index
    %c0_30 = arith.constant 0 : index
    %38 = vector.load %arg4[%c1_28, %c0_29, %c0_30] : memref<3x48x32xf32, #tpu.memory_space<vmem>>, vector<1x48x32xf32>
    %39 = vector.shape_cast %38 : vector<1x48x32xf32> to vector<48x32xf32>
    %cst_31 = arith.constant dense<0.000000e+00> : vector<242x32xf32>
    %40 = tpu.matmul %37, %39, %cst_31 {dimension_numbers = #tpu.dot_dimension_numbers<[1], [0], [0], [1], [0, 0, 1, 1], [], []>} : vector<242x48xf32>, vector<48x32xf32>, vector<242x32xf32> -> vector<242x32xf32>
    %41 = arith.addf %36, %40 : vector<242x32xf32>
    %42 = vector.extract_strided_slice %32 {offsets = [8, 0], sizes = [242, 48], strides = [1, 1]} : vector<250x48xf32> to vector<242x48xf32>
    %c2_32 = arith.constant 2 : index
    %c0_33 = arith.constant 0 : index
    %c0_34 = arith.constant 0 : index
    %43 = vector.load %arg4[%c2_32, %c0_33, %c0_34] : memref<3x48x32xf32, #tpu.memory_space<vmem>>, vector<1x48x32xf32>
    %44 = vector.shape_cast %43 : vector<1x48x32xf32> to vector<48x32xf32>
    %cst_35 = arith.constant dense<0.000000e+00> : vector<242x32xf32>
    %45 = tpu.matmul %42, %44, %cst_35 {dimension_numbers = #tpu.dot_dimension_numbers<[1], [0], [0], [1], [0, 0, 1, 1], [], []>} : vector<242x48xf32>, vector<48x32xf32>, vector<242x32xf32> -> vector<242x32xf32>
    %46 = arith.addf %41, %45 : vector<242x32xf32>
    %cst_36 = arith.constant 0.000000e+00 : f32
    %47 = vector.broadcast %cst_36 : f32 to vector<242x32xf32>
    %48 = arith.maximumf %46, %47 : vector<242x32xf32>
    %49 = vector.extract_strided_slice %32 {offsets = [0, 0], sizes = [250, 16], strides = [1, 1]} : vector<250x48xf32> to vector<250x16xf32>
    %c0_37 = arith.constant 0 : index
    %c0_38 = arith.constant 0 : index
    %50 = vector.load %arg10[%c0_37, %c0_38] : memref<250x16xf32, #tpu.memory_space<vmem>>, vector<250x16xf32>
    tpu.vector_store %arg10[%c0_37, %c0_38], %49 {strides = array<i32>} : memref<250x16xf32, #tpu.memory_space<vmem>>, vector<250x16xf32>,
    %c0_39 = arith.constant 0 : index
    %c0_40 = arith.constant 0 : index
    %51 = vector.load %arg11[%c0_39, %c0_40] : memref<242x32xf32, #tpu.memory_space<vmem>>, vector<242x32xf32>
    tpu.vector_store %arg11[%c0_39, %c0_40], %48 {strides = array<i32>} : memref<242x32xf32, #tpu.memory_space<vmem>>, vector<242x32xf32>,
    %cst_41 = arith.constant 0.000000e+00 : f32
    %52 = vector.broadcast %cst_41 : f32 to vector<8x32xf32>
    %c0_42 = arith.constant 0 : index
    %c0_43 = arith.constant 0 : index
    %53 = tpu.strided_load %arg10[%c0_42, %c0_43] {strides = array<i32: 32, 1>} : memref<250x16xf32, #tpu.memory_space<vmem>>, vector<8x16xf32>
    %c1_44 = arith.constant 1 : index
    %c0_45 = arith.constant 0 : index
    %54 = tpu.strided_load %arg10[%c1_44, %c0_45] {strides = array<i32: 32, 1>} : memref<250x16xf32, #tpu.memory_space<vmem>>, vector<8x16xf32>
    %55 = arith.maximumf %53, %54 : vector<8x16xf32>
    %c0_46 = arith.constant 0 : index
    %c0_47 = arith.constant 0 : index
    %56 = vector.load %arg5[%c0_46, %c0_47] : memref<448x32xf32, #tpu.memory_space<vmem>>, vector<16x32xf32>
    %cst_48 = arith.constant dense<0.000000e+00> : vector<8x32xf32>
    %57 = tpu.matmul %55, %56, %cst_48 {dimension_numbers = #tpu.dot_dimension_numbers<[1], [0], [0], [1], [0, 0, 1, 1], [], []>} : vector<8x16xf32>, vector<16x32xf32>, vector<8x32xf32> -> vector<8x32xf32>
    %58 = arith.addf %52, %57 : vector<8x32xf32>
    %c2_49 = arith.constant 2 : index
    %c0_50 = arith.constant 0 : index
    %59 = tpu.strided_load %arg10[%c2_49, %c0_50] {strides = array<i32: 32, 1>} : memref<250x16xf32, #tpu.memory_space<vmem>>, vector<8x16xf32>
    %c3 = arith.constant 3 : index
    %c0_51 = arith.constant 0 : index
    %60 = tpu.strided_load %arg10[%c3, %c0_51] {strides = array<i32: 32, 1>} : memref<250x16xf32, #tpu.memory_space<vmem>>, vector<8x16xf32>
    %61 = arith.maximumf %59, %60 : vector<8x16xf32>
    %c16 = arith.constant 16 : index
    %c0_52 = arith.constant 0 : index
    %62 = vector.load %arg5[%c16, %c0_52] : memref<448x32xf32, #tpu.memory_space<vmem>>, vector<16x32xf32>
    %cst_53 = arith.constant dense<0.000000e+00> : vector<8x32xf32>
    %63 = tpu.matmul %61, %62, %cst_53 {dimension_numbers = #tpu.dot_dimension_numbers<[1], [0], [0], [1], [0, 0, 1, 1], [], []>} : vector<8x16xf32>, vector<16x32xf32>, vector<8x32xf32> -> vector<8x32xf32>
    %64 = arith.addf %58, %63 : vector<8x32xf32>
    %c4 = arith.constant 4 : index
    %c0_54 = arith.constant 0 : index
    %65 = tpu.strided_load %arg10[%c4, %c0_54] {strides = array<i32: 32, 1>} : memref<250x16xf32, #tpu.memory_space<vmem>>, vector<8x16xf32>
    %c5 = arith.constant 5 : index
    %c0_55 = arith.constant 0 : index
    %66 = tpu.strided_load %arg10[%c5, %c0_55] {strides = array<i32: 32, 1>} : memref<250x16xf32, #tpu.memory_space<vmem>>, vector<8x16xf32>
    %67 = arith.maximumf %65, %66 : vector<8x16xf32>
    %c32 = arith.constant 32 : index
    %c0_56 = arith.constant 0 : index
    %68 = vector.load %arg5[%c32, %c0_56] : memref<448x32xf32, #tpu.memory_space<vmem>>, vector<16x32xf32>
    %cst_57 = arith.constant dense<0.000000e+00> : vector<8x32xf32>
    %69 = tpu.matmul %67, %68, %cst_57 {dimension_numbers = #tpu.dot_dimension_numbers<[1], [0], [0], [1], [0, 0, 1, 1], [], []>} : vector<8x16xf32>, vector<16x32xf32>, vector<8x32xf32> -> vector<8x32xf32>
    %70 = arith.addf %64, %69 : vector<8x32xf32>
    %c6 = arith.constant 6 : index
    %c0_58 = arith.constant 0 : index
    %71 = tpu.strided_load %arg10[%c6, %c0_58] {strides = array<i32: 32, 1>} : memref<250x16xf32, #tpu.memory_space<vmem>>, vector<8x16xf32>
    %c7 = arith.constant 7 : index
    %c0_59 = arith.constant 0 : index
    %72 = tpu.strided_load %arg10[%c7, %c0_59] {strides = array<i32: 32, 1>} : memref<250x16xf32, #tpu.memory_space<vmem>>, vector<8x16xf32>
    %73 = arith.maximumf %71, %72 : vector<8x16xf32>
    %c48 = arith.constant 48 : index
    %c0_60 = arith.constant 0 : index
    %74 = vector.load %arg5[%c48, %c0_60] : memref<448x32xf32, #tpu.memory_space<vmem>>, vector<16x32xf32>
    %cst_61 = arith.constant dense<0.000000e+00> : vector<8x32xf32>
    %75 = tpu.matmul %73, %74, %cst_61 {dimension_numbers = #tpu.dot_dimension_numbers<[1], [0], [0], [1], [0, 0, 1, 1], [], []>} : vector<8x16xf32>, vector<16x32xf32>, vector<8x32xf32> -> vector<8x32xf32>
    %76 = arith.addf %70, %75 : vector<8x32xf32>
    %c8 = arith.constant 8 : index
    %c0_62 = arith.constant 0 : index
    %77 = tpu.strided_load %arg10[%c8, %c0_62] {strides = array<i32: 32, 1>} : memref<250x16xf32, #tpu.memory_space<vmem>>, vector<8x16xf32>
    %c9 = arith.constant 9 : index
    %c0_63 = arith.constant 0 : index
    %78 = tpu.strided_load %arg10[%c9, %c0_63] {strides = array<i32: 32, 1>} : memref<250x16xf32, #tpu.memory_space<vmem>>, vector<8x16xf32>
    %79 = arith.maximumf %77, %78 : vector<8x16xf32>
    %c64 = arith.constant 64 : index
    %c0_64 = arith.constant 0 : index
    %80 = vector.load %arg5[%c64, %c0_64] : memref<448x32xf32, #tpu.memory_space<vmem>>, vector<16x32xf32>
    %cst_65 = arith.constant dense<0.000000e+00> : vector<8x32xf32>
    %81 = tpu.matmul %79, %80, %cst_65 {dimension_numbers = #tpu.dot_dimension_numbers<[1], [0], [0], [1], [0, 0, 1, 1], [], []>} : vector<8x16xf32>, vector<16x32xf32>, vector<8x32xf32> -> vector<8x32xf32>
    %82 = arith.addf %76, %81 : vector<8x32xf32>
    %c10 = arith.constant 10 : index
    %c0_66 = arith.constant 0 : index
    %83 = tpu.strided_load %arg10[%c10, %c0_66] {strides = array<i32: 32, 1>} : memref<250x16xf32, #tpu.memory_space<vmem>>, vector<8x16xf32>
    %c11 = arith.constant 11 : index
    %c0_67 = arith.constant 0 : index
    %84 = tpu.strided_load %arg10[%c11, %c0_67] {strides = array<i32: 32, 1>} : memref<250x16xf32, #tpu.memory_space<vmem>>, vector<8x16xf32>
    %85 = arith.maximumf %83, %84 : vector<8x16xf32>
    %c80 = arith.constant 80 : index
    %c0_68 = arith.constant 0 : index
    %86 = vector.load %arg5[%c80, %c0_68] : memref<448x32xf32, #tpu.memory_space<vmem>>, vector<16x32xf32>
    %cst_69 = arith.constant dense<0.000000e+00> : vector<8x32xf32>
    %87 = tpu.matmul %85, %86, %cst_69 {dimension_numbers = #tpu.dot_dimension_numbers<[1], [0], [0], [1], [0, 0, 1, 1], [], []>} : vector<8x16xf32>, vector<16x32xf32>, vector<8x32xf32> -> vector<8x32xf32>
    %88 = arith.addf %82, %87 : vector<8x32xf32>
    %c12 = arith.constant 12 : index
    %c0_70 = arith.constant 0 : index
    %89 = tpu.strided_load %arg10[%c12, %c0_70] {strides = array<i32: 32, 1>} : memref<250x16xf32, #tpu.memory_space<vmem>>, vector<8x16xf32>
    %c13 = arith.constant 13 : index
    %c0_71 = arith.constant 0 : index
    %90 = tpu.strided_load %arg10[%c13, %c0_71] {strides = array<i32: 32, 1>} : memref<250x16xf32, #tpu.memory_space<vmem>>, vector<8x16xf32>
    %91 = arith.maximumf %89, %90 : vector<8x16xf32>
    %c96 = arith.constant 96 : index
    %c0_72 = arith.constant 0 : index
    %92 = vector.load %arg5[%c96, %c0_72] : memref<448x32xf32, #tpu.memory_space<vmem>>, vector<16x32xf32>
    %cst_73 = arith.constant dense<0.000000e+00> : vector<8x32xf32>
    %93 = tpu.matmul %91, %92, %cst_73 {dimension_numbers = #tpu.dot_dimension_numbers<[1], [0], [0], [1], [0, 0, 1, 1], [], []>} : vector<8x16xf32>, vector<16x32xf32>, vector<8x32xf32> -> vector<8x32xf32>
    %94 = arith.addf %88, %93 : vector<8x32xf32>
    %c14 = arith.constant 14 : index
    %c0_74 = arith.constant 0 : index
    %95 = tpu.strided_load %arg10[%c14, %c0_74] {strides = array<i32: 32, 1>} : memref<250x16xf32, #tpu.memory_space<vmem>>, vector<8x16xf32>
    %c15 = arith.constant 15 : index
    %c0_75 = arith.constant 0 : index
    %96 = tpu.strided_load %arg10[%c15, %c0_75] {strides = array<i32: 32, 1>} : memref<250x16xf32, #tpu.memory_space<vmem>>, vector<8x16xf32>
    %97 = arith.maximumf %95, %96 : vector<8x16xf32>
    %c112 = arith.constant 112 : index
    %c0_76 = arith.constant 0 : index
    %98 = vector.load %arg5[%c112, %c0_76] : memref<448x32xf32, #tpu.memory_space<vmem>>, vector<16x32xf32>
    %cst_77 = arith.constant dense<0.000000e+00> : vector<8x32xf32>
    %99 = tpu.matmul %97, %98, %cst_77 {dimension_numbers = #tpu.dot_dimension_numbers<[1], [0], [0], [1], [0, 0, 1, 1], [], []>} : vector<8x16xf32>, vector<16x32xf32>, vector<8x32xf32> -> vector<8x32xf32>
    %100 = arith.addf %94, %99 : vector<8x32xf32>
    %c16_78 = arith.constant 16 : index
    %c0_79 = arith.constant 0 : index
    %101 = tpu.strided_load %arg10[%c16_78, %c0_79] {strides = array<i32: 32, 1>} : memref<250x16xf32, #tpu.memory_space<vmem>>, vector<8x16xf32>
    %c17 = arith.constant 17 : index
    %c0_80 = arith.constant 0 : index
    %102 = tpu.strided_load %arg10[%c17, %c0_80] {strides = array<i32: 32, 1>} : memref<250x16xf32, #tpu.memory_space<vmem>>, vector<8x16xf32>
    %103 = arith.maximumf %101, %102 : vector<8x16xf32>
    %c128 = arith.constant 128 : index
    %c0_81 = arith.constant 0 : index
    %104 = vector.load %arg5[%c128, %c0_81] : memref<448x32xf32, #tpu.memory_space<vmem>>, vector<16x32xf32>
    %cst_82 = arith.constant dense<0.000000e+00> : vector<8x32xf32>
    %105 = tpu.matmul %103, %104, %cst_82 {dimension_numbers = #tpu.dot_dimension_numbers<[1], [0], [0], [1], [0, 0, 1, 1], [], []>} : vector<8x16xf32>, vector<16x32xf32>, vector<8x32xf32> -> vector<8x32xf32>
    %106 = arith.addf %100, %105 : vector<8x32xf32>
    %c18 = arith.constant 18 : index
    %c0_83 = arith.constant 0 : index
    %107 = tpu.strided_load %arg10[%c18, %c0_83] {strides = array<i32: 32, 1>} : memref<250x16xf32, #tpu.memory_space<vmem>>, vector<8x16xf32>
    %c19 = arith.constant 19 : index
    %c0_84 = arith.constant 0 : index
    %108 = tpu.strided_load %arg10[%c19, %c0_84] {strides = array<i32: 32, 1>} : memref<250x16xf32, #tpu.memory_space<vmem>>, vector<8x16xf32>
    %109 = arith.maximumf %107, %108 : vector<8x16xf32>
    %c144 = arith.constant 144 : index
    %c0_85 = arith.constant 0 : index
    %110 = vector.load %arg5[%c144, %c0_85] : memref<448x32xf32, #tpu.memory_space<vmem>>, vector<16x32xf32>
    %cst_86 = arith.constant dense<0.000000e+00> : vector<8x32xf32>
    %111 = tpu.matmul %109, %110, %cst_86 {dimension_numbers = #tpu.dot_dimension_numbers<[1], [0], [0], [1], [0, 0, 1, 1], [], []>} : vector<8x16xf32>, vector<16x32xf32>, vector<8x32xf32> -> vector<8x32xf32>
    %112 = arith.addf %106, %111 : vector<8x32xf32>
    %c20 = arith.constant 20 : index
    %c0_87 = arith.constant 0 : index
    %113 = tpu.strided_load %arg10[%c20, %c0_87] {strides = array<i32: 32, 1>} : memref<250x16xf32, #tpu.memory_space<vmem>>, vector<8x16xf32>
    %c21 = arith.constant 21 : index
    %c0_88 = arith.constant 0 : index
    %114 = tpu.strided_load %arg10[%c21, %c0_88] {strides = array<i32: 32, 1>} : memref<250x16xf32, #tpu.memory_space<vmem>>, vector<8x16xf32>
    %115 = arith.maximumf %113, %114 : vector<8x16xf32>
    %c160 = arith.constant 160 : index
    %c0_89 = arith.constant 0 : index
    %116 = vector.load %arg5[%c160, %c0_89] : memref<448x32xf32, #tpu.memory_space<vmem>>, vector<16x32xf32>
    %cst_90 = arith.constant dense<0.000000e+00> : vector<8x32xf32>
    %117 = tpu.matmul %115, %116, %cst_90 {dimension_numbers = #tpu.dot_dimension_numbers<[1], [0], [0], [1], [0, 0, 1, 1], [], []>} : vector<8x16xf32>, vector<16x32xf32>, vector<8x32xf32> -> vector<8x32xf32>
    %118 = arith.addf %112, %117 : vector<8x32xf32>
    %c22 = arith.constant 22 : index
    %c0_91 = arith.constant 0 : index
    %119 = tpu.strided_load %arg10[%c22, %c0_91] {strides = array<i32: 32, 1>} : memref<250x16xf32, #tpu.memory_space<vmem>>, vector<8x16xf32>
    %c23 = arith.constant 23 : index
    %c0_92 = arith.constant 0 : index
    %120 = tpu.strided_load %arg10[%c23, %c0_92] {strides = array<i32: 32, 1>} : memref<250x16xf32, #tpu.memory_space<vmem>>, vector<8x16xf32>
    %121 = arith.maximumf %119, %120 : vector<8x16xf32>
    %c176 = arith.constant 176 : index
    %c0_93 = arith.constant 0 : index
    %122 = vector.load %arg5[%c176, %c0_93] : memref<448x32xf32, #tpu.memory_space<vmem>>, vector<16x32xf32>
    %cst_94 = arith.constant dense<0.000000e+00> : vector<8x32xf32>
    %123 = tpu.matmul %121, %122, %cst_94 {dimension_numbers = #tpu.dot_dimension_numbers<[1], [0], [0], [1], [0, 0, 1, 1], [], []>} : vector<8x16xf32>, vector<16x32xf32>, vector<8x32xf32> -> vector<8x32xf32>
    %124 = arith.addf %118, %123 : vector<8x32xf32>
    %c0_95 = arith.constant 0 : index
    %c0_96 = arith.constant 0 : index
    %125 = tpu.strided_load %arg11[%c0_95, %c0_96] {strides = array<i32: 32, 1>} : memref<242x32xf32, #tpu.memory_space<vmem>>, vector<8x32xf32>
    %c1_97 = arith.constant 1 : index
    %c0_98 = arith.constant 0 : index
    %126 = tpu.strided_load %arg11[%c1_97, %c0_98] {strides = array<i32: 32, 1>} : memref<242x32xf32, #tpu.memory_space<vmem>>, vector<8x32xf32>
    %127 = arith.maximumf %125, %126 : vector<8x32xf32>
    %c192 = arith.constant 192 : index
    %c0_99 = arith.constant 0 : index
    %128 = vector.load %arg5[%c192, %c0_99] : memref<448x32xf32, #tpu.memory_space<vmem>>, vector<32x32xf32>
    %cst_100 = arith.constant dense<0.000000e+00> : vector<8x32xf32>
    %129 = tpu.matmul %127, %128, %cst_100 {dimension_numbers = #tpu.dot_dimension_numbers<[1], [0], [0], [1], [0, 0, 1, 1], [], []>} : vector<8x32xf32>, vector<32x32xf32>, vector<8x32xf32> -> vector<8x32xf32>
    %130 = arith.addf %124, %129 : vector<8x32xf32>
    %c2_101 = arith.constant 2 : index
    %c0_102 = arith.constant 0 : index
    %131 = tpu.strided_load %arg11[%c2_101, %c0_102] {strides = array<i32: 32, 1>} : memref<242x32xf32, #tpu.memory_space<vmem>>, vector<8x32xf32>
    %c3_103 = arith.constant 3 : index
    %c0_104 = arith.constant 0 : index
    %132 = tpu.strided_load %arg11[%c3_103, %c0_104] {strides = array<i32: 32, 1>} : memref<242x32xf32, #tpu.memory_space<vmem>>, vector<8x32xf32>
    %133 = arith.maximumf %131, %132 : vector<8x32xf32>
    %c224 = arith.constant 224 : index
    %c0_105 = arith.constant 0 : index
    %134 = vector.load %arg5[%c224, %c0_105] : memref<448x32xf32, #tpu.memory_space<vmem>>, vector<32x32xf32>
    %cst_106 = arith.constant dense<0.000000e+00> : vector<8x32xf32>
    %135 = tpu.matmul %133, %134, %cst_106 {dimension_numbers = #tpu.dot_dimension_numbers<[1], [0], [0], [1], [0, 0, 1, 1], [], []>} : vector<8x32xf32>, vector<32x32xf32>, vector<8x32xf32> -> vector<8x32xf32>
    %136 = arith.addf %130, %135 : vector<8x32xf32>
    %c4_107 = arith.constant 4 : index
    %c0_108 = arith.constant 0 : index
    %137 = tpu.strided_load %arg11[%c4_107, %c0_108] {strides = array<i32: 32, 1>} : memref<242x32xf32, #tpu.memory_space<vmem>>, vector<8x32xf32>
    %c5_109 = arith.constant 5 : index
    %c0_110 = arith.constant 0 : index
    %138 = tpu.strided_load %arg11[%c5_109, %c0_110] {strides = array<i32: 32, 1>} : memref<242x32xf32, #tpu.memory_space<vmem>>, vector<8x32xf32>
    %139 = arith.maximumf %137, %138 : vector<8x32xf32>
    %c256 = arith.constant 256 : index
    %c0_111 = arith.constant 0 : index
    %140 = vector.load %arg5[%c256, %c0_111] : memref<448x32xf32, #tpu.memory_space<vmem>>, vector<32x32xf32>
    %cst_112 = arith.constant dense<0.000000e+00> : vector<8x32xf32>
    %141 = tpu.matmul %139, %140, %cst_112 {dimension_numbers = #tpu.dot_dimension_numbers<[1], [0], [0], [1], [0, 0, 1, 1], [], []>} : vector<8x32xf32>, vector<32x32xf32>, vector<8x32xf32> -> vector<8x32xf32>
    %142 = arith.addf %136, %141 : vector<8x32xf32>
    %c6_113 = arith.constant 6 : index
    %c0_114 = arith.constant 0 : index
    %143 = tpu.strided_load %arg11[%c6_113, %c0_114] {strides = array<i32: 32, 1>} : memref<242x32xf32, #tpu.memory_space<vmem>>, vector<8x32xf32>
    %c7_115 = arith.constant 7 : index
    %c0_116 = arith.constant 0 : index
    %144 = tpu.strided_load %arg11[%c7_115, %c0_116] {strides = array<i32: 32, 1>} : memref<242x32xf32, #tpu.memory_space<vmem>>, vector<8x32xf32>
    %145 = arith.maximumf %143, %144 : vector<8x32xf32>
    %c288 = arith.constant 288 : index
    %c0_117 = arith.constant 0 : index
    %146 = vector.load %arg5[%c288, %c0_117] : memref<448x32xf32, #tpu.memory_space<vmem>>, vector<32x32xf32>
    %cst_118 = arith.constant dense<0.000000e+00> : vector<8x32xf32>
    %147 = tpu.matmul %145, %146, %cst_118 {dimension_numbers = #tpu.dot_dimension_numbers<[1], [0], [0], [1], [0, 0, 1, 1], [], []>} : vector<8x32xf32>, vector<32x32xf32>, vector<8x32xf32> -> vector<8x32xf32>
    %148 = arith.addf %142, %147 : vector<8x32xf32>
    %c8_119 = arith.constant 8 : index
    %c0_120 = arith.constant 0 : index
    %149 = tpu.strided_load %arg11[%c8_119, %c0_120] {strides = array<i32: 32, 1>} : memref<242x32xf32, #tpu.memory_space<vmem>>, vector<8x32xf32>
    %c9_121 = arith.constant 9 : index
    %c0_122 = arith.constant 0 : index
    %150 = tpu.strided_load %arg11[%c9_121, %c0_122] {strides = array<i32: 32, 1>} : memref<242x32xf32, #tpu.memory_space<vmem>>, vector<8x32xf32>
    %151 = arith.maximumf %149, %150 : vector<8x32xf32>
    %c320 = arith.constant 320 : index
    %c0_123 = arith.constant 0 : index
    %152 = vector.load %arg5[%c320, %c0_123] : memref<448x32xf32, #tpu.memory_space<vmem>>, vector<32x32xf32>
    %cst_124 = arith.constant dense<0.000000e+00> : vector<8x32xf32>
    %153 = tpu.matmul %151, %152, %cst_124 {dimension_numbers = #tpu.dot_dimension_numbers<[1], [0], [0], [1], [0, 0, 1, 1], [], []>} : vector<8x32xf32>, vector<32x32xf32>, vector<8x32xf32> -> vector<8x32xf32>
    %154 = arith.addf %148, %153 : vector<8x32xf32>
    %c10_125 = arith.constant 10 : index
    %c0_126 = arith.constant 0 : index
    %155 = tpu.strided_load %arg11[%c10_125, %c0_126] {strides = array<i32: 32, 1>} : memref<242x32xf32, #tpu.memory_space<vmem>>, vector<8x32xf32>
    %c11_127 = arith.constant 11 : index
    %c0_128 = arith.constant 0 : index
    %156 = tpu.strided_load %arg11[%c11_127, %c0_128] {strides = array<i32: 32, 1>} : memref<242x32xf32, #tpu.memory_space<vmem>>, vector<8x32xf32>
    %157 = arith.maximumf %155, %156 : vector<8x32xf32>
    %c352 = arith.constant 352 : index
    %c0_129 = arith.constant 0 : index
    %158 = vector.load %arg5[%c352, %c0_129] : memref<448x32xf32, #tpu.memory_space<vmem>>, vector<32x32xf32>
    %cst_130 = arith.constant dense<0.000000e+00> : vector<8x32xf32>
    %159 = tpu.matmul %157, %158, %cst_130 {dimension_numbers = #tpu.dot_dimension_numbers<[1], [0], [0], [1], [0, 0, 1, 1], [], []>} : vector<8x32xf32>, vector<32x32xf32>, vector<8x32xf32> -> vector<8x32xf32>
    %160 = arith.addf %154, %159 : vector<8x32xf32>
    %c12_131 = arith.constant 12 : index
    %c0_132 = arith.constant 0 : index
    %161 = tpu.strided_load %arg11[%c12_131, %c0_132] {strides = array<i32: 32, 1>} : memref<242x32xf32, #tpu.memory_space<vmem>>, vector<8x32xf32>
    %c13_133 = arith.constant 13 : index
    %c0_134 = arith.constant 0 : index
    %162 = tpu.strided_load %arg11[%c13_133, %c0_134] {strides = array<i32: 32, 1>} : memref<242x32xf32, #tpu.memory_space<vmem>>, vector<8x32xf32>
    %163 = arith.maximumf %161, %162 : vector<8x32xf32>
    %c384 = arith.constant 384 : index
    %c0_135 = arith.constant 0 : index
    %164 = vector.load %arg5[%c384, %c0_135] : memref<448x32xf32, #tpu.memory_space<vmem>>, vector<32x32xf32>
    %cst_136 = arith.constant dense<0.000000e+00> : vector<8x32xf32>
    %165 = tpu.matmul %163, %164, %cst_136 {dimension_numbers = #tpu.dot_dimension_numbers<[1], [0], [0], [1], [0, 0, 1, 1], [], []>} : vector<8x32xf32>, vector<32x32xf32>, vector<8x32xf32> -> vector<8x32xf32>
    %166 = arith.addf %160, %165 : vector<8x32xf32>
    %c14_137 = arith.constant 14 : index
    %c0_138 = arith.constant 0 : index
    %167 = tpu.strided_load %arg11[%c14_137, %c0_138] {strides = array<i32: 32, 1>} : memref<242x32xf32, #tpu.memory_space<vmem>>, vector<8x32xf32>
    %c15_139 = arith.constant 15 : index
    %c0_140 = arith.constant 0 : index
    %168 = tpu.strided_load %arg11[%c15_139, %c0_140] {strides = array<i32: 32, 1>} : memref<242x32xf32, #tpu.memory_space<vmem>>, vector<8x32xf32>
    %169 = arith.maximumf %167, %168 : vector<8x32xf32>
    %c416 = arith.constant 416 : index
    %c0_141 = arith.constant 0 : index
    %170 = vector.load %arg5[%c416, %c0_141] : memref<448x32xf32, #tpu.memory_space<vmem>>, vector<32x32xf32>
    %cst_142 = arith.constant dense<0.000000e+00> : vector<8x32xf32>
    %171 = tpu.matmul %169, %170, %cst_142 {dimension_numbers = #tpu.dot_dimension_numbers<[1], [0], [0], [1], [0, 0, 1, 1], [], []>} : vector<8x32xf32>, vector<32x32xf32>, vector<8x32xf32> -> vector<8x32xf32>
    %172 = arith.addf %166, %171 : vector<8x32xf32>
    %c0_143 = arith.constant 0 : index
    %c0_144 = arith.constant 0 : index
    %173 = vector.load %arg6[%c0_143, %c0_144] : memref<1x32xf32, #tpu.memory_space<vmem>>, vector<1x32xf32>
    %174 = vector.broadcast %173 : vector<1x32xf32> to vector<8x32xf32>
    %175 = arith.addf %172, %174 : vector<8x32xf32>
    %c0_145 = arith.constant 0 : index
    %c0_146 = arith.constant 0 : index
    %176 = vector.load %arg7[%c0_145, %c0_146] : memref<32x16xf32, #tpu.memory_space<vmem>>, vector<32x16xf32>
    %cst_147 = arith.constant dense<0.000000e+00> : vector<8x16xf32>
    %177 = tpu.matmul %175, %176, %cst_147 {dimension_numbers = #tpu.dot_dimension_numbers<[1], [0], [0], [1], [0, 0, 1, 1], [], []>} : vector<8x32xf32>, vector<32x16xf32>, vector<8x16xf32> -> vector<8x16xf32>
    %c0_148 = arith.constant 0 : index
    %c0_149 = arith.constant 0 : index
    %178 = vector.load %arg8[%c0_148, %c0_149] : memref<1x16xf32, #tpu.memory_space<vmem>>, vector<1x16xf32>
    %179 = vector.broadcast %178 : vector<1x16xf32> to vector<8x16xf32>
    %180 = arith.addf %177, %179 : vector<8x16xf32>
    %cst_150 = arith.constant dense<0xFF800000> : vector<8xf32>
    %181 = vector.multi_reduction <maximumf>, %180, %cst_150 [1] : vector<8x16xf32> to vector<8xf32>
    %182 = vector.shape_cast %181 : vector<8xf32> to vector<8x1xf32>
    %183 = vector.broadcast %182 : vector<8x1xf32> to vector<8x16xf32>
    %184 = arith.subf %180, %183 : vector<8x16xf32>
    %185 = math.exp %184 : vector<8x16xf32>
    %cst_151 = arith.constant dense<0.000000e+00> : vector<8xf32>
    %186 = vector.multi_reduction <add>, %185, %cst_151 [1] : vector<8x16xf32> to vector<8xf32>
    %187 = vector.shape_cast %186 : vector<8xf32> to vector<8x1xf32>
    %188 = tpu.reciprocal %187 {approx = true} : vector<8x1xf32> -> vector<8x1xf32>
    %189 = arith.mulf %187, %188 : vector<8x1xf32>
    %cst_152 = arith.constant 2.000000e+00 : f32
    %190 = vector.broadcast %cst_152 : f32 to vector<8x1xf32>
    %191 = arith.subf %190, %189 : vector<8x1xf32>
    %192 = arith.mulf %188, %191 : vector<8x1xf32>
    %193 = vector.broadcast %192 : vector<8x1xf32> to vector<8x16xf32>
    %194 = arith.mulf %185, %193 : vector<8x16xf32>
    %c0_153 = arith.constant 0 : index
    %c0_154 = arith.constant 0 : index
    %195 = vector.load %arg9[%c0_153, %c0_154] : memref<8x16xf32, #tpu.memory_space<vmem>>, vector<8x16xf32>
    tpu.vector_store %arg9[%c0_153, %c0_154], %194 {strides = array<i32>} : memref<8x16xf32, #tpu.memory_space<vmem>>, vector<8x16xf32>,
    return
  }
  func.func @transform_0(%arg0: i32) -> (i32, i32) {
    %c0_i32 = arith.constant 0 : i32
    %c0_i32_0 = arith.constant 0 : i32
    return %arg0, %c0_i32 : i32, i32
  }
  func.func @transform_1(%arg0: i32) -> (i32, i32, i32) {
    %c0_i32 = arith.constant 0 : i32
    %c0_i32_0 = arith.constant 0 : i32
    %c0_i32_1 = arith.constant 0 : i32
    %c0_i32_2 = arith.constant 0 : i32
    return %c0_i32, %c0_i32_0, %c0_i32_1 : i32, i32, i32
  }
  func.func @transform_2(%arg0: i32) -> (i32, i32, i32) {
    %c0_i32 = arith.constant 0 : i32
    %c0_i32_0 = arith.constant 0 : i32
    %c0_i32_1 = arith.constant 0 : i32
    %c0_i32_2 = arith.constant 0 : i32
    return %c0_i32, %c0_i32_0, %c0_i32_1 : i32, i32, i32
  }
  func.func @transform_3(%arg0: i32) -> (i32, i32, i32) {
    %c0_i32 = arith.constant 0 : i32
    %c0_i32_0 = arith.constant 0 : i32
    %c0_i32_1 = arith.constant 0 : i32
    %c0_i32_2 = arith.constant 0 : i32
    return %c0_i32, %c0_i32_0, %c0_i32_1 : i32, i32, i32
  }
  func.func @transform_4(%arg0: i32) -> (i32, i32) {
    %c0_i32 = arith.constant 0 : i32
    %c0_i32_0 = arith.constant 0 : i32
    %c0_i32_1 = arith.constant 0 : i32
    return %c0_i32, %c0_i32_0 : i32, i32
  }
  func.func @transform_5(%arg0: i32) -> (i32, i32) {
    %c0_i32 = arith.constant 0 : i32
    %c0_i32_0 = arith.constant 0 : i32
    %c0_i32_1 = arith.constant 0 : i32
    return %c0_i32, %c0_i32_0 : i32, i32
  }
  func.func @transform_6(%arg0: i32) -> (i32, i32) {
    %c0_i32 = arith.constant 0 : i32
    %c0_i32_0 = arith.constant 0 : i32
    %c0_i32_1 = arith.constant 0 : i32
    return %c0_i32, %c0_i32_0 : i32, i32
  }
  func.func @transform_7(%arg0: i32) -> (i32, i32) {
    %c0_i32 = arith.constant 0 : i32
    %c0_i32_0 = arith.constant 0 : i32
    %c0_i32_1 = arith.constant 0 : i32
    return %c0_i32, %c0_i32_0 : i32, i32
  }
  func.func @transform_8(%arg0: i32) -> (i32, i32) {
    %c0_i32 = arith.constant 0 : i32
    %c0_i32_0 = arith.constant 0 : i32
    return %arg0, %c0_i32 : i32, i32
  }
}

</mosaic_0001>

<bundles_post_ra>
// kernel: tpu_custom_call.1
= control target key start
LH: loop header
LB: loop body
LE: loop exit
PB: predicated region body
PF: predicated region fallthrough
CT: control target
= control target key end

     0   :  { %13 = vsyncpa [#allocation5], 0  ;;  %s9914_s0 = inlined_call_operand.vmem [shape: f32[512,4], index: 0, kind: input, shape index: {}]   ;;  %s9915_s1 = inlined_call_operand.vmem [shape: f32[3,4,24], index: 1, kind: input, shape index: {}]   ;;  %s9916_s2 = inlined_call_operand.vmem [shape: f32[3,24,48], index: 2, kind: input, shape index: {}]   ;;  %s9917_s3 = inlined_call_operand.vmem [shape: f32[3,48,32], index: 3, kind: input, shape index: {}]   ;;  %s9918_s4 = inlined_call_operand.vmem [shape: f32[448,32], index: 4, kind: input, shape index: {}]   ;;  %s9919_s5 = inlined_call_operand.vmem [shape: f32[1,32], index: 5, kind: input, shape index: {}]   ;;  %s9920_s6 = inlined_call_operand.vmem [shape: f32[32,16], index: 6, kind: input, shape index: {}]   ;;  %s9921_s7 = inlined_call_operand.vmem [shape: f32[1,16], index: 7, kind: input, shape index: {}]   ;;  %s9922_s8 = inlined_call_operand.hbm [shape: f32[16,16], index: 8, kind: output, shape index: {}]  }
   0x1   :  { %15 = vsyncpa [#allocation5 + $0x1], 0  ;;  %s8004_s27 = smov 0   ;;  %s8006_s28 = smov 0  }
   0x2   :  { %s8008_s29 = smov 0   ;;  %s8010_s30 = smov 0  }
   0x3 LB: > { %s8025_s9 = sadd.s32 4294967295, %s7953_s30   ;;  %s5947_s10 = sadd.s32 4294967294, %s7953_s30   ;;  %s7953_s30 = sphi %s8010_s30, %s9999_s30   ;;  %s7949_s29 = sphi %s8008_s29, %s9998_s29   ;;  %s7945_s28 = sphi %s8006_s28, %s9997_s28   ;;  %s7941_s27 = sphi %s8004_s27, %s9996_s27  }
   0x4   : > { %s8029_s11 = sadd.s32 1, %s7953_s30   ;;  %s201_s12 = sadd.s32 1, %s7949_s29 }
   0x5   : > { %s198_s13 = ssub.s32 %s7953_s30, %s8029_s11  ;;  %p211_p0 = scmp.ne.s32.totalorder %s7949_s29, %s7945_s28 }
   0x6   : > { %p199_p1 = scmp.eq.s32.totalorder %s198_s13, 0  ;;  %p212_p2 = scmp.eq.s32.totalorder %s8025_s9, 1 }
   0x7   : > { %p217_p3 = scmp.ne.s32.totalorder %s7945_s28, %s7941_s27  ;;  %p218_p4 = scmp.eq.s32.totalorder %s5947_s10, 1 }
   0x8   : > { %s8040_s14 = scalar_select %p199_p1, %s7949_s29, %s201_s12  }
   0x9   : > { %p8042_p5 = por %p212_p2, %p211_p0  ;;  %p8046_p6 = por %p218_p4, %p217_p3 }
   0xa   : > { %p5950_p7 = scmp.ge.s32.totalorder %s7953_s30, 1  ;;  %p266_p8 = scmp.lt.s32.totalorder %s7953_s30, 3 }
   0xc   : > { %p267_p9 = pnand %p5950_p7, %p266_p8 }
   0xe   : > { %270 = sbr.rel (%p267_p9) target bundleno = 2028 (0x7ec), region = 52 }
  0x15   : > { %v5954_v0 = vld [vmem:[%s9915_s1 + $0x4] sm:$0xf]  ;;  %vm502_vm0 = vcmask 1043456   ;;  %s5952_s19 = sshll.u32 %s8025_s9, 5  ;;  %v338_v1 = vld [vmem:[%s9915_s1] sm:$0xf] }
  0x16   : > { %6685 = vmatprep.subr.msk.mxu0 %vm502_vm0, %v5954_v0  ;;  %p301_p10 = scmp.lt.s32.totalorder %s5952_s19, 63  ;;  %vm373_vm1 = vcmask 1046528   ;;  %vm437_vm2 = vcmask 31744   ;;  %v8104_v19 = vld [vmem:[%s9915_s1 + $0x8] sm:$0xf]  ;;  %vm1025_vm3 = vcmask 1045504  }
  0x17   : > { %6686 = vmatpush3.msk.msra.mxu0 %vm502_vm0, %v5954_v0  ;;  %vm1547_vm4 = vcmask 195584   ;;  %vm7956_vm5 = vmmov 0   ;;  %vm3508_vm6 = vcmask 130048   ;;  %vm2651_vm7 = vcmask 392192   ;;  %s297_s24 = sand.u32 1, %s7945_s28   ;;  %s6286_s26 = sshll.u32 %s8025_s9, 7 }
  0x18   : > { %s10001_s19 = smov (!%p301_p10, %s5952_s19), 63  ;;  %6735 = vmatprep.subr.msk.mxu0 %vm502_vm0, %v338_v1  ;;  %vm3542_vm8 = vcmask 261120   ;;  %s9871_s18 = scalar_lea.hbm %s9922_s8, %s6286_s26 }
  0x19   : > { %s5953_s22 = sshll.u32 %s10001_s19, 3  ;;  %s5875_s19 = scalar_lea.sflag [#allocation5], %s297_s24 }
  0x1a   : > { %s8065_s25 = scalar_lea.vmem %s9914_s0, %s5953_s22  ;;  %s7958_s9 = smov [#allocation4]  }
  0x1b   : > { %v8068_v2 = vld [vmem:[%s8065_s25] sm:$0xff]  ;;  %v8071_v3 = vld [vmem:[%s8065_s25 + $0x8] sm:$0xff]  ;;  %v8074_v4 = vld [vmem:[%s8065_s25 + $0x10] sm:$0xff]  ;;  %s7895_s21 = sshll.u32 %s7958_s9, 4  ;;  %s7896_s21 = int_to_ptr.vmem [resolvable:$false] %s7895_s21 }
  0x1c   : > { %v374_v5 = vrot.slane %v8068_v2, 1  ;;  %v375_v6 = vrot.slane %v8071_v3, 1  ;;  %v377_v7 = vrot.slane %v8074_v4, 1  ;;  %v8080_v8 = vld [vmem:[%s8065_s25 + $0x18] sm:$0xff]  ;;  %v8083_v9 = vld [vmem:[%s8065_s25 + $0x20] sm:$0xff]  ;;  %v8088_v12 = vld [vmem:[%s8065_s25 + $0x28] sm:$0xff] }
  0x1d   : > { %v379_v10 = vrot.slane %v8080_v8, 1  ;;  %v381_v11 = vrot.slane %v8083_v9, 1  ;;  %v383_v15 = vrot.slane %v8088_v12, 1  ;;  %v8094_v16 = vld [vmem:[%s8065_s25 + $0x30] sm:$0xff]  ;;  %v8099_v18 = vld [vmem:[%s8065_s25 + $0x38] sm:$0xff]  ;;  %v8114_v24 = vld [vmem:[%s8065_s25 + $0x40] sm:$0xff] }
  0x1e   : > { %v376_v13 = vsel %vm373_vm1, %v374_v5, %v375_v6  ;;  %v378_v14 = vsel %vm373_vm1, %v375_v6, %v377_v7  ;;  %v385_v21 = vrot.slane %v8094_v16, 1  ;;  %v387_v23 = vrot.slane %v8099_v18, 1  ;;  %v8119_v25 = vld [vmem:[%s8065_s25 + $0x48] sm:$0xff]  ;;  %v8128_v30 = vld [vmem:[%s8065_s25 + $0x50] sm:$0xff]  ;;  %v8131_v31 = vld [vmem:[%s8065_s25 + $0x58] sm:$0xff]  ;;  %s7897_s22 = scalar_lea.vmem %s7896_s21, 256 }
  0x1f   : > { %6687 = vmatprep.mubr.msk.f32.mxu0 %vm437_vm2, %v376_v13  ;;  %v380_v17 = vsel %vm373_vm1, %v377_v7, %v379_v10  ;;  %v382_v20 = vsel %vm373_vm1, %v379_v10, %v381_v11  ;;  %v384_v22 = vsel %vm373_vm1, %v381_v11, %v383_v15  ;;  %v389_v27 = vrot.slane %v8114_v24, 1  ;;  %v8140_v36 = vld [vmem:[%s8065_s25 + $0x60] sm:$0xff]  ;;  %v8143_v37 = vld [vmem:[%s8065_s25 + $0x68] sm:$0xff]  ;;  %v8152_v42 = vld [vmem:[%s8065_s25 + $0x70] sm:$0xff] }
  0x20   : > { %6688 = vmatmul.mubr.msk.f32.vlgmr.msra.gmra.mrb[0].mxu0 %vm437_vm2, %v378_v14  ;;  %v386_v26 = vsel %vm373_vm1, %v383_v15, %v385_v21  ;;  %v388_v28 = vsel %vm373_vm1, %v385_v21, %v387_v23  ;;  %v391_v29 = vrot.slane %v8119_v25, 1  ;;  %v393_v33 = vrot.slane %v8128_v30, 1  ;;  %v8155_v43 = vld [vmem:[%s8065_s25 + $0x78] sm:$0xff]  ;;  %v8164_v48 = vld [vmem:[%s8065_s25 + $0x80] sm:$0xff]  ;;  %v8167_v49 = vld [vmem:[%s8065_s25 + $0x88] sm:$0xff] }
  0x21   : > { %6736 = vmatpush3.msk.msra.mxu0 %vm502_vm0, %v338_v1  ;;  %6690 = vmatprep.mubr.msk.f32.mxu0 %vm437_vm2, %v380_v17  ;;  %v390_v32 = vsel %vm373_vm1, %v387_v23, %v389_v27  ;;  %v395_v35 = vrot.slane %v8131_v31, 1  ;;  %v397_v39 = vrot.slane %v8140_v36, 1  ;;  %v399_v41 = vrot.slane %v8143_v37, 1  ;;  %v8176_v54 = vld [vmem:[%s8065_s25 + $0x90] sm:$0xff]  ;;  %v8179_v55 = vld [vmem:[%s8065_s25 + $0x98] sm:$0xff]  ;;  %v8188_v60 = vld [vmem:[%s8065_s25 + $0xa0] sm:$0xff] }
  0x22   : > { %6785 = vmatprep.subr.msk.mxu0 %vm502_vm0, %v8104_v19  ;;  %v392_v34 = vsel %vm373_vm1, %v389_v27, %v391_v29  ;;  %v394_v38 = vsel %vm373_vm1, %v391_v29, %v393_v33  ;;  %v401_v45 = vrot.slane %v8152_v42, 1  ;;  %v403_v47 = vrot.slane %v8155_v43, 1  ;;  %v8191_v61 = vld [vmem:[%s8065_s25 + $0xa8] sm:$0xff]  ;;  %v8200_v5 = vld [vmem:[%s8065_s25 + $0xb0] sm:$0xff]  ;;  %v8203_v6 = vld [vmem:[%s8065_s25 + $0xb8] sm:$0xff] }
  0x23   : > { %v396_v40 = vsel %vm373_vm1, %v393_v33, %v395_v35  ;;  %v398_v44 = vsel %vm373_vm1, %v395_v35, %v397_v39  ;;  %v400_v46 = vsel %vm373_vm1, %v397_v39, %v399_v41  ;;  %v405_v51 = vrot.slane %v8164_v48, 1  ;;  %v8212_v14 = vld [vmem:[%s8065_s25 + $0xc0] sm:$0xff]  ;;  %v8215_v15 = vld [vmem:[%s8065_s25 + $0xc8] sm:$0xff]  ;;  %v8224_v23 = vld [vmem:[%s8065_s25 + $0xd0] sm:$0xff] }
  0x24   : > { %6691 = vmatmul.mubr.msk.f32.gmra.mrb[2].mxu0 %vm437_vm2, %v382_v20  ;;  %v402_v50 = vsel %vm373_vm1, %v399_v41, %v401_v45  ;;  %v404_v52 = vsel %vm373_vm1, %v401_v45, %v403_v47  ;;  %v407_v53 = vrot.slane %v8167_v49, 1  ;;  %v409_v57 = vrot.slane %v8176_v54, 1  ;;  %v8236_v33 = vld [vmem:[%s8065_s25 + $0xe0] sm:$0xff]  ;;  %v8248_v41 = vld [vmem:[%s8065_s25 + $0xf0] sm:$0xff] }
  0x25   : > { %6693 = vmatprep.mubr.msk.f32.mxu0 %vm437_vm2, %v384_v22  ;;  %v406_v56 = vsel %vm373_vm1, %v403_v47, %v405_v51  ;;  %v411_v59 = vrot.slane %v8179_v55, 1  ;;  %v413_v63 = vrot.slane %v8188_v60, 1  ;;  %v415_v1 = vrot.slane %v8191_v61, 1 }
  0x26   : > { %v408_v58 = vsel %vm373_vm1, %v405_v51, %v407_v53  ;;  %v410_v62 = vsel %vm373_vm1, %v407_v53, %v409_v57  ;;  %v417_v10 = vrot.slane %v8200_v5, 1  ;;  %v419_v13 = vrot.slane %v8203_v6, 1 }
  0x27   : > { %v412_v0 = vsel %vm373_vm1, %v409_v57, %v411_v59  ;;  %v414_v7 = vsel %vm373_vm1, %v411_v59, %v413_v63  ;;  %v416_v11 = vsel %vm373_vm1, %v413_v63, %v415_v1  ;;  %v421_v20 = vrot.slane %v8212_v14, 1 }
  0x28   : > { %6694 = vmatmul.mubr.msk.f32.gmra.mrb[4].mxu0 %vm437_vm2, %v386_v26  ;;  %v418_v17 = vsel %vm373_vm1, %v415_v1, %v417_v10  ;;  %v420_v21 = vsel %vm373_vm1, %v417_v10, %v419_v13  ;;  %v423_v22 = vrot.slane %v8215_v15, 1  ;;  %v8227_v26 = vld [vmem:[%s8065_s25 + $0xd8] sm:$0xff]  ;;  %v1027_v53 = vrot.slane %v8071_v3, 2 }
  0x29   : > { %6696 = vmatprep.mubr.msk.f32.mxu0 %vm437_vm2, %v388_v28  ;;  %v422_v27 = vsel %vm373_vm1, %v419_v13, %v421_v20  ;;  %v425_v28 = vrot.slane %v8224_v23, 1 }
  0x2a   : > { %v424_v29 = vsel %vm373_vm1, %v421_v20, %v423_v22 }
  0x2b   : > { %v426_v35 = vsel %vm373_vm1, %v423_v22, %v425_v28 }
  0x2c   : > { %6697 = vmatmul.mubr.msk.f32.gmra.mrb[6].mxu0 %vm437_vm2, %v390_v32  ;;  %v427_v32 = vrot.slane %v8227_v26, 1 }
  0x2d   : > { %6699 = vmatprep.mubr.msk.f32.mxu0 %vm437_vm2, %v392_v34  ;;  %v8239_v34 = vld [vmem:[%s8065_s25 + $0xe8] sm:$0xff] }
  0x2e   : > { %v428_v39 = vsel %vm373_vm1, %v425_v28, %v427_v32 }
  0x30   : > { %6700 = vmatmul.mubr.msk.f32.gmra.mrb[8].mxu0 %vm437_vm2, %v394_v38  ;;  %v429_v38 = vrot.slane %v8236_v33, 1 }
  0x31   : > { %6702 = vmatprep.mubr.msk.f32.mxu0 %vm437_vm2, %v396_v40  ;;  %v431_v40 = vrot.slane %v8239_v34, 1 }
  0x32   : > { %v430_v45 = vsel %vm373_vm1, %v427_v32, %v429_v38 }
  0x33   : > { %v432_v47 = vsel %vm373_vm1, %v429_v38, %v431_v40 }
  0x34   : > { %6703 = vmatmul.mubr.msk.f32.gmra.mrb[10].mxu0 %vm437_vm2, %v398_v44  ;;  %v8251_v44 = vld [vmem:[%s8065_s25 + $0xf8] sm:$0xff]  ;;  %s5951_s25 = sshll.u32 %s297_s24, 3 }
  0x35   : > { %6705 = vmatprep.mubr.msk.f32.mxu0 %vm437_vm2, %v400_v46  ;;  %v433_v46 = vrot.slane %v8248_v41, 1  ;;  %s299_s10 = scalar_lea.vmem [#allocation4], %s5951_s25 }
  0x36   : > { %s5888_s12 = sshll.u32 %s299_s10, 4  ;;  %s9873_s12 = int_to_ptr.vmem [resolvable:$true] %s5888_s12 }
  0x37   : > { %v434_v51 = vsel %vm373_vm1, %v431_v40, %v433_v46  ;;  %s7891_s20 = scalar_lea.vmem %s9873_s12, 128  ;;  %p7898_p0 = scmp.lt.s32.totalorder %s9873_s12, %s7896_s21 }
  0x38   : > { %6706 = vmatmul.mubr.msk.f32.gmra.mrb[12].mxu0 %vm437_vm2, %v402_v50  ;;  %v435_v50 = vrot.slane %v8251_v44, 1  ;;  %p7892_p11 = scmp.ne.s32.totalorder %s9873_s12, %s7891_s20  ;;  %p7899_p1 = scmp.lt.s32.totalorder %s7897_s22, %s7891_s20 }
  0x39   : > { %6708 = vmatprep.mubr.msk.f32.mxu0 %vm437_vm2, %v404_v52 }
  0x3a   : > { %v436_v52 = vsel %vm373_vm1, %v433_v46, %v435_v50  ;;  %p7893_p12 = pnand %p7892_p11, %p8042_p5  ;;  %p7900_p2 = por %p7899_p1, %p7898_p0 }
  0x3c   : > { %6709 = vmatmul.mubr.msk.f32.gmra.mrb[14].mxu0 %vm437_vm2, %v406_v56  ;;  %v1029_v56 = vrot.slane %v8074_v4, 2  ;;  %p7894_p13 = pneg %p7893_p12 }
  0x3d   : > { %6711 = vmatprep.mubr.msk.f32.mxu0 %vm437_vm2, %v408_v58  ;;  %v1031_v58 = vrot.slane %v8080_v8, 2 }
  0x3e   : > { %p7901_p3 = pnand %p7900_p2, %p7894_p13 }
  0x3f   : > { %v1032_v59 = vsel %vm1025_vm3, %v1029_v56, %v1031_v58 }
  0x40   : > { %6712 = vmatmul.mubr.msk.f32.gmra.mrb[16].mxu0 %vm437_vm2, %v410_v62 }
  0x41   : > { %6714 = vmatprep.mubr.msk.f32.mxu0 %vm437_vm2, %v412_v0  ;;  %v1039_v0 = vrot.slane %v8099_v18, 2 }
  0x44   : > { %6715 = vmatmul.mubr.msk.f32.gmra.mrb[18].mxu0 %vm437_vm2, %v414_v7  ;;  %v1043_v7 = vrot.slane %v8119_v25, 2 }
  0x45   : > { %6717 = vmatprep.mubr.msk.f32.mxu0 %vm437_vm2, %v416_v11  ;;  %v1047_v11 = vrot.slane %v8131_v31, 2 }
  0x48   : > { %6718 = vmatmul.mubr.msk.f32.gmra.mrb[20].mxu0 %vm437_vm2, %v418_v17  ;;  %v1051_v17 = vrot.slane %v8143_v37, 2 }
  0x49   : > { %6720 = vmatprep.mubr.msk.f32.mxu0 %vm437_vm2, %v420_v21  ;;  %v1055_v21 = vrot.slane %v8155_v43, 2 }
  0x4c   : > { %6721 = vmatmul.mubr.msk.f32.gmra.mrb[22].mxu0 %vm437_vm2, %v422_v27  ;;  %v1059_v27 = vrot.slane %v8167_v49, 2 }
  0x4d   : > { %6723 = vmatprep.mubr.msk.f32.mxu0 %vm437_vm2, %v424_v29  ;;  %v1063_v29 = vrot.slane %v8179_v55, 2 }
  0x50   : > { %6724 = vmatmul.mubr.msk.f32.gmra.mrb[24].mxu0 %vm437_vm2, %v426_v35  ;;  %v1067_v35 = vrot.slane %v8191_v61, 2 }
  0x51   : > { %6726 = vmatprep.mubr.msk.f32.mxu0 %vm437_vm2, %v428_v39  ;;  %v1071_v39 = vrot.slane %v8203_v6, 2 }
  0x54   : > { %6727 = vmatmul.mubr.msk.f32.gmra.mrb[26].mxu0 %vm437_vm2, %v430_v45  ;;  %v1075_v45 = vrot.slane %v8215_v15, 2 }
  0x55   : > { %6729 = vmatprep.mubr.msk.f32.mxu0 %vm437_vm2, %v432_v47  ;;  %v1079_v47 = vrot.slane %v8227_v26, 2 }
  0x58   : > { %6730 = vmatmul.mubr.msk.f32.gmra.mrb[28].mxu0 %vm437_vm2, %v434_v51  ;;  %v1083_v51 = vrot.slane %v8239_v34, 2 }
  0x59   : > { %6732 = vmatprep.mubr.msk.f32.mxu0 %vm437_vm2, %v436_v52 }
  0x5c   : > { %6733 = vmatmul.mubr.msk.f32.gmra.mrb[30].mxu0 %vm437_vm2, %v435_v50 }
  0x5d   : > { %6737 = vmatprep.mubr.msk.f32.mxu0 %vm437_vm2, %v8068_v2 }
  0x60   : > { %6738 = vmatmul.mubr.msk.f32.vlgmr.msra.gmra.mrb[0].mxu0 %vm437_vm2, %v8071_v3  ;;  %v1033_v3 = vrot.slane %v8083_v9, 2 }
  0x61   : > { %6786 = vmatpush3.msk.msra.mxu0 %vm502_vm0, %v8104_v19  ;;  %6740 = vmatprep.mubr.msk.f32.mxu0 %vm437_vm2, %v8074_v4  ;;  %v1026_v19 = vrot.slane %v8068_v2, 2  ;;  %v1030_v2 = vsel %vm1025_vm3, %v1027_v53, %v1029_v56  ;;  %v1035_v4 = vrot.slane %v8088_v12, 2  ;;  %v6057_v56 = vld [vmem:[%s9916_s2 + $0x28] sm:$0xff] }
  0x62   : > { %v1034_v62 = vsel %vm1025_vm3, %v1031_v58, %v1033_v3  ;;  %v1446_v58 = vld [vmem:[%s9916_s2 + $0x8] sm:$0xff] }
  0x63   : > { %v1028_v57 = vsel %vm1025_vm3, %v1026_v19, %v1027_v53  ;;  %v1036_v63 = vsel %vm1025_vm3, %v1033_v3, %v1035_v4  ;;  %v1087_v19 = vrot.slane %v8251_v44, 2 }
  0x64   : > { %6741 = vmatmul.mubr.msk.f32.gmra.mrb[2].mxu0 %vm437_vm2, %v8080_v8  ;;  %v1037_v8 = vrot.slane %v8094_v16, 2 }
  0x65   : > { %6743 = vmatprep.mubr.msk.f32.mxu0 %vm437_vm2, %v8083_v9 }
  0x66   : > { %v1038_v9 = vsel %vm1025_vm3, %v1035_v4, %v1037_v8  ;;  %v1040_v1 = vsel %vm1025_vm3, %v1037_v8, %v1039_v0 }
  0x68   : > { %6744 = vmatmul.mubr.msk.f32.gmra.mrb[4].mxu0 %vm437_vm2, %v8088_v12  ;;  %v1041_v12 = vrot.slane %v8114_v24, 2 }
  0x69   : > { %6746 = vmatprep.mubr.msk.f32.mxu0 %vm437_vm2, %v8094_v16 }
  0x6a   : > { %v1042_v16 = vsel %vm1025_vm3, %v1039_v0, %v1041_v12  ;;  %v1044_v10 = vsel %vm1025_vm3, %v1041_v12, %v1043_v7 }
  0x6c   : > { %6747 = vmatmul.mubr.msk.f32.gmra.mrb[6].mxu0 %vm437_vm2, %v8099_v18  ;;  %v1045_v18 = vrot.slane %v8128_v30, 2 }
  0x6d   : > { %6749 = vmatprep.mubr.msk.f32.mxu0 %vm437_vm2, %v8114_v24 }
  0x6e   : > { %v1046_v24 = vsel %vm1025_vm3, %v1043_v7, %v1045_v18  ;;  %v1048_v13 = vsel %vm1025_vm3, %v1045_v18, %v1047_v11 }
  0x70   : > { %6750 = vmatmul.mubr.msk.f32.gmra.mrb[8].mxu0 %vm437_vm2, %v8119_v25  ;;  %v1049_v25 = vrot.slane %v8140_v36, 2 }
  0x71   : > { %6752 = vmatprep.mubr.msk.f32.mxu0 %vm437_vm2, %v8128_v30 }
  0x72   : > { %v1050_v30 = vsel %vm1025_vm3, %v1047_v11, %v1049_v25  ;;  %v1052_v20 = vsel %vm1025_vm3, %v1049_v25, %v1051_v17 }
  0x74   : > { %6753 = vmatmul.mubr.msk.f32.gmra.mrb[10].mxu0 %vm437_vm2, %v8131_v31  ;;  %v1053_v31 = vrot.slane %v8152_v42, 2 }
  0x75   : > { %6755 = vmatprep.mubr.msk.f32.mxu0 %vm437_vm2, %v8140_v36 }
  0x76   : > { %v1054_v36 = vsel %vm1025_vm3, %v1051_v17, %v1053_v31  ;;  %v1056_v22 = vsel %vm1025_vm3, %v1053_v31, %v1055_v21  ;;  %v6122_v31 = vld [vmem:[%s9916_s2 + $0x30] sm:$0xff] }
  0x78   : > { %6756 = vmatmul.mubr.msk.f32.gmra.mrb[12].mxu0 %vm437_vm2, %v8143_v37  ;;  %v1057_v37 = vrot.slane %v8164_v48, 2 }
  0x79   : > { %6758 = vmatprep.mubr.msk.f32.mxu0 %vm437_vm2, %v8152_v42 }
  0x7a   : > { %v1058_v42 = vsel %vm1025_vm3, %v1055_v21, %v1057_v37  ;;  %v1060_v28 = vsel %vm1025_vm3, %v1057_v37, %v1059_v27 }
  0x7c   : > { %6759 = vmatmul.mubr.msk.f32.gmra.mrb[14].mxu0 %vm437_vm2, %v8155_v43  ;;  %v1061_v43 = vrot.slane %v8176_v54, 2 }
  0x7d   : > { %6761 = vmatprep.mubr.msk.f32.mxu0 %vm437_vm2, %v8164_v48 }
  0x7e   : > { %v1062_v48 = vsel %vm1025_vm3, %v1059_v27, %v1061_v43  ;;  %v1064_v32 = vsel %vm1025_vm3, %v1061_v43, %v1063_v29 }
  0x80   : > { %6762 = vmatmul.mubr.msk.f32.gmra.mrb[16].mxu0 %vm437_vm2, %v8167_v49  ;;  %v1065_v49 = vrot.slane %v8188_v60, 2 }
  0x81   : > { %6764 = vmatprep.mubr.msk.f32.mxu0 %vm437_vm2, %v8176_v54 }
  0x82   : > { %v1066_v54 = vsel %vm1025_vm3, %v1063_v29, %v1065_v49  ;;  %v1068_v38 = vsel %vm1025_vm3, %v1065_v49, %v1067_v35 }
  0x84   : > { %6765 = vmatmul.mubr.msk.f32.gmra.mrb[18].mxu0 %vm437_vm2, %v8179_v55  ;;  %v1069_v55 = vrot.slane %v8200_v5, 2 }
  0x85   : > { %6767 = vmatprep.mubr.msk.f32.mxu0 %vm437_vm2, %v8188_v60 }
  0x86   : > { %v1070_v60 = vsel %vm1025_vm3, %v1067_v35, %v1069_v55  ;;  %v1072_v40 = vsel %vm1025_vm3, %v1069_v55, %v1071_v39 }
  0x88   : > { %6768 = vmatmul.mubr.msk.f32.gmra.mrb[20].mxu0 %vm437_vm2, %v8191_v61  ;;  %v1073_v61 = vrot.slane %v8212_v14, 2 }
  0x89   : > { %6770 = vmatprep.mubr.msk.f32.mxu0 %vm437_vm2, %v8200_v5 }
  0x8a   : > { %v1074_v5 = vsel %vm1025_vm3, %v1071_v39, %v1073_v61  ;;  %v1076_v46 = vsel %vm1025_vm3, %v1073_v61, %v1075_v45 }
  0x8c   : > { %6771 = vmatmul.mubr.msk.f32.gmra.mrb[22].mxu0 %vm437_vm2, %v8203_v6  ;;  %v1077_v6 = vrot.slane %v8224_v23, 2 }
  0x8d   : > { %6773 = vmatprep.mubr.msk.f32.mxu0 %vm437_vm2, %v8212_v14 }
  0x8e   : > { %v1078_v14 = vsel %vm1025_vm3, %v1075_v45, %v1077_v6  ;;  %v1080_v50 = vsel %vm1025_vm3, %v1077_v6, %v1079_v47 }
  0x90   : > { %6774 = vmatmul.mubr.msk.f32.gmra.mrb[24].mxu0 %vm437_vm2, %v8215_v15  ;;  %v1081_v15 = vrot.slane %v8236_v33, 2 }
  0x91   : > { %6776 = vmatprep.mubr.msk.f32.mxu0 %vm437_vm2, %v8224_v23 }
  0x92   : > { %v1082_v23 = vsel %vm1025_vm3, %v1079_v47, %v1081_v15  ;;  %v1084_v52 = vsel %vm1025_vm3, %v1081_v15, %v1083_v51 }
  0x94   : > { %6777 = vmatmul.mubr.msk.f32.gmra.mrb[26].mxu0 %vm437_vm2, %v8227_v26  ;;  %v1085_v26 = vrot.slane %v8248_v41, 2 }
  0x95   : > { %6779 = vmatprep.mubr.msk.f32.mxu0 %vm437_vm2, %v8236_v33 }
  0x96   : > { %v1086_v33 = vsel %vm1025_vm3, %v1083_v51, %v1085_v26 }
  0x98   : > { %6780 = vmatmul.mubr.msk.f32.gmra.mrb[28].mxu0 %vm437_vm2, %v8239_v34  ;;  %v1088_v34 = vsel %vm1025_vm3, %v1085_v26, %v1087_v19 }
  0x99   : > { %6782 = vmatprep.mubr.msk.f32.mxu0 %vm437_vm2, %v8248_v41  ;;  %v6055_v41 = vld [vmem:[%s9916_s2 + $0x18] sm:$0xff] }
  0x9c   : > { %6783 = vmatmul.mubr.msk.f32.gmra.mrb[30].mxu0 %vm437_vm2, %v8251_v44  ;;  %v6056_v44 = vld [vmem:[%s9916_s2 + $0x20] sm:$0xff] }
  0x9d   : > { %6787 = vmatprep.mubr.msk.f32.mxu0 %vm437_vm2, %v1028_v57  ;;  %v7495_v53 = vpack.c.bf16 %v6056_v44, %v6055_v41  ;;  %v1445_v57 = vld [vmem:[%s9916_s2] sm:$0xff] }
  0x9f   : > { %7496 = vmatprep.subr.bf16.mxu1 %v7495_v53 }
  0xa0   : > { %6788 = vmatmul.mubr.msk.f32.vlgmr.msra.gmra.mrb[0].mxu0 %vm437_vm2, %v1030_v2  ;;  %7498 = vmatpush3.bf16.msra.mxu1 %v7495_v53  ;;  %v7499_v2 = vpack.c.bf16 %v1446_v58, %v1445_v57 }
  0xa1   : > { %6790 = vmatprep.mubr.msk.f32.mxu0 %vm437_vm2, %v1032_v59  ;;  %6839 = vmatprep.subr.mxu1 %v6057_v56 }
  0xa4   : > { %6791 = vmatmul.mubr.msk.f32.gmra.mrb[2].mxu0 %vm437_vm2, %v1034_v62  ;;  %6840 = vmatpush3.msra.mxu1 %v6057_v56 }
  0xa5   : > { %6793 = vmatprep.mubr.msk.f32.mxu0 %vm437_vm2, %v1036_v63  ;;  %7500 = vmatprep.subr.bf16.mxu1 %v7499_v2 }
  0xa8   : > { %6794 = vmatmul.mubr.msk.f32.gmra.mrb[4].mxu0 %vm437_vm2, %v1038_v9 }
  0xa9   : > { %6796 = vmatprep.mubr.msk.f32.mxu0 %vm437_vm2, %v1040_v1 }
  0xac   : > { %6797 = vmatmul.mubr.msk.f32.gmra.mrb[6].mxu0 %vm437_vm2, %v1042_v16 }
  0xad   : > { %6799 = vmatprep.mubr.msk.f32.mxu0 %vm437_vm2, %v1044_v10 }
  0xb0   : > { %6800 = vmatmul.mubr.msk.f32.gmra.mrb[8].mxu0 %vm437_vm2, %v1046_v24 }
  0xb1   : > { %6802 = vmatprep.mubr.msk.f32.mxu0 %vm437_vm2, %v1048_v13 }
  0xb4   : > { %6803 = vmatmul.mubr.msk.f32.gmra.mrb[10].mxu0 %vm437_vm2, %v1050_v30  ;;  %v1447_v30 = vld [vmem:[%s9916_s2 + $0x10] sm:$0xff] }
  0xb5   : > { %6805 = vmatprep.mubr.msk.f32.mxu0 %vm437_vm2, %v1052_v20  ;;  %v6123_v20 = vld [vmem:[%s9916_s2 + $0x38] sm:$0xff] }
  0xb8   : > { %6806 = vmatmul.mubr.msk.f32.gmra.mrb[12].mxu0 %vm437_vm2, %v1054_v36 }
  0xb9   : > { %6808 = vmatprep.mubr.msk.f32.mxu0 %vm437_vm2, %v1056_v22 }
  0xbc   : > { %6809 = vmatmul.mubr.msk.f32.gmra.mrb[14].mxu0 %vm437_vm2, %v1058_v42  ;;  %v8477_v42 = vpack.c.bf16 %v6123_v20, %v6122_v31 }
  0xbd   : > { %6811 = vmatprep.mubr.msk.f32.mxu0 %vm437_vm2, %v1060_v28 }
  0xc0   : > { %6812 = vmatmul.mubr.msk.f32.gmra.mrb[16].mxu0 %vm437_vm2, %v1062_v48 }
  0xc1   : > { %6814 = vmatprep.mubr.msk.f32.mxu0 %vm437_vm2, %v1064_v32 }
  0xc4   : > { %6815 = vmatmul.mubr.msk.f32.gmra.mrb[18].mxu0 %vm437_vm2, %v1066_v54 }
  0xc5   : > { %6817 = vmatprep.mubr.msk.f32.mxu0 %vm437_vm2, %v1068_v38 }
  0xc8   : > { %6818 = vmatmul.mubr.msk.f32.gmra.mrb[20].mxu0 %vm437_vm2, %v1070_v60 }
  0xc9   : > { %6820 = vmatprep.mubr.msk.f32.mxu0 %vm437_vm2, %v1072_v40 }
  0xcc   : > { %6821 = vmatmul.mubr.msk.f32.gmra.mrb[22].mxu0 %vm437_vm2, %v1074_v5 }
  0xcd   : > { %6823 = vmatprep.mubr.msk.f32.mxu0 %vm437_vm2, %v1076_v46 }
  0xd0   : > { %6824 = vmatmul.mubr.msk.f32.gmra.mrb[24].mxu0 %vm437_vm2, %v1078_v14 }
  0xd1   : > { %6826 = vmatprep.mubr.msk.f32.mxu0 %vm437_vm2, %v1080_v50 }
  0xd4   : > { %6827 = vmatmul.mubr.msk.f32.gmra.mrb[26].mxu0 %vm437_vm2, %v1082_v23 }
  0xd5   : > { %6829 = vmatprep.mubr.msk.f32.mxu0 %vm437_vm2, %v1084_v52 }
  0xd8   : > { %6830 = vmatmul.mubr.msk.f32.gmra.mrb[28].mxu0 %vm437_vm2, %v1086_v33 }
  0xd9   : > { %6832 = vmatprep.mubr.msk.f32.mxu0 %vm437_vm2, %v1088_v34 }
  0xdc   : > { %6833 = vmatmul.mubr.msk.f32.gmra.mrb[30].mxu0 %vm437_vm2, %v1087_v19 }
 0x173   : > { %v6789_v3 = vpop.f32.mrb[0].mxu0 }
 0x174   : > { %v8442_v59 = vmax.f32 %v6789_v3, 0.0  ;;  %v1222_v4 = vpop.f32.mrb[1].mxu0 }
 0x175   : > { %v8444_v62 = vmax.f32 %v1222_v4, 0.0 }
 0x176   : > { %v1485_v8 = vrot.slane %v8442_v59, 2 }
 0x177   : > { %v6792_v63 = vpop.f32.mrb[2].mxu0  ;;  %v1484_v0 = vrot.slane %v8444_v62, 2 }
 0x178   : > { %v8448_v9 = vmax.f32 %v6792_v63, 0.0  ;;  %v1232_v12 = vpop.f32.mrb[3].mxu0 }
 0x179   : > { %v8450_v1 = vmax.f32 %v1232_v12, 0.0  ;;  %v1486_v7 = vsel %vm1025_vm3, %v1484_v0, %v1485_v8 }
 0x17a   : > { %v1489_v16 = vrot.slane %v8448_v9, 2  ;;  %6841 = vmatprep.mubr.msk.f32.mxu1 %vm1547_vm4, %v1486_v7 }
 0x17b   : > { %v1487_v18 = vrot.slane %v8450_v1, 2  ;;  %v6795_v10 = vpop.f32.mrb[4].mxu0 }
 0x17c   : > { %v8456_v11 = vmax.f32 %v6795_v10, 0.0  ;;  %v1242_v24 = vpop.f32.mrb[5].mxu0 }
 0x17d   : > { %v8458_v25 = vmax.f32 %v1242_v24, 0.0  ;;  %v1488_v13 = vsel %vm1025_vm3, %v1485_v8, %v1487_v18  ;;  %v1490_v17 = vsel %vm1025_vm3, %v1487_v18, %v1489_v16 }
 0x17e   : > { %v1493_v21 = vrot.slane %v8456_v11, 2  ;;  %6842 = vmatmul.mubr.msk.f32.vlgmr.msra.gmra.mrb[0].mxu1 %vm1547_vm4, %v1488_v13 }
 0x17f   : > { %v1491_v36 = vrot.slane %v8458_v25, 2  ;;  %7502 = vmatpush3.bf16.msra.mxu1 %v7499_v2  ;;  %v6798_v37 = vpop.f32.mrb[6].mxu0  ;;  %6844 = vmatprep.mubr.msk.f32.mxu1 %vm1547_vm4, %v1490_v17 }
 0x180   : > { %v8475_v22 = vmax.f32 %v6798_v37, 0.0  ;;  %v1252_v27 = vpop.f32.mrb[7].mxu0  ;;  %6893 = vmatprep.subr.mxu1 %v1447_v30 }
 0x181   : > { %v8479_v43 = vmax.f32 %v1252_v27, 0.0  ;;  %v1492_v28 = vsel %vm1025_vm3, %v1489_v16, %v1491_v36  ;;  %v1494_v29 = vsel %vm1025_vm3, %v1491_v36, %v1493_v21 }
 0x182   : > { %v1497_v48 = vrot.slane %v8475_v22, 2  ;;  %6845 = vmatmul.mubr.msk.f32.gmra.mrb[2].mxu1 %vm1547_vm4, %v1492_v28 }
 0x183   : > { %v1495_v49 = vrot.slane %v8479_v43, 2  ;;  %v6801_v32 = vpop.f32.mrb[8].mxu0  ;;  %6847 = vmatprep.mubr.msk.f32.mxu1 %vm1547_vm4, %v1494_v29  ;;  %6894 = vmatpush3.msra.mxu1 %v1447_v30 }
 0x184   : > { %v8487_v35 = vmax.f32 %v6801_v32, 0.0  ;;  %v1262_v54 = vpop.f32.mrb[9].mxu0  ;;  %7504 = vmatprep.subr.bf16.mxu1 %v8477_v42 }
 0x185   : > { %v8490_v55 = vmax.f32 %v1262_v54, 0.0  ;;  %v1496_v38 = vsel %vm1025_vm3, %v1493_v21, %v1495_v49  ;;  %v1498_v39 = vsel %vm1025_vm3, %v1495_v49, %v1497_v48 }
 0x186   : > { %v1501_v60 = vrot.slane %v8487_v35, 2  ;;  %6848 = vmatmul.mubr.msk.f32.gmra.mrb[4].mxu1 %vm1547_vm4, %v1496_v38 }
 0x187   : > { %v1499_v61 = vrot.slane %v8490_v55, 2  ;;  %v6804_v40 = vpop.f32.mrb[10].mxu0  ;;  %6850 = vmatprep.mubr.msk.f32.mxu1 %vm1547_vm4, %v1498_v39 }
 0x188   : > { %v8498_v45 = vmax.f32 %v6804_v40, 0.0  ;;  %v1272_v5 = vpop.f32.mrb[11].mxu0 }
 0x189   : > { %v8500_v6 = vmax.f32 %v1272_v5, 0.0  ;;  %v1500_v46 = vsel %vm1025_vm3, %v1497_v48, %v1499_v61  ;;  %v1502_v47 = vsel %vm1025_vm3, %v1499_v61, %v1501_v60 }
 0x18a   : > { %v1505_v14 = vrot.slane %v8498_v45, 2  ;;  %6851 = vmatmul.mubr.msk.f32.gmra.mrb[6].mxu1 %vm1547_vm4, %v1500_v46 }
 0x18b   : > { %v1503_v15 = vrot.slane %v8500_v6, 2  ;;  %v6807_v50 = vpop.f32.mrb[12].mxu0  ;;  %6853 = vmatprep.mubr.msk.f32.mxu1 %vm1547_vm4, %v1502_v47 }
 0x18c   : > { %v8508_v51 = vmax.f32 %v6807_v50, 0.0  ;;  %v1282_v23 = vpop.f32.mrb[13].mxu0 }
 0x18d   : > { %v8510_v26 = vmax.f32 %v1282_v23, 0.0  ;;  %v1504_v52 = vsel %vm1025_vm3, %v1501_v60, %v1503_v15  ;;  %v1506_v19 = vsel %vm1025_vm3, %v1503_v15, %v1505_v14 }
 0x18e   : > { %v1509_v33 = vrot.slane %v8508_v51, 2  ;;  %6854 = vmatmul.mubr.msk.f32.gmra.mrb[8].mxu1 %vm1547_vm4, %v1504_v52 }
 0x18f   : > { %v1507_v34 = vrot.slane %v8510_v26, 2  ;;  %v6810_v41 = vpop.f32.mrb[14].mxu0  ;;  %6856 = vmatprep.mubr.msk.f32.mxu1 %vm1547_vm4, %v1506_v19 }
 0x190   : > { %v8518_v44 = vmax.f32 %v6810_v41, 0.0  ;;  %v1292_v53 = vpop.f32.mrb[15].mxu0 }
 0x191   : > { %v8520_v56 = vmax.f32 %v1292_v53, 0.0  ;;  %v1508_v57 = vsel %vm1025_vm3, %v1505_v14, %v1507_v34  ;;  %v1510_v58 = vsel %vm1025_vm3, %v1507_v34, %v1509_v33 }
 0x192   : > { %v1513_v2 = vrot.slane %v8518_v44, 2  ;;  %6857 = vmatmul.mubr.msk.f32.gmra.mrb[10].mxu1 %vm1547_vm4, %v1508_v57 }
 0x193   : > { %v1511_v3 = vrot.slane %v8520_v56, 2  ;;  %v6813_v4 = vpop.f32.mrb[16].mxu0  ;;  %6859 = vmatprep.mubr.msk.f32.mxu1 %vm1547_vm4, %v1510_v58 }
 0x194   : > { %v8528_v8 = vmax.f32 %v6813_v4, 0.0  ;;  %v1302_v63 = vpop.f32.mrb[17].mxu0 }
 0x195   : > { %v8530_v0 = vmax.f32 %v1302_v63, 0.0  ;;  %v1512_v12 = vsel %vm1025_vm3, %v1509_v33, %v1511_v3  ;;  %v1514_v7 = vsel %vm1025_vm3, %v1511_v3, %v1513_v2 }
 0x196   : > { %v1517_v16 = vrot.slane %v8528_v8, 2  ;;  %6860 = vmatmul.mubr.msk.f32.gmra.mrb[12].mxu1 %vm1547_vm4, %v1512_v12 }
 0x197   : > { %v1515_v18 = vrot.slane %v8530_v0, 2  ;;  %v6816_v10 = vpop.f32.mrb[18].mxu0  ;;  %6862 = vmatprep.mubr.msk.f32.mxu1 %vm1547_vm4, %v1514_v7 }
 0x198   : > { %v8538_v24 = vmax.f32 %v6816_v10, 0.0  ;;  %v1312_v13 = vpop.f32.mrb[19].mxu0 }
 0x199   : > { %v8540_v17 = vmax.f32 %v1312_v13, 0.0  ;;  %v1516_v30 = vsel %vm1025_vm3, %v1513_v2, %v1515_v18  ;;  %v1518_v31 = vsel %vm1025_vm3, %v1515_v18, %v1517_v16 }
 0x19a   : > { %v1521_v20 = vrot.slane %v8538_v24, 2  ;;  %6863 = vmatmul.mubr.msk.f32.gmra.mrb[14].mxu1 %vm1547_vm4, %v1516_v30 }
 0x19b   : > { %v1519_v21 = vrot.slane %v8540_v17, 2  ;;  %v6819_v36 = vpop.f32.mrb[20].mxu0  ;;  %6865 = vmatprep.mubr.msk.f32.mxu1 %vm1547_vm4, %v1518_v31 }
 0x19c   : > { %v8548_v37 = vmax.f32 %v6819_v36, 0.0  ;;  %v1322_v27 = vpop.f32.mrb[21].mxu0 }
 0x19d   : > { %v8550_v28 = vmax.f32 %v1322_v27, 0.0  ;;  %v1520_v29 = vsel %vm1025_vm3, %v1517_v16, %v1519_v21  ;;  %v1522_v48 = vsel %vm1025_vm3, %v1519_v21, %v1521_v20 }
 0x19e   : > { %v1525_v49 = vrot.slane %v8548_v37, 2  ;;  %6866 = vmatmul.mubr.msk.f32.gmra.mrb[16].mxu1 %vm1547_vm4, %v1520_v29 }
 0x19f   : > { %v1523_v32 = vrot.slane %v8550_v28, 2  ;;  %v6822_v54 = vpop.f32.mrb[22].mxu0  ;;  %6868 = vmatprep.mubr.msk.f32.mxu1 %vm1547_vm4, %v1522_v48 }
 0x1a0   : > { %v8558_v38 = vmax.f32 %v6822_v54, 0.0  ;;  %v1332_v39 = vpop.f32.mrb[23].mxu0 }
 0x1a1   : > { %v8560_v60 = vmax.f32 %v1332_v39, 0.0  ;;  %v1524_v61 = vsel %vm1025_vm3, %v1521_v20, %v1523_v32  ;;  %v1526_v40 = vsel %vm1025_vm3, %v1523_v32, %v1525_v49  ;;  %v2546_v39 = vld [vmem:[%s9917_s3] sm:$0xff] }
 0x1a2   : > { %v1529_v5 = vrot.slane %v8558_v38, 2  ;;  %6869 = vmatmul.mubr.msk.f32.gmra.mrb[18].mxu1 %vm1547_vm4, %v1524_v61  ;;  %v2547_v61 = vld [vmem:[%s9917_s3 + $0x8] sm:$0xff] }
 0x1a3   : > { %v1527_v46 = vrot.slane %v8560_v60, 2  ;;  %v6825_v47 = vpop.f32.mrb[24].mxu0  ;;  %6871 = vmatprep.mubr.msk.f32.mxu1 %vm1547_vm4, %v1526_v40  ;;  %v2548_v40 = vld [vmem:[%s9917_s3 + $0x10] sm:$0xff] }
 0x1a4   : > { %v8568_v14 = vmax.f32 %v6825_v47, 0.0  ;;  %v1342_v15 = vpop.f32.mrb[25].mxu0  ;;  %v2549_v47 = vld [vmem:[%s9917_s3 + $0x18] sm:$0xff] }
 0x1a5   : > { %v8570_v50 = vmax.f32 %v1342_v15, 0.0  ;;  %v1528_v23 = vsel %vm1025_vm3, %v1525_v49, %v1527_v46  ;;  %v1530_v52 = vsel %vm1025_vm3, %v1527_v46, %v1529_v5  ;;  %v7517_v46 = vpack.c.bf16 %v2547_v61, %v2546_v39  ;;  %v6124_v15 = vld [vmem:[%s9916_s2 + $0x40] sm:$0xff] }
 0x1a6   : > { %v1533_v19 = vrot.slane %v8568_v14, 2  ;;  %6872 = vmatmul.mubr.msk.f32.gmra.mrb[20].mxu1 %vm1547_vm4, %v1528_v23  ;;  %v7520_v23 = vpack.c.bf16 %v2549_v47, %v2548_v40  ;;  %v2167_v61 = vrot.slane %v8538_v24, 4 }
 0x1a7   : > { %v1531_v33 = vrot.slane %v8570_v50, 2  ;;  %v6828_v34 = vpop.f32.mrb[26].mxu0  ;;  %6874 = vmatprep.mubr.msk.f32.mxu1 %vm1547_vm4, %v1530_v52  ;;  %v2550_v52 = vld [vmem:[%s9917_s3 + $0x20] sm:$0xff] }
 0x1a8   : > { %v8578_v41 = vmax.f32 %v6828_v34, 0.0  ;;  %v1352_v53 = vpop.f32.mrb[27].mxu0  ;;  %v2130_v34 = vrot.slane %v8444_v62, 4 }
 0x1a9   : > { %v8580_v57 = vmax.f32 %v1352_v53, 0.0  ;;  %v1532_v58 = vsel %vm1025_vm3, %v1529_v5, %v1531_v33  ;;  %v1534_v2 = vsel %vm1025_vm3, %v1531_v33, %v1533_v19  ;;  %v9923_v5 = vmov 0.0|0.0   ;;  %v6157_v53 = vld [vmem:[%s9917_s3 + $0x30] sm:$0xff] }
 0x1aa   : > { %v1537_v3 = vrot.slane %v8578_v41, 2  ;;  %6875 = vmatmul.mubr.msk.f32.gmra.mrb[22].mxu1 %vm1547_vm4, %v1532_v58  ;;  %7516 = vmatprep.subr.bf16.mxu0 %v9923_v5  ;;  %v6158_v58 = vld [vmem:[%s9917_s3 + $0x38] sm:$0xff] }
 0x1ab   : > { %v1535_v4 = vrot.slane %v8580_v57, 2  ;;  %v6831_v63 = vpop.f32.mrb[28].mxu0  ;;  %6877 = vmatprep.mubr.msk.f32.mxu1 %vm1547_vm4, %v1534_v2  ;;  %7518 = vmatpush3.bf16.msra.mxu0 %v7517_v46  ;;  %v2133_v2 = vrot.slane %v8450_v1, 4  ;;  %v2171_v46 = vrot.slane %v8548_v37, 4 }
 0x1ac   : > { %v8588_v12 = vmax.f32 %v6831_v63, 0.0  ;;  %v1362_v7 = vpop.f32.mrb[29].mxu0  ;;  %7519 = vmatprep.subr.bf16.mxu0 %v9923_v5 }
 0x1ad   : > { %v8590_v16 = vmax.f32 %v1362_v7, 0.0  ;;  %v1536_v18 = vsel %vm1025_vm3, %v1533_v19, %v1535_v4  ;;  %v1538_v10 = vsel %vm1025_vm3, %v1535_v4, %v1537_v3  ;;  %v2551_v19 = vld [vmem:[%s9917_s3 + $0x28] sm:$0xff]  ;;  %v2137_v4 = vrot.slane %v8458_v25, 4 }
 0x1ae   : > { %v1541_v13 = vrot.slane %v8588_v12, 2  ;;  %6878 = vmatmul.mubr.msk.f32.gmra.mrb[24].mxu1 %vm1547_vm4, %v1536_v18  ;;  %v7523_v33 = vpack.c.bf16 %v2551_v19, %v2550_v52  ;;  %v2139_v7 = vrot.slane %v8456_v11, 4  ;;  %v2179_v52 = vrot.slane %v8568_v14, 4 }
 0x1af   : > { %v1539_v30 = vrot.slane %v8590_v16, 2  ;;  %v6834_v31 = vpop.f32.mrb[30].mxu0  ;;  %6880 = vmatprep.mubr.msk.f32.mxu1 %vm1547_vm4, %v1538_v10  ;;  %7521 = vmatpush3.bf16.msra.mxu0 %v7520_v23  ;;  %v2143_v10 = vrot.slane %v8475_v22, 4 }
 0x1b0   : > { %v8598_v20 = vmax.f32 %v6834_v31, 0.0  ;;  %v1372_v21 = vpop.f32.mrb[31].mxu0  ;;  %7522 = vmatprep.subr.bf16.mxu0 %v9923_v5 }
 0x1b1   : > { %v8600_v36 = vmax.f32 %v1372_v21, 0.0  ;;  %v1540_v27 = vsel %vm1025_vm3, %v1537_v3, %v1539_v30  ;;  %v1542_v29 = vsel %vm1025_vm3, %v1539_v30, %v1541_v13  ;;  %v7508_v3 = vpack.c.bf16 %v6158_v58, %v6157_v53 }
 0x1b2   : > { %v1545_v48 = vrot.slane %v8598_v20, 2  ;;  %6881 = vmatmul.mubr.msk.f32.gmra.mrb[26].mxu1 %vm1547_vm4, %v1540_v27  ;;  %v2147_v30 = vrot.slane %v8487_v35, 4  ;;  %v2151_v21 = vrot.slane %v8498_v45, 4  ;;  %v2191_v58 = vrot.slane %v8598_v20, 4 }
 0x1b3   : > { %v1543_v49 = vrot.slane %v8600_v36, 2  ;;  %6883 = vmatprep.mubr.msk.f32.mxu1 %vm1547_vm4, %v1542_v29  ;;  %7524 = vmatpush3.bf16.msra.mxu0 %v7523_v33  ;;  %v2155_v29 = vrot.slane %v8508_v51, 4  ;;  %v2183_v33 = vrot.slane %v8578_v41, 4 }
 0x1b4   : > { %7525 = vmatprep.subr.bf16.mxu0 %v9923_v5 }
 0x1b5   : > { %v1544_v32 = vsel %vm1025_vm3, %v1541_v13, %v1543_v49  ;;  %v1546_v54 = vsel %vm1025_vm3, %v1543_v49, %v1545_v48  ;;  %v2159_v49 = vrot.slane %v8518_v44, 4 }
 0x1b6   : > { %6884 = vmatmul.mubr.msk.f32.gmra.mrb[28].mxu1 %vm1547_vm4, %v1544_v32 }
 0x1b7   : > { %6886 = vmatprep.mubr.msk.f32.mxu1 %vm1547_vm4, %v1546_v54  ;;  %v2163_v54 = vrot.slane %v8528_v8, 4 }
 0x1ba   : > { %6887 = vmatmul.mubr.msk.f32.gmra.mrb[30].mxu1 %vm1547_vm4, %v1545_v48 }
 0x1bb   : > { %6895 = vmatprep.mubr.msk.f32.mxu1 %vm1547_vm4, %v8444_v62 }
 0x1be   : > { %6896 = vmatmul.mubr.msk.f32.vlgmr.msra.gmra.mrb[0].mxu1 %vm1547_vm4, %v8442_v59 }
 0x1bf   : > { %7506 = vmatpush3.bf16.msra.mxu1 %v8477_v42  ;;  %6898 = vmatprep.mubr.msk.f32.mxu1 %vm1547_vm4, %v8450_v1  ;;  %v2131_v42 = vrot.slane %v8442_v59, 4  ;;  %v2135_v59 = vrot.slane %v8448_v9, 4 }
 0x1c0   : > { %6947 = vmatprep.subr.mxu1 %v6124_v15 }
 0x1c1   : > { %v2132_v62 = vsel %vm502_vm0, %v2130_v34, %v2131_v42  ;;  %v2134_v63 = vsel %vm502_vm0, %v2131_v42, %v2133_v2  ;;  %v2136_v1 = vsel %vm502_vm0, %v2133_v2, %v2135_v59  ;;  %v2138_v18 = vsel %vm502_vm0, %v2135_v59, %v2137_v4 }
 0x1c2   : > { %6899 = vmatmul.mubr.msk.f32.gmra.mrb[2].mxu1 %vm1547_vm4, %v8448_v9  ;;  %v2141_v9 = vrot.slane %v8479_v43, 4  ;;  %v2187_v34 = vrot.slane %v8588_v12, 4 }
 0x1c3   : > { %6901 = vmatprep.mubr.msk.f32.mxu1 %vm1547_vm4, %v8458_v25  ;;  %6948 = vmatpush3.msra.mxu1 %v6124_v15  ;;  %v2140_v25 = vsel %vm502_vm0, %v2137_v4, %v2139_v7  ;;  %v2175_v15 = vrot.slane %v8558_v38, 4 }
 0x1c4   : > { %7507 = vmatprep.subr.bf16.mxu1 %v9923_v5  ;;  %v2142_v13 = vsel %vm502_vm0, %v2139_v7, %v2141_v9  ;;  %v6225_v7 = vld [vmem:[%s9917_s3 + $0x60] sm:$0xff] }
 0x1c6   : > { %6902 = vmatmul.mubr.msk.f32.gmra.mrb[4].mxu1 %vm1547_vm4, %v8456_v11  ;;  %v2145_v11 = vrot.slane %v8490_v55, 4 }
 0x1c7   : > { %6904 = vmatprep.mubr.msk.f32.mxu1 %vm1547_vm4, %v8479_v43  ;;  %v2144_v43 = vsel %vm502_vm0, %v2141_v9, %v2143_v10 }
 0x1c8   : > { %v2146_v31 = vsel %vm502_vm0, %v2143_v10, %v2145_v11 }
 0x1ca   : > { %6905 = vmatmul.mubr.msk.f32.gmra.mrb[6].mxu1 %vm1547_vm4, %v8475_v22  ;;  %v2149_v22 = vrot.slane %v8500_v6, 4 }
 0x1cb   : > { %6907 = vmatprep.mubr.msk.f32.mxu1 %vm1547_vm4, %v8490_v55  ;;  %v2148_v55 = vsel %vm502_vm0, %v2145_v11, %v2147_v30 }
 0x1cc   : > { %v2150_v27 = vsel %vm502_vm0, %v2147_v30, %v2149_v22  ;;  %v6228_v30 = vld [vmem:[%s9917_s3 + $0x78] sm:$0xff] }
 0x1ce   : > { %6908 = vmatmul.mubr.msk.f32.gmra.mrb[8].mxu1 %vm1547_vm4, %v8487_v35  ;;  %v2153_v35 = vrot.slane %v8510_v26, 4 }
 0x1cf   : > { %6910 = vmatprep.mubr.msk.f32.mxu1 %vm1547_vm4, %v8500_v6  ;;  %v2152_v6 = vsel %vm502_vm0, %v2149_v22, %v2151_v21  ;;  %v3642_v22 = vld [vmem:[%s9918_s4 + $0x10] sm:$0xff] }
 0x1d0   : > { %v2154_v48 = vsel %vm502_vm0, %v2151_v21, %v2153_v35 }
 0x1d2   : > { %6911 = vmatmul.mubr.msk.f32.gmra.mrb[10].mxu1 %vm1547_vm4, %v8498_v45  ;;  %v2157_v45 = vrot.slane %v8520_v56, 4 }
 0x1d3   : > { %6913 = vmatprep.mubr.msk.f32.mxu1 %vm1547_vm4, %v8510_v26  ;;  %v2156_v26 = vsel %vm502_vm0, %v2153_v35, %v2155_v29 }
 0x1d4   : > { %v2158_v32 = vsel %vm502_vm0, %v2155_v29, %v2157_v45 }
 0x1d6   : > { %6914 = vmatmul.mubr.msk.f32.gmra.mrb[12].mxu1 %vm1547_vm4, %v8508_v51  ;;  %v2161_v51 = vrot.slane %v8530_v0, 4 }
 0x1d7   : > { %6916 = vmatprep.mubr.msk.f32.mxu1 %vm1547_vm4, %v8520_v56  ;;  %v2160_v56 = vsel %vm502_vm0, %v2157_v45, %v2159_v49 }
 0x1d8   : > { %v2162_v39 = vsel %vm502_vm0, %v2159_v49, %v2161_v51  ;;  %v6230_v49 = vld [vmem:[%s9917_s3 + $0x88] sm:$0xff] }
 0x1da   : > { %6917 = vmatmul.mubr.msk.f32.gmra.mrb[14].mxu1 %vm1547_vm4, %v8518_v44  ;;  %v2165_v44 = vrot.slane %v8540_v17, 4 }
 0x1db   : > { %6919 = vmatprep.mubr.msk.f32.mxu1 %vm1547_vm4, %v8530_v0  ;;  %v2164_v0 = vsel %vm502_vm0, %v2161_v51, %v2163_v54 }
 0x1dc   : > { %v2166_v40 = vsel %vm502_vm0, %v2163_v54, %v2165_v44 }
 0x1de   : > { %6920 = vmatmul.mubr.msk.f32.gmra.mrb[16].mxu1 %vm1547_vm4, %v8528_v8  ;;  %v2169_v8 = vrot.slane %v8550_v28, 4 }
 0x1df   : > { %6922 = vmatprep.mubr.msk.f32.mxu1 %vm1547_vm4, %v8540_v17  ;;  %v2168_v17 = vsel %vm502_vm0, %v2165_v44, %v2167_v61 }
 0x1e0   : > { %v2170_v47 = vsel %vm502_vm0, %v2167_v61, %v2169_v8 }
 0x1e2   : > { %6923 = vmatmul.mubr.msk.f32.gmra.mrb[18].mxu1 %vm1547_vm4, %v8538_v24  ;;  %v2173_v24 = vrot.slane %v8560_v60, 4 }
 0x1e3   : > { %6925 = vmatprep.mubr.msk.f32.mxu1 %vm1547_vm4, %v8550_v28  ;;  %v2172_v28 = vsel %vm502_vm0, %v2169_v8, %v2171_v46 }
 0x1e4   : > { %v2174_v23 = vsel %vm502_vm0, %v2171_v46, %v2173_v24 }
 0x1e6   : > { %6926 = vmatmul.mubr.msk.f32.gmra.mrb[20].mxu1 %vm1547_vm4, %v8548_v37  ;;  %v2177_v37 = vrot.slane %v8570_v50, 4 }
 0x1e7   : > { %6928 = vmatprep.mubr.msk.f32.mxu1 %vm1547_vm4, %v8560_v60  ;;  %v2176_v60 = vsel %vm502_vm0, %v2173_v24, %v2175_v15 }
 0x1e8   : > { %v2178_v19 = vsel %vm502_vm0, %v2175_v15, %v2177_v37 }
 0x1ea   : > { %6929 = vmatmul.mubr.msk.f32.gmra.mrb[22].mxu1 %vm1547_vm4, %v8558_v38  ;;  %v2181_v38 = vrot.slane %v8580_v57, 4 }
 0x1eb   : > { %6931 = vmatprep.mubr.msk.f32.mxu1 %vm1547_vm4, %v8570_v50  ;;  %v2180_v50 = vsel %vm502_vm0, %v2177_v37, %v2179_v52 }
 0x1ec   : > { %v2182_v42 = vsel %vm502_vm0, %v2179_v52, %v2181_v38 }
 0x1ee   : > { %6932 = vmatmul.mubr.msk.f32.gmra.mrb[24].mxu1 %vm1547_vm4, %v8568_v14  ;;  %v2185_v14 = vrot.slane %v8590_v16, 4 }
 0x1ef   : > { %6934 = vmatprep.mubr.msk.f32.mxu1 %vm1547_vm4, %v8580_v57  ;;  %v2184_v57 = vsel %vm502_vm0, %v2181_v38, %v2183_v33 }
 0x1f0   : > { %v2186_v53 = vsel %vm502_vm0, %v2183_v33, %v2185_v14 }
 0x1f2   : > { %6935 = vmatmul.mubr.msk.f32.gmra.mrb[26].mxu1 %vm1547_vm4, %v8578_v41  ;;  %v2189_v41 = vrot.slane %v8600_v36, 4 }
 0x1f3   : > { %6937 = vmatprep.mubr.msk.f32.mxu1 %vm1547_vm4, %v8590_v16  ;;  %v2188_v16 = vsel %vm502_vm0, %v2185_v14, %v2187_v34 }
 0x1f4   : > { %v2192_v2 = vsel %vm502_vm0, %v2189_v41, %v2191_v58 }
 0x1f6   : > { %6938 = vmatmul.mubr.msk.f32.gmra.mrb[28].mxu1 %vm1547_vm4, %v8588_v12  ;;  %v2190_v12 = vsel %vm502_vm0, %v2187_v34, %v2189_v41 }
 0x1f7   : > { %6940 = vmatprep.mubr.msk.f32.mxu1 %vm1547_vm4, %v8600_v36  ;;  %v6160_v36 = vld [vmem:[%s9917_s3 + $0x48] sm:$0xff] }
 0x1fa   : > { %6941 = vmatmul.mubr.msk.f32.gmra.mrb[30].mxu1 %vm1547_vm4, %v8598_v20  ;;  %v6159_v20 = vld [vmem:[%s9917_s3 + $0x40] sm:$0xff] }
 0x1fb   : > { %6949 = vmatprep.mubr.msk.f32.mxu1 %vm1547_vm4, %v2132_v62  ;;  %v7511_v59 = vpack.c.bf16 %v6160_v36, %v6159_v20  ;;  %v6161_v62 = vld [vmem:[%s9917_s3 + $0x50] sm:$0xff] }
 0x1fe   : > { %6950 = vmatmul.mubr.msk.f32.vlgmr.msra.gmra.mrb[0].mxu1 %vm1547_vm4, %v2134_v63  ;;  %v9937_v63 = vmov 0.0  }
 0x1ff   : > { %6952 = vmatprep.mubr.msk.f32.mxu1 %vm1547_vm4, %v2136_v1  ;;  %7509 = vmatpush3.bf16.msra.mxu1 %v7508_v3  ;;  %v6162_v3 = vld [vmem:[%s9917_s3 + $0x58] sm:$0xff]  ;;  %v6226_v1 = vld [vmem:[%s9917_s3 + $0x68] sm:$0xff] }
 0x200   : > { %7510 = vmatprep.subr.bf16.mxu1 %v9923_v5  ;;  %v7514_v4 = vpack.c.bf16 %v6162_v3, %v6161_v62  ;;  %7114 = vmatprep.mubr.msk.f32.mxu0 %vm7956_vm5, %v9937_v63 }
 0x202   : > { %6953 = vmatmul.mubr.msk.f32.gmra.mrb[2].mxu1 %vm1547_vm4, %v2138_v18 }
 0x203   : > { %6955 = vmatprep.mubr.msk.f32.mxu1 %vm1547_vm4, %v2140_v25  ;;  %7512 = vmatpush3.bf16.msra.mxu1 %v7511_v59  ;;  %v7526_v25 = vpack.c.bf16 %v6226_v1, %v6225_v7 }
 0x204   : > { %7513 = vmatprep.subr.bf16.mxu1 %v9923_v5 }
 0x206   : > { %6956 = vmatmul.mubr.msk.f32.gmra.mrb[4].mxu1 %vm1547_vm4, %v2142_v13  ;;  %v6227_v13 = vld [vmem:[%s9917_s3 + $0x70] sm:$0xff] }
 0x207   : > { %6958 = vmatprep.mubr.msk.f32.mxu1 %vm1547_vm4, %v2144_v43  ;;  %7515 = vmatpush3.bf16.msra.mxu1 %v7514_v4  ;;  %v7529_v29 = vpack.c.bf16 %v6228_v30, %v6227_v13 }
 0x208   : > { %7534 = vmatprep.subr.bf16.mxu1 %v9923_v5 }
 0x20a   : > { %6959 = vmatmul.mubr.msk.f32.gmra.mrb[6].mxu1 %vm1547_vm4, %v2146_v31  ;;  %v3643_v31 = vld [vmem:[%s9918_s4 + $0x18] sm:$0xff] }
 0x20b   : > { %6961 = vmatprep.mubr.msk.f32.mxu1 %vm1547_vm4, %v2148_v55 }
 0x20e   : > { %6962 = vmatmul.mubr.msk.f32.gmra.mrb[8].mxu1 %vm1547_vm4, %v2150_v27 }
 0x20f   : > { %6964 = vmatprep.mubr.msk.f32.mxu1 %vm1547_vm4, %v2152_v6 }
 0x212   : > { %6965 = vmatmul.mubr.msk.f32.gmra.mrb[10].mxu1 %vm1547_vm4, %v2154_v48  ;;  %v6229_v48 = vld [vmem:[%s9917_s3 + $0x80] sm:$0xff] }
 0x213   : > { %6967 = vmatprep.mubr.msk.f32.mxu1 %vm1547_vm4, %v2156_v26  ;;  %v7535_v26 = vpack.c.bf16 %v3643_v31, %v3642_v22  ;;  %v7532_v44 = vpack.c.bf16 %v6230_v49, %v6229_v48 }
 0x216   : > { %6968 = vmatmul.mubr.msk.f32.gmra.mrb[12].mxu1 %vm1547_vm4, %v2158_v32 }
 0x217   : > { %6970 = vmatprep.mubr.msk.f32.mxu1 %vm1547_vm4, %v2160_v56 }
 0x21a   : > { %6971 = vmatmul.mubr.msk.f32.gmra.mrb[14].mxu1 %vm1547_vm4, %v2162_v39 }
 0x21b   : > { %6973 = vmatprep.mubr.msk.f32.mxu1 %vm1547_vm4, %v2164_v0 }
 0x21e   : > { %6974 = vmatmul.mubr.msk.f32.gmra.mrb[16].mxu1 %vm1547_vm4, %v2166_v40 }
 0x21f   : > { %6976 = vmatprep.mubr.msk.f32.mxu1 %vm1547_vm4, %v2168_v17 }
 0x222   : > { %6977 = vmatmul.mubr.msk.f32.gmra.mrb[18].mxu1 %vm1547_vm4, %v2170_v47 }
 0x223   : > { %6979 = vmatprep.mubr.msk.f32.mxu1 %vm1547_vm4, %v2172_v28 }
 0x226   : > { %6980 = vmatmul.mubr.msk.f32.gmra.mrb[20].mxu1 %vm1547_vm4, %v2174_v23 }
 0x227   : > { %6982 = vmatprep.mubr.msk.f32.mxu1 %vm1547_vm4, %v2176_v60 }
 0x22a   : > { %6983 = vmatmul.mubr.msk.f32.gmra.mrb[22].mxu1 %vm1547_vm4, %v2178_v19 }
 0x22b   : > { %6985 = vmatprep.mubr.msk.f32.mxu1 %vm1547_vm4, %v2180_v50 }
 0x22e   : > { %6986 = vmatmul.mubr.msk.f32.gmra.mrb[24].mxu1 %vm1547_vm4, %v2182_v42 }
 0x22f   : > { %6988 = vmatprep.mubr.msk.f32.mxu1 %vm1547_vm4, %v2184_v57 }
 0x232   : > { %6989 = vmatmul.mubr.msk.f32.gmra.mrb[26].mxu1 %vm1547_vm4, %v2186_v53 }
 0x233   : > { %6991 = vmatprep.mubr.msk.f32.mxu1 %vm1547_vm4, %v2188_v16 }
 0x236   : > { %6992 = vmatmul.mubr.msk.f32.gmra.mrb[28].mxu1 %vm1547_vm4, %v2190_v12 }
 0x237   : > { %6994 = vmatprep.mubr.msk.f32.mxu1 %vm1547_vm4, %v2192_v2 }
 0x23a   : > { %6995 = vmatmul.mubr.msk.f32.gmra.mrb[30].mxu1 %vm1547_vm4, %v2191_v58 }
 0x23b   : > { %7009 = vmatprep.mubr.msk.f32.mxu1 %vm7956_vm5, %v9937_v63 }
 0x2d1   : > { %v6951_v9 = vpop.f32.mrb[0].mxu1 }
 0x2d2   : > { %v8830_v18 = vmax.f32 %v6951_v9, 0.0  ;;  %v2323_v10 = vpop.f32.mrb[1].mxu1 }
 0x2d3   : > { %v2514_v11 = vmax.f32 %v2323_v10, 0.0 }
 0x2d4   : > { %v2591_v43 = vrot.slane %v8830_v18, 4  ;;  %3510 = vst.msk [vmem:[#allocation2 + $0x8] sm:$0xff] %vm3508_vm6, %v8830_v18 }
 0x2d5   : > { %v2590_v21 = vrot.slane %v2514_v11, 4  ;;  %3509 = vst.msk [vmem:[#allocation2] sm:$0xff] %vm3508_vm6, %v2514_v11  ;;  %v6954_v55 = vpop.f32.mrb[2].mxu1  ;;  %7115 = vmatmul.mubr.msk.f32.vlgmr.msra.gmra.mrb[32].mxu0 %vm2651_vm7, %v2514_v11 }
 0x2d6   : > { %v8849_v35 = vmax.f32 %v6954_v55, 0.0  ;;  %7527 = vmatpush3.bf16.msra.mxu0 %v7526_v25  ;;  %v2333_v27 = vpop.f32.mrb[3].mxu1  ;;  %7117 = vmatprep.mubr.msk.f32.mxu0 %vm7956_vm5, %v9937_v63 }
 0x2d7   : > { %v8853_v6 = vmax.f32 %v2333_v27, 0.0  ;;  %v2592_v45 = vsel %vm502_vm0, %v2590_v21, %v2591_v43  ;;  %7528 = vmatprep.subr.bf16.mxu0 %v9923_v5 }
 0x2d8   : > { %7010 = vmatmul.mubr.msk.f32.vlgmr.msra.gmra.mrb[32].mxu1 %vm2651_vm7, %v2592_v45  ;;  %v2595_v0 = vrot.slane %v8849_v35, 4 }
 0x2d9   : > { %3511 = vst.msk [vmem:[#allocation2 + $0x10] sm:$0xff] %vm3508_vm6, %v8853_v6  ;;  %v6957_v51 = vpop.f32.mrb[4].mxu1  ;;  %7118 = vmatmul.mubr.msk.f32.gmra.mrb[34].mxu0 %vm2651_vm7, %v8830_v18  ;;  %7012 = vmatprep.mubr.msk.f32.mxu1 %vm7956_vm5, %v9937_v63  ;;  %v2593_v32 = vrot.slane %v8853_v6, 4 }
 0x2da   : > { %v8871_v54 = vmax.f32 %v6957_v51, 0.0  ;;  %v2343_v56 = vpop.f32.mrb[5].mxu1  ;;  %7120 = vmatprep.mubr.msk.f32.mxu0 %vm7956_vm5, %v9937_v63  ;;  %7530 = vmatpush3.bf16.msra.mxu0 %v7529_v29 }
 0x2db   : > { %v8875_v39 = vmax.f32 %v2343_v56, 0.0  ;;  %v2594_v61 = vsel %vm502_vm0, %v2591_v43, %v2593_v32  ;;  %7531 = vmatprep.subr.bf16.mxu0 %v9923_v5  ;;  %7536 = vmatpush3.bf16.msra.mxu1 %v7535_v26  ;;  %v2596_v24 = vsel %vm502_vm0, %v2593_v32, %v2595_v0 }
 0x2dc   : > { %3514 = vst.msk [vmem:[#allocation2 + $0x28] sm:$0xff] %vm3508_vm6, %v8871_v54  ;;  %7013 = vmatmul.mubr.msk.f32.gmra.mrb[34].mxu1 %vm2651_vm7, %v2594_v61  ;;  %7537 = vmatprep.subr.bf16.mxu1 %v9923_v5  ;;  %v2599_v60 = vrot.slane %v8871_v54, 4  ;;  %v3807_v5 = vld [vmem:[#allocation2 + $0x5] ss:$32 sm:$0x1] }
 0x2dd   : > { %3513 = vst.msk [vmem:[#allocation2 + $0x20] sm:$0xff] %vm3508_vm6, %v8875_v39  ;;  %v6960_v8 = vpop.f32.mrb[6].mxu1  ;;  %7121 = vmatmul.mubr.msk.f32.gmra.mrb[36].mxu0 %vm2651_vm7, %v8853_v6  ;;  %7015 = vmatprep.mubr.msk.f32.mxu1 %vm7956_vm5, %v9937_v63  ;;  %v2597_v47 = vrot.slane %v8875_v39, 4 }
 0x2de   : > { %v8890_v40 = vmax.f32 %v6960_v8, 0.0  ;;  %v2353_v46 = vpop.f32.mrb[7].mxu1  ;;  %7123 = vmatprep.mubr.msk.f32.mxu0 %vm7956_vm5, %v9937_v63  ;;  %7533 = vmatpush3.bf16.msra.mxu0 %v7532_v44 }
 0x2df   : > { %v8894_v17 = vmax.f32 %v2353_v46, 0.0  ;;  %v2598_v52 = vsel %vm502_vm0, %v2595_v0, %v2597_v47  ;;  %v2600_v14 = vsel %vm502_vm0, %v2597_v47, %v2599_v60 }
 0x2e0   : > { %7016 = vmatmul.mubr.msk.f32.gmra.mrb[36].mxu1 %vm2651_vm7, %v2596_v24  ;;  %v2603_v16 = vrot.slane %v8890_v40, 4 }
 0x2e1   : > { %3515 = vst.msk [vmem:[#allocation2 + $0x30] sm:$0xff] %vm3508_vm6, %v8894_v17  ;;  %v6963_v15 = vpop.f32.mrb[8].mxu1  ;;  %7124 = vmatmul.mubr.msk.f32.gmra.mrb[38].mxu0 %vm2651_vm7, %v8849_v35  ;;  %7018 = vmatprep.mubr.msk.f32.mxu1 %vm7956_vm5, %v9937_v63  ;;  %v2601_v42 = vrot.slane %v8894_v17, 4 }
 0x2e2   : > { %v8905_v28 = vmax.f32 %v6963_v15, 0.0  ;;  %v2363_v37 = vpop.f32.mrb[9].mxu1  ;;  %7126 = vmatprep.mubr.msk.f32.mxu0 %vm7956_vm5, %v9937_v63 }
 0x2e3   : > { %v8909_v23 = vmax.f32 %v2363_v37, 0.0  ;;  %v2602_v58 = vsel %vm502_vm0, %v2599_v60, %v2601_v42  ;;  %v2604_v59 = vsel %vm502_vm0, %v2601_v42, %v2603_v16 }
 0x2e4   : > { %3518 = vst.msk [vmem:[#allocation2 + $0x48] sm:$0xff] %vm3508_vm6, %v8905_v28  ;;  %7019 = vmatmul.mubr.msk.f32.gmra.mrb[38].mxu1 %vm2651_vm7, %v2598_v52  ;;  %v2607_v10 = vrot.slane %v8905_v28, 4 }
 0x2e5   : > { %3517 = vst.msk [vmem:[#allocation2 + $0x40] sm:$0xff] %vm3508_vm6, %v8909_v23  ;;  %v6966_v38 = vpop.f32.mrb[10].mxu1  ;;  %7127 = vmatmul.mubr.msk.f32.gmra.mrb[40].mxu0 %vm2651_vm7, %v8875_v39  ;;  %7021 = vmatprep.mubr.msk.f32.mxu1 %vm7956_vm5, %v9937_v63  ;;  %v2605_v62 = vrot.slane %v8909_v23, 4 }
 0x2e6   : > { %v8922_v19 = vmax.f32 %v6966_v38, 0.0  ;;  %v2373_v33 = vpop.f32.mrb[11].mxu1  ;;  %7129 = vmatprep.mubr.msk.f32.mxu0 %vm7956_vm5, %v9937_v63 }
 0x2e7   : > { %v8926_v50 = vmax.f32 %v2373_v33, 0.0  ;;  %v2606_v9 = vsel %vm502_vm0, %v2603_v16, %v2605_v62  ;;  %v2608_v43 = vsel %vm502_vm0, %v2605_v62, %v2607_v10 }
 0x2e8   : > { %7022 = vmatmul.mubr.msk.f32.gmra.mrb[40].mxu1 %vm2651_vm7, %v2600_v14  ;;  %v2611_v45 = vrot.slane %v8922_v19, 4 }
 0x2e9   : > { %3519 = vst.msk [vmem:[#allocation2 + $0x50] sm:$0xff] %vm3508_vm6, %v8926_v50  ;;  %v6969_v34 = vpop.f32.mrb[12].mxu1  ;;  %7130 = vmatmul.mubr.msk.f32.gmra.mrb[42].mxu0 %vm2651_vm7, %v8871_v54  ;;  %7024 = vmatprep.mubr.msk.f32.mxu1 %vm7956_vm5, %v9937_v63  ;;  %v2609_v22 = vrot.slane %v8926_v50, 4 }
 0x2ea   : > { %v8937_v57 = vmax.f32 %v6969_v34, 0.0  ;;  %v2383_v41 = vpop.f32.mrb[13].mxu1  ;;  %7132 = vmatprep.mubr.msk.f32.mxu0 %vm7956_vm5, %v9937_v63 }
 0x2eb   : > { %v8941_v53 = vmax.f32 %v2383_v41, 0.0  ;;  %v2610_v29 = vsel %vm502_vm0, %v2607_v10, %v2609_v22  ;;  %v2612_v32 = vsel %vm502_vm0, %v2609_v22, %v2611_v45 }
 0x2ec   : > { %9949 = vst [vmem:[#allocation7_spill] sm:$0xff] %v8937_v57  ;;  %3522 = vst.msk [vmem:[#allocation2 + $0x68] sm:$0xff] %vm3508_vm6, %v8937_v57  ;;  %7025 = vmatmul.mubr.msk.f32.gmra.mrb[42].mxu1 %vm2651_vm7, %v2602_v58  ;;  %v2615_v24 = vrot.slane %v8937_v57, 4 }
 0x2ed   : > { %3521 = vst.msk [vmem:[#allocation2 + $0x60] sm:$0xff] %vm3508_vm6, %v8941_v53  ;;  %v6972_v12 = vpop.f32.mrb[14].mxu1  ;;  %7133 = vmatmul.mubr.msk.f32.gmra.mrb[44].mxu0 %vm2651_vm7, %v8894_v17  ;;  %7027 = vmatprep.mubr.msk.f32.mxu1 %vm7956_vm5, %v9937_v63  ;;  %v2613_v56 = vrot.slane %v8941_v53, 4 }
 0x2ee   : > { %v8954_v2 = vmax.f32 %v6972_v12, 0.0  ;;  %v2393_v20 = vpop.f32.mrb[15].mxu1  ;;  %7135 = vmatprep.mubr.msk.f32.mxu0 %vm7956_vm5, %v9937_v63  ;;  %v3794_v12 = vld [vmem:[#allocation2 + $0x4] ss:$32 sm:$0x4] }
 0x2ef   : > { %v8958_v36 = vmax.f32 %v2393_v20, 0.0  ;;  %v2614_v46 = vsel %vm502_vm0, %v2611_v45, %v2613_v56  ;;  %v2616_v60 = vsel %vm502_vm0, %v2613_v56, %v2615_v24 }
 0x2f0   : > { %9950 = vst [vmem:[#allocation8_spill] sm:$0xff] %v8954_v2  ;;  %7028 = vmatmul.mubr.msk.f32.gmra.mrb[44].mxu1 %vm2651_vm7, %v2604_v59  ;;  %v2619_v58 = vrot.slane %v8954_v2, 4 }
 0x2f1   : > { %9951 = vst [vmem:[#allocation9_spill] sm:$0xff] %v8958_v36  ;;  %3523 = vst.msk [vmem:[#allocation2 + $0x70] sm:$0xff] %vm3508_vm6, %v8958_v36  ;;  %v6975_v3 = vpop.f32.mrb[16].mxu1  ;;  %7136 = vmatmul.mubr.msk.f32.gmra.mrb[46].mxu0 %vm2651_vm7, %v8890_v40  ;;  %7030 = vmatprep.mubr.msk.f32.mxu1 %vm7956_vm5, %v9937_v63  ;;  %v2617_v38 = vrot.slane %v8958_v36, 4 }
 0x2f2   : > { %v8969_v4 = vmax.f32 %v6975_v3, 0.0  ;;  %v2403_v7 = vpop.f32.mrb[17].mxu1  ;;  %7138 = vmatprep.mubr.msk.f32.mxu0 %vm7956_vm5, %v9937_v63 }
 0x2f3   : > { %v8973_v1 = vmax.f32 %v2403_v7, 0.0  ;;  %v2618_v41 = vsel %vm502_vm0, %v2615_v24, %v2617_v38  ;;  %v2620_v62 = vsel %vm502_vm0, %v2617_v38, %v2619_v58  ;;  %v9196_v38 = vld [vmem:[%s9918_s4] sm:$0xff] }
 0x2f4   : > { %9952 = vst [vmem:[#allocation10_spill] sm:$0xff] %v8969_v4  ;;  %3526 = vst.msk [vmem:[#allocation2 + $0x88] sm:$0xff] %vm3508_vm6, %v8969_v4  ;;  %7031 = vmatmul.mubr.msk.f32.gmra.mrb[46].mxu1 %vm2651_vm7, %v2606_v9  ;;  %v2623_v9 = vrot.slane %v8969_v4, 4 }
 0x2f5   : > { %9953 = vst [vmem:[#allocation11_spill] sm:$0xff] %v8973_v1  ;;  %3525 = vst.msk [vmem:[#allocation2 + $0x80] sm:$0xff] %vm3508_vm6, %v8973_v1  ;;  %v6978_v25 = vpop.f32.mrb[18].mxu1  ;;  %7139 = vmatmul.mubr.msk.f32.gmra.mrb[48].mxu0 %vm2651_vm7, %v8909_v23  ;;  %7033 = vmatprep.mubr.msk.f32.mxu1 %vm7956_vm5, %v9937_v63  ;;  %v2621_v3 = vrot.slane %v8973_v1, 4 }
 0x2f6   : > { %v8986_v11 = vmax.f32 %v6978_v25, 0.0  ;;  %v2413_v13 = vpop.f32.mrb[19].mxu1  ;;  %7141 = vmatprep.mubr.msk.f32.mxu0 %vm7956_vm5, %v9937_v63 }
 0x2f7   : > { %v8990_v30 = vmax.f32 %v2413_v13, 0.0  ;;  %v2622_v7 = vsel %vm502_vm0, %v2619_v58, %v2621_v3  ;;  %v2624_v10 = vsel %vm502_vm0, %v2621_v3, %v2623_v9  ;;  %v9216_v58 = vld [vmem:[%s9918_s4 + $0x30] sm:$0xff]  ;;  %v3627_v3 = vld [vmem:[#allocation2 + $0x3] ss:$32 sm:$0x2] }
 0x2f8   : > { %9954 = vst [vmem:[#allocation12_spill] sm:$0xff] %v8986_v11  ;;  %7034 = vmatmul.mubr.msk.f32.gmra.mrb[48].mxu1 %vm2651_vm7, %v2608_v43  ;;  %v2627_v43 = vrot.slane %v8986_v11, 4 }
 0x2f9   : > { %9955 = vst [vmem:[#allocation13_spill] sm:$0xff] %v8990_v30  ;;  %3527 = vst.msk [vmem:[#allocation2 + $0x90] sm:$0xff] %vm3508_vm6, %v8990_v30  ;;  %v6981_v31 = vpop.f32.mrb[20].mxu1  ;;  %7142 = vmatmul.mubr.msk.f32.gmra.mrb[50].mxu0 %vm2651_vm7, %v8905_v28  ;;  %7036 = vmatprep.mubr.msk.f32.mxu1 %vm7956_vm5, %v9937_v63  ;;  %v2625_v25 = vrot.slane %v8990_v30, 4 }
 0x2fa   : > { %v9001_v21 = vmax.f32 %v6981_v31, 0.0  ;;  %v2423_v55 = vpop.f32.mrb[21].mxu1  ;;  %7144 = vmatprep.mubr.msk.f32.mxu0 %vm7956_vm5, %v9937_v63 }
 0x2fb   : > { %v9005_v27 = vmax.f32 %v2423_v55, 0.0  ;;  %v2626_v13 = vsel %vm502_vm0, %v2623_v9, %v2625_v25  ;;  %v2628_v22 = vsel %vm502_vm0, %v2625_v25, %v2627_v43  ;;  %v3592_v9 = vld [vmem:[#allocation2 + $0x1] ss:$32 sm:$0x2] }
 0x2fc   : > { %9956 = vst [vmem:[#allocation14_spill] sm:$0xff] %v9001_v21  ;;  %3530 = vst.msk [vmem:[#allocation2 + $0xa8] sm:$0xff] %vm3508_vm6, %v9001_v21  ;;  %7037 = vmatmul.mubr.msk.f32.gmra.mrb[50].mxu1 %vm2651_vm7, %v2610_v29  ;;  %v2631_v29 = vrot.slane %v9001_v21, 4 }
 0x2fd   : > { %9957 = vst [vmem:[#allocation15_spill] sm:$0xff] %v9005_v27  ;;  %3529 = vst.msk [vmem:[#allocation2 + $0xa0] sm:$0xff] %vm3508_vm6, %v9005_v27  ;;  %v6984_v48 = vpop.f32.mrb[22].mxu1  ;;  %7145 = vmatmul.mubr.msk.f32.gmra.mrb[52].mxu0 %vm2651_vm7, %v8926_v50  ;;  %7039 = vmatprep.mubr.msk.f32.mxu1 %vm7956_vm5, %v9937_v63  ;;  %v2629_v31 = vrot.slane %v9005_v27, 4 }
 0x2fe   : > { %v9018_v49 = vmax.f32 %v6984_v48, 0.0  ;;  %v2433_v26 = vpop.f32.mrb[23].mxu1  ;;  %7147 = vmatprep.mubr.msk.f32.mxu0 %vm7956_vm5, %v9937_v63 }
 0x2ff   : > { %v9022_v51 = vmax.f32 %v2433_v26, 0.0  ;;  %v2630_v55 = vsel %vm502_vm0, %v2627_v43, %v2629_v31  ;;  %v2632_v45 = vsel %vm502_vm0, %v2629_v31, %v2631_v29  ;;  %v3610_v43 = vld [vmem:[#allocation2 + $0x2] ss:$32 sm:$0x1] }
 0x300   : > { %9958 = vst [vmem:[#allocation16_spill] sm:$0xff] %v9018_v49  ;;  %7040 = vmatmul.mubr.msk.f32.gmra.mrb[52].mxu1 %vm2651_vm7, %v2612_v32  ;;  %v2635_v32 = vrot.slane %v9018_v49, 4  ;;  %v3626_v31 = vld [vmem:[#allocation2 + $0x3] ss:$32 sm:$0x1] }
 0x301   : > { %9959 = vst [vmem:[#allocation17_spill] sm:$0xff] %v9022_v51  ;;  %3531 = vst.msk [vmem:[#allocation2 + $0xb0] sm:$0xff] %vm3508_vm6, %v9022_v51  ;;  %v6987_v44 = vpop.f32.mrb[24].mxu1  ;;  %7148 = vmatmul.mubr.msk.f32.gmra.mrb[54].mxu0 %vm2651_vm7, %v8922_v19  ;;  %7042 = vmatprep.mubr.msk.f32.mxu1 %vm7956_vm5, %v9937_v63  ;;  %v2633_v48 = vrot.slane %v9022_v51, 4 }
 0x302   : > { %v9033_v61 = vmax.f32 %v6987_v44, 0.0  ;;  %v2443_v0 = vpop.f32.mrb[25].mxu1  ;;  %7150 = vmatprep.mubr.msk.f32.mxu0 %vm7956_vm5, %v9937_v63 }
 0x303   : > { %v9037_v8 = vmax.f32 %v2443_v0, 0.0  ;;  %v2634_v26 = vsel %vm502_vm0, %v2631_v29, %v2633_v48  ;;  %v2636_v56 = vsel %vm502_vm0, %v2633_v48, %v2635_v32  ;;  %v3575_v29 = vld [vmem:[#allocation2] ss:$32 sm:$0x1] }
 0x304   : > { %9960 = vst [vmem:[#allocation18_spill] sm:$0xff] %v9033_v61  ;;  %3534 = vst.msk [vmem:[#allocation2 + $0xc8] sm:$0xff] %vm3508_vm6, %v9033_v61  ;;  %7043 = vmatmul.mubr.msk.f32.gmra.mrb[54].mxu1 %vm2651_vm7, %v2614_v46  ;;  %v2639_v46 = vrot.slane %v9033_v61, 4  ;;  %v9233_v48 = vld [vmem:[#allocation2 + $0x6] ss:$32 sm:$0x2] }
 0x305   : > { %9961 = vst [vmem:[#allocation19_spill] sm:$0xff] %v9037_v8  ;;  %3533 = vst.msk [vmem:[#allocation2 + $0xc0] sm:$0xff] %vm3508_vm6, %v9037_v8  ;;  %v6990_v47 = vpop.f32.mrb[26].mxu1  ;;  %7151 = vmatmul.mubr.msk.f32.gmra.mrb[56].mxu0 %vm2651_vm7, %v8941_v53  ;;  %7045 = vmatprep.mubr.msk.f32.mxu1 %vm7956_vm5, %v9937_v63  ;;  %v2637_v44 = vrot.slane %v9037_v8, 4 }
 0x306   : > { %v9050_v15 = vmax.f32 %v6990_v47, 0.0  ;;  %v2453_v37 = vpop.f32.mrb[27].mxu1  ;;  %7153 = vmatprep.mubr.msk.f32.mxu0 %vm7956_vm5, %v9937_v63 }
 0x307   : > { %v9054_v52 = vmax.f32 %v2453_v37, 0.0  ;;  %v2638_v0 = vsel %vm502_vm0, %v2635_v32, %v2637_v44  ;;  %v2640_v24 = vsel %vm502_vm0, %v2637_v44, %v2639_v46  ;;  %v9243_v32 = vld [vmem:[%s9918_s4 + $0x48] sm:$0xff]  ;;  %v3591_v44 = vld [vmem:[#allocation2 + $0x1] ss:$32 sm:$0x1] }
 0x308   : > { %9962 = vst [vmem:[#allocation20_spill] sm:$0xff] %v9050_v15  ;;  %7046 = vmatmul.mubr.msk.f32.gmra.mrb[56].mxu1 %vm2651_vm7, %v2616_v60  ;;  %v2643_v60 = vrot.slane %v9050_v15, 4 }
 0x309   : > { %9963 = vst [vmem:[#allocation21_spill] sm:$0xff] %v9054_v52  ;;  %3535 = vst.msk [vmem:[#allocation2 + $0xd0] sm:$0xff] %vm3508_vm6, %v9054_v52  ;;  %v6993_v33 = vpop.f32.mrb[28].mxu1  ;;  %7154 = vmatmul.mubr.msk.f32.gmra.mrb[58].mxu0 %vm2651_vm7, %v8937_v57  ;;  %7048 = vmatprep.mubr.msk.f32.mxu1 %vm7956_vm5, %v9937_v63  ;;  %v2641_v47 = vrot.slane %v9054_v52, 4 }
 0x30a   : > { %v9065_v14 = vmax.f32 %v6993_v33, 0.0  ;;  %v2463_v42 = vpop.f32.mrb[29].mxu1  ;;  %7156 = vmatprep.mubr.msk.f32.mxu0 %vm7956_vm5, %v9937_v63  ;;  %v9201_v33 = vld [vmem:[%s9918_s4 + $0x8] sm:$0xff] }
 0x30b   : > { %v9069_v34 = vmax.f32 %v2463_v42, 0.0  ;;  %v2642_v37 = vsel %vm502_vm0, %v2639_v46, %v2641_v47  ;;  %v9206_v42 = vld [vmem:[%s9918_s4 + $0x20] sm:$0xff]  ;;  %v2644_v25 = vsel %vm502_vm0, %v2641_v47, %v2643_v60 }
 0x30c   : > { %9964 = vst [vmem:[#allocation22_spill] sm:$0xff] %v9065_v14  ;;  %3538 = vst.msk [vmem:[#allocation2 + $0xe8] sm:$0xff] %vm3508_vm6, %v9065_v14  ;;  %7049 = vmatmul.mubr.msk.f32.gmra.mrb[58].mxu1 %vm2651_vm7, %v2618_v41  ;;  %v9211_v41 = vld [vmem:[%s9918_s4 + $0x28] sm:$0xff]  ;;  %v3791_v46 = vld [vmem:[#allocation2 + $0x4] ss:$32 sm:$0x1] }
 0x30d   : > { %9965 = vst [vmem:[#allocation23_spill] sm:$0xff] %v9069_v34  ;;  %3537 = vst.msk [vmem:[#allocation2 + $0xe0] sm:$0xff] %vm3508_vm6, %v9069_v34  ;;  %v9078_v16 = vpop.f32.mrb[30].mxu1  ;;  %7157 = vmatmul.mubr.msk.f32.gmra.mrb[60].mxu0 %vm2651_vm7, %v8958_v36  ;;  %7051 = vmatprep.mubr.msk.f32.mxu1 %vm7956_vm5, %v9937_v63  ;;  %v3916_v47 = vld [vmem:[#allocation2 + $0x7] ss:$32 sm:$0x1] }
 0x30e   : > { %9966 = vst [vmem:[#allocation24_spill] sm:$0xff] %v9078_v16  ;;  %v2473_v20 = vpop.f32.mrb[31].mxu1  ;;  %7159 = vmatprep.mubr.msk.f32.mxu0 %vm7956_vm5, %v9937_v63  ;;  %v3900_v16 = vld [vmem:[#allocation2 + $0x6] ss:$32 sm:$0x1]  ;;  %v9969_v36 = vrot.slane %v9069_v34, 4 }
 0x30f   : > { %v9087_v59 = vmax.f32 %v2473_v20, 0.0  ;;  %v9221_v20 = vld [vmem:[%s9918_s4 + $0x38] sm:$0xff] }
 0x310   : > { %7052 = vmatmul.mubr.msk.f32.gmra.mrb[60].mxu1 %vm2651_vm7, %v2620_v62  ;;  %v3611_v62 = vld [vmem:[#allocation2 + $0x2] ss:$32 sm:$0x2] }
 0x311   : > { %3539 = vst.msk [vmem:[#allocation2 + $0xf0] sm:$0xff] %vm3508_vm6, %v9087_v59  ;;  %7160 = vmatmul.mubr.msk.f32.gmra.mrb[62].mxu0 %vm2651_vm7, %v8954_v2  ;;  %7054 = vmatprep.mubr.msk.f32.mxu1 %vm7956_vm5, %v9937_v63  ;;  %v9269_v2 = vld [vmem:[#allocation2 + $0x6] ss:$32 sm:$0x8]  ;;  %v9971_v57 = vrot.slane %v9087_v59, 4 }
 0x312   : > { %7162 = vmatprep.mubr.msk.f32.mxu0 %vm7956_vm5, %v9937_v63 }
 0x314   : > { %7055 = vmatmul.mubr.msk.f32.gmra.mrb[62].mxu1 %vm2651_vm7, %v2622_v7  ;;  %v3576_v7 = vld [vmem:[#allocation2] ss:$32 sm:$0x2] }
 0x315   : > { %7163 = vmatmul.mubr.msk.f32.gmra.mrb[64].mxu0 %vm2651_vm7, %v8973_v1  ;;  %7057 = vmatprep.mubr.msk.f32.mxu1 %vm7956_vm5, %v9937_v63  ;;  %v3902_v1 = vor.u32 %v9233_v48, %v3900_v16  ;;  %v3798_v48 = vld [vmem:[#allocation2 + $0x4] ss:$32 sm:$0x10] }
 0x316   : > { %7165 = vmatprep.mubr.msk.f32.mxu0 %vm7956_vm5, %v9937_v63 }
 0x318   : > { %7058 = vmatmul.mubr.msk.f32.gmra.mrb[64].mxu1 %vm2651_vm7, %v2624_v10  ;;  %v9229_v10 = vld [vmem:[#allocation2 + $0x4] ss:$32 sm:$0x2] }
 0x319   : > { %7166 = vmatmul.mubr.msk.f32.gmra.mrb[66].mxu0 %vm2651_vm7, %v8969_v4  ;;  %7060 = vmatprep.mubr.msk.f32.mxu1 %vm7956_vm5, %v9937_v63  ;;  %v3593_v4 = vor.u32 %v3592_v9, %v3591_v44 }
 0x31a   : > { %7168 = vmatprep.mubr.msk.f32.mxu0 %vm7956_vm5, %v9937_v63 }
 0x31c   : > { %7061 = vmatmul.mubr.msk.f32.gmra.mrb[66].mxu1 %vm2651_vm7, %v2626_v13  ;;  %v9942_v13 = vrot.slane %v9065_v14, 4 }
 0x31d   : > { %7169 = vmatmul.mubr.msk.f32.gmra.mrb[68].mxu0 %vm2651_vm7, %v8990_v30  ;;  %7063 = vmatprep.mubr.msk.f32.mxu1 %vm7956_vm5, %v9937_v63  ;;  %v3580_v30 = vld [vmem:[#allocation2] ss:$32 sm:$0x8] }
 0x31e   : > { %7171 = vmatprep.mubr.msk.f32.mxu0 %vm7956_vm5, %v9937_v63 }
 0x320   : > { %7064 = vmatmul.mubr.msk.f32.gmra.mrb[68].mxu1 %vm2651_vm7, %v2628_v22  ;;  %v3613_v22 = vld [vmem:[#allocation2 + $0x2] ss:$32 sm:$0x4] }
 0x321   : > { %7172 = vmatmul.mubr.msk.f32.gmra.mrb[70].mxu0 %vm2651_vm7, %v8986_v11  ;;  %7066 = vmatprep.mubr.msk.f32.mxu1 %vm7956_vm5, %v9937_v63 }
 0x322   : > { %7174 = vmatprep.mubr.msk.f32.mxu0 %vm7956_vm5, %v9937_v63 }
 0x324   : > { %7067 = vmatmul.mubr.msk.f32.gmra.mrb[70].mxu1 %vm2651_vm7, %v2630_v55  ;;  %v3629_v55 = vld [vmem:[#allocation2 + $0x3] ss:$32 sm:$0x4] }
 0x325   : > { %7175 = vmatmul.mubr.msk.f32.gmra.mrb[72].mxu0 %vm2651_vm7, %v9005_v27  ;;  %7069 = vmatprep.mubr.msk.f32.mxu1 %vm7956_vm5, %v9937_v63  ;;  %v9967_v27 = vrot.slane %v9069_v34, 4 }
 0x326   : > { %7177 = vmatprep.mubr.msk.f32.mxu0 %vm7956_vm5, %v9937_v63 }
 0x327   : > { %v2646_v11 = vsel %vm502_vm0, %v2643_v60, %v9967_v27  ;;  %v9968_v27 = vmov 0.0   ;;  %v3633_v60 = vld [vmem:[#allocation2 + $0x3] ss:$32 sm:$0x10] }
 0x328   : > { %7070 = vmatmul.mubr.msk.f32.gmra.mrb[72].mxu1 %vm2651_vm7, %v2632_v45  ;;  %v3808_v45 = vld [vmem:[#allocation2 + $0x5] ss:$32 sm:$0x2] }
 0x329   : > { %7178 = vmatmul.mubr.msk.f32.gmra.mrb[74].mxu0 %vm2651_vm7, %v9001_v21  ;;  %7072 = vmatprep.mubr.msk.f32.mxu1 %vm7956_vm5, %v9937_v63  ;;  %v3919_v21 = vld [vmem:[#allocation2 + $0x7] ss:$32 sm:$0x4] }
 0x32a   : > { %7180 = vmatprep.mubr.msk.f32.mxu0 %vm7956_vm5, %v9937_v63 }
 0x32c   : > { %7073 = vmatmul.mubr.msk.f32.gmra.mrb[74].mxu1 %vm2651_vm7, %v2634_v26  ;;  %v9238_v26 = vld [vmem:[%s9918_s4 + $0x40] sm:$0xff] }
 0x32d   : > { %7181 = vmatmul.mubr.msk.f32.gmra.mrb[76].mxu0 %vm2651_vm7, %v9022_v51  ;;  %7075 = vmatprep.mubr.msk.f32.mxu1 %vm7956_vm5, %v9937_v63  ;;  %v3903_v51 = vld [vmem:[#allocation2 + $0x6] ss:$32 sm:$0x4] }
 0x32e   : > { %7183 = vmatprep.mubr.msk.f32.mxu0 %vm7956_vm5, %v9937_v63 }
 0x330   : > { %7076 = vmatmul.mubr.msk.f32.gmra.mrb[76].mxu1 %vm2651_vm7, %v2636_v56  ;;  %v3578_v56 = vld [vmem:[#allocation2] ss:$32 sm:$0x4] }
 0x331   : > { %7184 = vmatmul.mubr.msk.f32.gmra.mrb[78].mxu0 %vm2651_vm7, %v9018_v49  ;;  %7078 = vmatprep.mubr.msk.f32.mxu1 %vm7956_vm5, %v9937_v63  ;;  %v3577_v49 = vor.u32 %v3576_v7, %v3575_v29  ;;  %v3617_v7 = vld [vmem:[#allocation2 + $0x2] ss:$32 sm:$0x10]  ;;  %v3809_v29 = vor.u32 %v3808_v45, %v3807_v5 }
 0x332   : > { %7186 = vmatprep.mubr.msk.f32.mxu0 %vm7956_vm5, %v9937_v63 }
 0x333   : > { %v3579_v9 = vor.u32 %v3578_v56, %v3577_v49  ;;  %v2648_v49 = vsel %vm502_vm0, %v9969_v36, %v9942_v13  ;;  %v3635_v56 = vld [vmem:[#allocation2 + $0x3] ss:$32 sm:$0x20]  ;;  %v4009_v13 = vld [vmem:[#allocation2 + $0x8] ss:$32 sm:$0x1] }
 0x334   : > { %7079 = vmatmul.mubr.msk.f32.gmra.mrb[78].mxu1 %vm2651_vm7, %v2638_v0  ;;  %v3594_v0 = vld [vmem:[#allocation2 + $0x1] ss:$32 sm:$0x4]  ;;  %v3637_v36 = vld [vmem:[#allocation2 + $0x3] ss:$32 sm:$0x40] }
 0x335   : > { %7187 = vmatmul.mubr.msk.f32.gmra.mrb[80].mxu0 %vm2651_vm7, %v9037_v8  ;;  %7081 = vmatprep.mubr.msk.f32.mxu1 %vm7956_vm5, %v9937_v63  ;;  %v3631_v8 = vld [vmem:[#allocation2 + $0x3] ss:$32 sm:$0x8] }
 0x336   : > { %7189 = vmatprep.mubr.msk.f32.mxu0 %vm7956_vm5, %v9937_v63 }
 0x338   : > { %7082 = vmatmul.mubr.msk.f32.gmra.mrb[80].mxu1 %vm2651_vm7, %v2640_v24  ;;  %v3917_v24 = vld [vmem:[#allocation2 + $0x7] ss:$32 sm:$0x2] }
 0x339   : > { %7190 = vmatmul.mubr.msk.f32.gmra.mrb[82].mxu0 %vm2651_vm7, %v9033_v61  ;;  %7084 = vmatprep.mubr.msk.f32.mxu1 %vm7956_vm5, %v9937_v63  ;;  %v3628_v61 = vor.u32 %v3627_v3, %v3626_v31  ;;  %v3796_v31 = vld [vmem:[#allocation2 + $0x4] ss:$32 sm:$0x8] }
 0x33a   : > { %7192 = vmatprep.mubr.msk.f32.mxu0 %vm7956_vm5, %v9937_v63 }
 0x33c   : > { %7085 = vmatmul.mubr.msk.f32.gmra.mrb[82].mxu1 %vm2651_vm7, %v2642_v37  ;;  %v3812_v37 = vld [vmem:[#allocation2 + $0x5] ss:$32 sm:$0x8] }
 0x33d   : > { %7193 = vmatmul.mubr.msk.f32.gmra.mrb[84].mxu0 %vm2651_vm7, %v9054_v52  ;;  %7087 = vmatprep.mubr.msk.f32.mxu1 %vm7956_vm5, %v9937_v63  ;;  %v3615_v52 = vld [vmem:[#allocation2 + $0x2] ss:$32 sm:$0x8] }
 0x33e   : > { %7195 = vmatprep.mubr.msk.f32.mxu0 %vm7956_vm5, %v9937_v63 }
 0x340   : > { %7088 = vmatmul.mubr.msk.f32.gmra.mrb[84].mxu1 %vm2651_vm7, %v2644_v25  ;;  %v3810_v25 = vld [vmem:[#allocation2 + $0x5] ss:$32 sm:$0x4] }
 0x341   : > { %7196 = vmatmul.mubr.msk.f32.gmra.mrb[86].mxu0 %vm2651_vm7, %v9050_v15  ;;  %7090 = vmatprep.mubr.msk.f32.mxu1 %vm7956_vm5, %v9937_v63  ;;  %v3612_v15 = vor.u32 %v3611_v62, %v3610_v43  ;;  %v3793_v62 = vor.u32 %v9229_v10, %v3791_v46  ;;  %v3630_v43 = vor.u32 %v3629_v55, %v3628_v61  ;;  %v3582_v10 = vld [vmem:[#allocation2] ss:$32 sm:$0x10]  ;;  %v3619_v61 = vld [vmem:[#allocation2 + $0x2] ss:$32 sm:$0x20] }
 0x342   : > { %7198 = vmatprep.mubr.msk.f32.mxu0 %vm7956_vm5, %v9937_v63  ;;  %v9264_v63 = vld [vmem:[#allocation2 + $0x1] ss:$32 sm:$0x8]  ;;  %v3811_v44 = vor.u32 %v3810_v25, %v3809_v29  ;;  %v3814_v46 = vld [vmem:[#allocation2 + $0x5] ss:$32 sm:$0x10]  ;;  %v3581_v25 = vor.u32 %v3580_v30, %v3579_v9 }
 0x343   : > { %v3614_v3 = vor.u32 %v3613_v22, %v3612_v15  ;;  %v3918_v15 = vor.u32 %v3917_v24, %v3916_v47  ;;  %v3921_v22 = vld [vmem:[#allocation2 + $0x7] ss:$32 sm:$0x8]  ;;  %v3632_v16 = vor.u32 %v3631_v8, %v3630_v43  ;;  %v3598_v55 = vld [vmem:[#allocation2 + $0x1] ss:$32 sm:$0x10]  ;;  %v3795_v45 = vor.u32 %v3794_v12, %v3793_v62 }
 0x344   : > { %7091 = vmatmul.mubr.msk.f32.gmra.mrb[86].mxu1 %vm2651_vm7, %v2646_v11  ;;  %v3595_v11 = vor.u32 %v3594_v0, %v3593_v4  ;;  %v9945_v4 = vrot.slane %v9087_v59, 4  ;;  %v3904_v0 = vor.u32 %v3903_v51, %v3902_v1  ;;  %v3907_v24 = vld [vmem:[#allocation2 + $0x6] ss:$32 sm:$0x10]  ;;  %v3813_v51 = vor.u32 %v3812_v37, %v3811_v44 }
 0x345   : > { %7199 = vmatmul.mubr.msk.f32.gmra.mrb[88].mxu0 %vm2651_vm7, %v9069_v34  ;;  %7093 = vmatprep.mubr.msk.f32.mxu1 %vm7956_vm5, %v9968_v27  ;;  %v3616_v5 = vor.u32 %v3615_v52, %v3614_v3  ;;  %v3920_v47 = vor.u32 %v3919_v21, %v3918_v15  ;;  %v3923_v52 = vld [vmem:[#allocation2 + $0x7] ss:$32 sm:$0x10]  ;;  %v3621_v12 = vld [vmem:[#allocation2 + $0x2] ss:$32 sm:$0x40]  ;;  %v3634_v62 = vor.u32 %v3633_v60, %v3632_v16 }
 0x346   : > { %7201 = vmatprep.mubr.msk.f32.mxu0 %vm7956_vm5, %v9968_v27  ;;  %v3584_v3 = vld [vmem:[#allocation2] ss:$32 sm:$0x20]  ;;  %v3597_v43 = vor.u32 %v9264_v63, %v3595_v11  ;;  %v3600_v29 = vld [vmem:[#allocation2 + $0x1] ss:$32 sm:$0x20]  ;;  %v3797_v1 = vor.u32 %v3796_v31, %v3795_v45  ;;  %v3906_v15 = vor.u32 %v9269_v2, %v3904_v0  ;;  %v3583_v9 = vor.u32 %v3582_v10, %v3581_v25 }
 0x347   : > { %v3618_v8 = vor.u32 %v3617_v7, %v3616_v5  ;;  %v3800_v21 = vld [vmem:[#allocation2 + $0x4] ss:$32 sm:$0x20]  ;;  %v4010_v7 = vld [vmem:[#allocation2 + $0x8] ss:$32 sm:$0x2]  ;;  %v3636_v63 = vor.u32 %v3635_v56, %v3634_v62 }
 0x348   : > { %7094 = vmatmul.mubr.msk.f32.gmra.mrb[88].mxu1 %vm2651_vm7, %v2648_v49  ;;  %v9292_v60 = vld [vmem:[#allocation2 + $0x2] ss:$32 sm:$0x80]  ;;  %v3586_v11 = vld [vmem:[#allocation2] ss:$32 sm:$0x40]  ;;  %v3922_v49 = vor.u32 %v3921_v22, %v3920_v47  ;;  %v3599_v44 = vor.u32 %v3598_v55, %v3597_v43  ;;  %v3585_v55 = vor.u32 %v3584_v3, %v3583_v9  ;;  %v4011_v43 = vor.u32 %v4010_v7, %v4009_v13 }
 0x349   : > { %7202 = vmatmul.mubr.msk.f32.gmra.mrb[90].mxu0 %vm2651_vm7, %v9065_v14  ;;  %7096 = vmatprep.mubr.msk.f32.mxu1 %vm7956_vm5, %v9968_v27  ;;  %v3620_v30 = vor.u32 %v3619_v61, %v3618_v8  ;;  %v3602_v5 = vld [vmem:[#allocation2 + $0x1] ss:$32 sm:$0x40]  ;;  %v9294_v16 = vld [vmem:[#allocation2 + $0x5] ss:$32 sm:$0x20]  ;;  %v3799_v61 = vor.u32 %v3798_v48, %v3797_v1  ;;  %v3815_v8 = vor.u32 %v3814_v46, %v3813_v51 }
 0x34a   : > { %7204 = vmatprep.mubr.msk.f32.mxu0 %vm7956_vm5, %v9968_v27  ;;  %v4012_v31 = vld [vmem:[#allocation2 + $0x8] ss:$32 sm:$0x4]  ;;  %v9970_v2 = vrot.slane %v9065_v14, 4  ;;  %v3638_v47 = vor.u32 %v3637_v36, %v3636_v63  ;;  %v3908_v14 = vor.u32 %v3907_v24, %v3906_v15  ;;  %v3601_v48 = vor.u32 %v3600_v29, %v3599_v44 }
 0x34b   : > { %v3639_v45 = vld [vmem:[#allocation2 + $0x3] ss:$32 sm:$0x80]  ;;  %v3802_v0 = vld [vmem:[#allocation2 + $0x4] ss:$32 sm:$0x40]  ;;  %v3622_v22 = vor.u32 %v3621_v12, %v3620_v30  ;;  %v3817_v29 = vor.u32 %v9294_v16, %v3815_v8  ;;  %v4013_v7 = vor.u32 %v4012_v31, %v4011_v43 }
 0x34c   : > { %v2650_v37 = vsel %vm502_vm0, %v9970_v2, %v9945_v4  ;;  %v9301_v56 = vld [vmem:[#allocation2 + $0x6] ss:$32 sm:$0x20]  ;;  %v9303_v10 = vld [vmem:[#allocation2 + $0x7] ss:$32 sm:$0x20]  ;;  %v3924_v2 = vor.u32 %v3923_v52, %v3922_v49  ;;  %v3640_v24 = vor.u32 %v3639_v45, %v3638_v47  ;;  %v3801_v52 = vor.u32 %v3800_v21, %v3799_v61 }
 0x34d   : > { %v4026_v62 = vld [vmem:[#allocation2 + $0x9] ss:$32 sm:$0x2]  ;;  %7097 = vmatmul.mubr.msk.f32.gmra.mrb[90].mxu1 %vm2651_vm7, %v2650_v37  ;;  %v9306_v25 = vld [vmem:[#allocation2] ss:$32 sm:$0x80]  ;;  %7205 = vmatmul.mubr.msk.f32.gmra.mrb[92].mxu0 %vm2651_vm7, %v9087_v59  ;;  %v3624_v36 = vor.u32 %v9292_v60, %v3622_v22  ;;  %v3587_v37 = vor.u32 %v3586_v11, %v3585_v55  ;;  %v3603_v3 = vor.u32 %v3602_v5, %v3601_v48 }
 0x34e   : > { %v9308_v34 = vld [vmem:[#allocation2 + $0x1] ss:$32 sm:$0x80]  ;;  %v4014_v4 = vld [vmem:[#allocation2 + $0x8] ss:$32 sm:$0x8]  ;;  %7099 = vmatprep.mubr.msk.f32.mxu1 %vm7956_vm5, %v9968_v27  ;;  %7219 = vmatprep.mubr.msk.f32.mxu0 %vm7956_vm5, %v9968_v27  ;;  %v9325_v21 = vor.u32 %v3802_v0, %v3801_v52  ;;  %v3910_v60 = vor.u32 %v9301_v56, %v3908_v14  ;;  %v3926_v11 = vor.u32 %v9303_v10, %v3924_v2 }
 0x34f   : > { %v3818_v46 = vld [vmem:[#allocation2 + $0x5] ss:$32 sm:$0x40]  ;;  %v4025_v1 = vld [vmem:[#allocation2 + $0x9] ss:$32 sm:$0x1]  ;;  %v3605_v31 = vor.u32 %v9308_v34, %v3603_v3  ;;  %v4015_v0 = vor.u32 %v4014_v4, %v4013_v7  ;;  %v3641_v10 = vmax.f32 %v3624_v36, %v3640_v24 }
 0x350   : > { %v4028_v12 = vld [vmem:[#allocation2 + $0x9] ss:$32 sm:$0x4]  ;;  %v9317_v51 = vld [vmem:[#allocation2 + $0x4] ss:$32 sm:$0x80]  ;;  %v4027_v49 = vor.u32 %v4026_v62, %v4025_v1  ;;  %v3819_v22 = vor.u32 %v3818_v46, %v3817_v29 }
 0x351   : > { %v3911_v15 = vld [vmem:[#allocation2 + $0x6] ss:$32 sm:$0x40]  ;;  %v3927_v30 = vld [vmem:[#allocation2 + $0x7] ss:$32 sm:$0x40]  ;;  %7100 = vmatmul.mubr.msk.f32.gmra.mrb[92].mxu1 %vm2651_vm7, %v9971_v57  ;;  %7220 = vmatmul.mubr.msk.f32.vlgmr.msra.gmra.mrb[32].mxu0 %vm2651_vm7, %v8830_v18  ;;  %v3589_v57 = vor.u32 %v9306_v25, %v3587_v37  ;;  %v3805_v25 = vor.u32 %v9317_v51, %v9325_v21 }
 0x352   : > { %v4016_v63 = vld [vmem:[#allocation2 + $0x8] ss:$32 sm:$0x10]  ;;  %v9320_v13 = vld [vmem:[#allocation2 + $0x5] ss:$32 sm:$0x80]  ;;  %v4029_v61 = vor.u32 %v4028_v12, %v4027_v49  ;;  %7316 = vmatprep.mubr.msk.f32.mxu1 %vm7956_vm5, %v9968_v27  ;;  %7222 = vmatprep.mubr.msk.f32.mxu0 %vm7956_vm5, %v9968_v27  ;;  %v9343_v34 = vor.u32 %v3911_v15, %v3910_v60  ;;  %v9345_v4 = vor.u32 %v3927_v30, %v3926_v11 }
 0x353   : > { %v4030_v9 = vld [vmem:[#allocation2 + $0x9] ss:$32 sm:$0x8]  ;;  %v4119_v44 = vld [vmem:[#allocation2 + $0xa] ss:$32 sm:$0x2]  ;;  %v4017_v1 = vor.u32 %v4016_v63, %v4015_v0  ;;  %v3821_v46 = vor.u32 %v9320_v13, %v3819_v22  ;;  %v9972_v15 = vpack.c.bf16 %v9201_v33, %v9196_v38  ;;  %v3606_v30 = vmax.f32 %v3589_v57, %v3605_v31 }
 0x354   : > { %v9328_v45 = vld [vmem:[#allocation2 + $0x6] ss:$32 sm:$0x80]  ;;  %v4018_v5 = vld [vmem:[#allocation2 + $0x8] ss:$32 sm:$0x20]  ;;  %v4031_v18 = vor.u32 %v4030_v9, %v4029_v61 }
 0x355   : > { %v4032_v16 = vld [vmem:[#allocation2 + $0x9] ss:$32 sm:$0x10]  ;;  %v4118_v8 = vld [vmem:[#allocation2 + $0xa] ss:$32 sm:$0x1]  ;;  %7317 = vmatmul.mubr.msk.f32.vlgmr.msra.gmra.mrb[94].mxu1 %vm3508_vm6, %v3641_v10  ;;  %7223 = vmatmul.mubr.msk.f32.gmra.mrb[34].mxu0 %vm2651_vm7, %v8853_v6  ;;  %v3914_v63 = vor.u32 %v9328_v45, %v9343_v34  ;;  %v4019_v9 = vor.u32 %v4018_v5, %v4017_v1 }
 0x356   : > { %v4034_v14 = vld [vmem:[#allocation2 + $0x9] ss:$32 sm:$0x20]  ;;  %v4121_v56 = vld [vmem:[#allocation2 + $0xa] ss:$32 sm:$0x4]  ;;  %v4120_v55 = vor.u32 %v4119_v44, %v4118_v8  ;;  %v4033_v37 = vor.u32 %v4032_v16, %v4031_v18  ;;  %7539 = vmatpush3.bf16.msra.mxu1 %v9972_v15  ;;  %7323 = vmatprep.mubr.msk.f32.mxu1 %vm7956_vm5, %v9968_v27  ;;  %v3822_v18 = vmax.f32 %v3805_v25, %v3821_v46 }
 0x357   : > { %v4135_v62 = vld [vmem:[#allocation2 + $0xb] ss:$32 sm:$0x2]  ;;  %v9339_v47 = vld [vmem:[#allocation2 + $0x7] ss:$32 sm:$0x80]  ;;  %7225 = vmatprep.mubr.msk.f32.mxu0 %vm7956_vm5, %v9968_v27 }
 0x358   : > { %v4020_v2 = vld [vmem:[#allocation2 + $0x8] ss:$32 sm:$0x40]  ;;  %v4123_v48 = vld [vmem:[#allocation2 + $0xa] ss:$32 sm:$0x8]  ;;  %v4122_v3 = vor.u32 %v4121_v56, %v4120_v55  ;;  %v4035_v6 = vor.u32 %v4034_v14, %v4033_v37  ;;  %v3930_v57 = vor.u32 %v9339_v47, %v9345_v4  ;;  %v9974_v47 = vpack.c.bf16 %v9211_v41, %v9206_v42 }
 0x359   : > { %v4134_v43 = vld [vmem:[#allocation2 + $0xb] ss:$32 sm:$0x1]  ;;  %v4036_v12 = vld [vmem:[#allocation2 + $0x9] ss:$32 sm:$0x40]  ;;  %v4021_v31 = vor.u32 %v4020_v2, %v4019_v9  ;;  %7324 = vmatmul.mubr.msk.f32.vlgmr.msra.gmra.mrb[96].mxu1 %vm3508_vm6, %v3606_v30  ;;  %7226 = vmatmul.mubr.msk.f32.gmra.mrb[36].mxu0 %vm2651_vm7, %v8849_v35 }
 0x35a   : > { %v4125_v52 = vld [vmem:[#allocation2 + $0xa] ss:$32 sm:$0x10]  ;;  %v4137_v49 = vld [vmem:[#allocation2 + $0xb] ss:$32 sm:$0x4]  ;;  %v4136_v29 = vor.u32 %v4135_v62, %v4134_v43  ;;  %v4124_v45 = vor.u32 %v4123_v48, %v4122_v3  ;;  %v4037_v55 = vor.u32 %v4036_v12, %v4035_v6  ;;  %7330 = vmatprep.mubr.msk.f32.mxu1 %vm7956_vm5, %v9968_v27  ;;  %7228 = vmatprep.mubr.msk.f32.mxu0 %vm7956_vm5, %v9968_v27 }
 0x35b   : > { %v4139_v36 = vld [vmem:[#allocation2 + $0xb] ss:$32 sm:$0x8]  ;;  %v9349_v24 = vld [vmem:[#allocation2 + $0x8] ss:$32 sm:$0x80] }
 0x35c   : > { %v4228_v7 = vld [vmem:[#allocation2 + $0xc] ss:$32 sm:$0x2]  ;;  %v4244_v51 = vld [vmem:[#allocation2 + $0xd] ss:$32 sm:$0x2]  ;;  %v4138_v5 = vor.u32 %v4137_v49, %v4136_v29  ;;  %v4126_v48 = vor.u32 %v4125_v52, %v4124_v45  ;;  %v4023_v2 = vor.u32 %v9349_v24, %v4021_v31  ;;  %v9975_v31 = vpack.c.bf16 %v9221_v20, %v9216_v58 }
 0x35d   : > { %v9358_v13 = vld [vmem:[#allocation2 + $0x9] ss:$32 sm:$0x80]  ;;  %v4127_v44 = vld [vmem:[#allocation2 + $0xa] ss:$32 sm:$0x20]  ;;  %7229 = vmatmul.mubr.msk.f32.gmra.mrb[38].mxu0 %vm2651_vm7, %v8875_v39 }
 0x35e   : > { %v4141_v21 = vld [vmem:[#allocation2 + $0xb] ss:$32 sm:$0x10]  ;;  %v4227_v60 = vld [vmem:[#allocation2 + $0xc] ss:$32 sm:$0x1]  ;;  %v4140_v43 = vor.u32 %v4139_v36, %v4138_v5  ;;  %v4039_v12 = vor.u32 %v9358_v13, %v4037_v55  ;;  %v4128_v35 = vor.u32 %v4127_v44, %v4126_v48  ;;  %v3931_v44 = vmax.f32 %v3914_v63, %v3930_v57  ;;  %7231 = vmatprep.mubr.msk.f32.mxu0 %vm7956_vm5, %v9968_v27 }
 0x35f   : > { %v4230_v11 = vld [vmem:[#allocation2 + $0xc] ss:$32 sm:$0x4]  ;;  %v9367_v38 = vld [vmem:[%s9918_s4 + $0x50] sm:$0xff]  ;;  %v9372_v33 = vld [vmem:[%s9918_s4 + $0x58] sm:$0xff]  ;;  %v9973_v8 = vmov 0.0|0.0   ;;  %v4229_v56 = vor.u32 %v4228_v7, %v4227_v60 }
 0x360   : > { %v4243_v61 = vld [vmem:[#allocation2 + $0xd] ss:$32 sm:$0x1]  ;;  %7540 = vmatprep.subr.bf16.mxu1 %v9973_v8  ;;  %v4129_v0 = vld [vmem:[#allocation2 + $0xa] ss:$32 sm:$0x40]  ;;  %v4142_v42 = vor.u32 %v4141_v21, %v4140_v43  ;;  %v7550_v7 = vpack.c.bf16 %v9372_v33, %v9367_v38 }
 0x361   : > { %v4246_v16 = vld [vmem:[#allocation2 + $0xd] ss:$32 sm:$0x4]  ;;  %v4143_v14 = vld [vmem:[#allocation2 + $0xb] ss:$32 sm:$0x20]  ;;  %v4245_v10 = vor.u32 %v4244_v51, %v4243_v61  ;;  %7542 = vmatpush3.bf16.msra.mxu1 %v9974_v47  ;;  %v4231_v37 = vor.u32 %v4230_v11, %v4229_v56  ;;  %v9397_v21 = vor.u32 %v4129_v0, %v4128_v35  ;;  %v4040_v0 = vmax.f32 %v4023_v2, %v4039_v12 }
 0x362   : > { %v4232_v62 = vld [vmem:[#allocation2 + $0xc] ss:$32 sm:$0x8]  ;;  %v4248_v22 = vld [vmem:[#allocation2 + $0xd] ss:$32 sm:$0x8]  ;;  %7543 = vmatprep.subr.bf16.mxu1 %v9973_v8  ;;  %v4144_v11 = vor.u32 %v4143_v14, %v4142_v42  ;;  %7232 = vmatmul.mubr.msk.f32.gmra.mrb[40].mxu0 %vm2651_vm7, %v8871_v54 }
 0x363   : > { %v4234_v34 = vld [vmem:[#allocation2 + $0xc] ss:$32 sm:$0x10]  ;;  %v4250_v1 = vld [vmem:[#allocation2 + $0xd] ss:$32 sm:$0x10]  ;;  %v4247_v3 = vor.u32 %v4246_v16, %v4245_v10  ;;  %v4233_v15 = vor.u32 %v4232_v62, %v4231_v37  ;;  %7234 = vmatprep.mubr.msk.f32.mxu0 %vm7956_vm5, %v9968_v27 }
 0x364   : > { %v4337_v49 = vld [vmem:[#allocation2 + $0xe] ss:$32 sm:$0x2]  ;;  %v4145_v4 = vld [vmem:[#allocation2 + $0xb] ss:$32 sm:$0x40]  ;;  %7331 = vmatmul.mubr.msk.f32.vlgmr.msra.gmra.mrb[98].mxu1 %vm3508_vm6, %v3822_v18 }
 0x365   : > { %v4336_v29 = vld [vmem:[#allocation2 + $0xe] ss:$32 sm:$0x1]  ;;  %v4353_v25 = vld [vmem:[#allocation2 + $0xf] ss:$32 sm:$0x2]  ;;  %v4249_v30 = vor.u32 %v4248_v22, %v4247_v3  ;;  %7545 = vmatpush3.bf16.msra.mxu1 %v9975_v31  ;;  %v4235_v56 = vor.u32 %v4234_v34, %v4233_v15  ;;  %7337 = vmatprep.mubr.msk.f32.mxu1 %vm7956_vm5, %v9968_v27  ;;  %v4146_v14 = vor.u32 %v4145_v4, %v4144_v11 }
 0x366   : > { %v9389_v52 = vld [vmem:[#allocation2 + $0xa] ss:$32 sm:$0x80]  ;;  %v4236_v41 = vld [vmem:[#allocation2 + $0xc] ss:$32 sm:$0x20]  ;;  %v4338_v9 = vor.u32 %v4337_v49, %v4336_v29  ;;  %7546 = vmatprep.subr.bf16.mxu1 %v9973_v8  ;;  %7235 = vmatmul.mubr.msk.f32.gmra.mrb[42].mxu0 %vm2651_vm7, %v8894_v17 }
 0x367   : > { %v4252_v36 = vld [vmem:[#allocation2 + $0xd] ss:$32 sm:$0x20]  ;;  %v4339_v46 = vld [vmem:[#allocation2 + $0xe] ss:$32 sm:$0x4]  ;;  %v4251_v62 = vor.u32 %v4250_v1, %v4249_v30  ;;  %v4132_v1 = vor.u32 %v9389_v52, %v9397_v21  ;;  %v4237_v49 = vor.u32 %v4236_v41, %v4235_v56  ;;  %v9976_v52 = vpack.c.bf16 %v9243_v32, %v9238_v26  ;;  %7237 = vmatprep.mubr.msk.f32.mxu0 %vm7956_vm5, %v9968_v27 }
 0x368   : > { %v4341_v24 = vld [vmem:[#allocation2 + $0xe] ss:$32 sm:$0x8]  ;;  %v9394_v51 = vld [vmem:[#allocation2 + $0xb] ss:$32 sm:$0x80]  ;;  %v4340_v10 = vor.u32 %v4339_v46, %v4338_v9  ;;  %7338 = vmatmul.mubr.msk.f32.vlgmr.msra.gmra.mrb[100].mxu1 %vm3508_vm6, %v3931_v44 }
 0x369   : > { %v4352_v60 = vld [vmem:[#allocation2 + $0xf] ss:$32 sm:$0x1]  ;;  %v4238_v6 = vld [vmem:[#allocation2 + $0xc] ss:$32 sm:$0x40]  ;;  %v4253_v47 = vor.u32 %v4252_v36, %v4251_v62  ;;  %v4148_v3 = vor.u32 %v9394_v51, %v4146_v14  ;;  %7548 = vmatpush3.bf16.msra.mxu1 %v9976_v52  ;;  %7344 = vmatprep.mubr.msk.f32.mxu1 %vm7956_vm5, %v9968_v27 }
 0x36a   : > { %v4355_v13 = vld [vmem:[#allocation2 + $0xf] ss:$32 sm:$0x4]  ;;  %v4254_v45 = vld [vmem:[#allocation2 + $0xd] ss:$32 sm:$0x40]  ;;  %v4354_v61 = vor.u32 %v4353_v25, %v4352_v60  ;;  %v4342_v2 = vor.u32 %v4341_v24, %v4340_v10  ;;  %v4239_v41 = vor.u32 %v4238_v6, %v4237_v49  ;;  %7549 = vmatprep.subr.bf16.mxu1 %v9973_v8  ;;  %7238 = vmatmul.mubr.msk.f32.gmra.mrb[44].mxu0 %vm2651_vm7, %v8890_v40 }
 0x36b   : > { %v4343_v5 = vld [vmem:[#allocation2 + $0xe] ss:$32 sm:$0x10]  ;;  %v4357_v16 = vld [vmem:[#allocation2 + $0xf] ss:$32 sm:$0x8]  ;;  %v4255_v36 = vor.u32 %v4254_v45, %v4253_v47  ;;  %7240 = vmatprep.mubr.msk.f32.mxu0 %vm7956_vm5, %v9968_v27 }
 0x36c   : > { %v4359_v22 = vld [vmem:[#allocation2 + $0xf] ss:$32 sm:$0x10]  ;;  %v4446_v63 = vld [vmem:[#allocation2 + $0x10] ss:$32 sm:$0x2]  ;;  %v4356_v48 = vor.u32 %v4355_v13, %v4354_v61  ;;  %v4344_v24 = vor.u32 %v4343_v5, %v4342_v2  ;;  %7345 = vmatmul.mubr.msk.f32.vlgmr.msra.gmra.mrb[102].mxu1 %vm3508_vm6, %v4040_v0 }
 0x36d   : > { %v4462_v57 = vld [vmem:[#allocation2 + $0x11] ss:$32 sm:$0x2]  ;;  %v9411_v39 = vld [vmem:[%s9918_s4 + $0x60] sm:$0xff]  ;;  %v9416_v58 = vld [vmem:[%s9918_s4 + $0x68] sm:$0xff]  ;;  %7551 = vmatpush3.bf16.msra.mxu1 %v7550_v7  ;;  %7351 = vmatprep.mubr.msk.f32.mxu1 %vm7956_vm5, %v9968_v27 }
 0x36e   : > { %v9418_v20 = vld [vmem:[#allocation2 + $0xc] ss:$32 sm:$0x80]  ;;  %v9420_v18 = vld [vmem:[#allocation2 + $0xd] ss:$32 sm:$0x80]  ;;  %v4358_v25 = vor.u32 %v4357_v16, %v4356_v48  ;;  %v7553_v11 = vpack.c.bf16 %v9416_v58, %v9411_v39  ;;  %7552 = vmatprep.subr.bf16.mxu1 %v9973_v8  ;;  %7241 = vmatmul.mubr.msk.f32.gmra.mrb[46].mxu0 %vm2651_vm7, %v8909_v23 }
 0x36f   : > { %v4345_v55 = vld [vmem:[#allocation2 + $0xe] ss:$32 sm:$0x20]  ;;  %v4445_v43 = vld [vmem:[#allocation2 + $0x10] ss:$32 sm:$0x1]  ;;  %v4241_v6 = vor.u32 %v9418_v20, %v4239_v41  ;;  %v4257_v45 = vor.u32 %v9420_v18, %v4255_v36  ;;  %7243 = vmatprep.mubr.msk.f32.mxu0 %vm7956_vm5, %v9968_v27 }
 0x370   : > { %v4448_v34 = vld [vmem:[#allocation2 + $0x10] ss:$32 sm:$0x4]  ;;  %v4461_v4 = vld [vmem:[#allocation2 + $0x11] ss:$32 sm:$0x1]  ;;  %v4447_v35 = vor.u32 %v4446_v63, %v4445_v43  ;;  %v4360_v32 = vor.u32 %v4359_v22, %v4358_v25  ;;  %v4346_v5 = vor.u32 %v4345_v55, %v4344_v24  ;;  %v4149_v22 = vmax.f32 %v4132_v1, %v4148_v3 }
 0x371   : > { %v4464_v37 = vld [vmem:[#allocation2 + $0x11] ss:$32 sm:$0x4]  ;;  %v4347_v29 = vld [vmem:[#allocation2 + $0xe] ss:$32 sm:$0x40]  ;;  %v4463_v46 = vor.u32 %v4462_v57, %v4461_v4  ;;  %v4258_v4 = vmax.f32 %v4241_v6, %v4257_v45 }
 0x372   : > { %v4361_v12 = vld [vmem:[#allocation2 + $0xf] ss:$32 sm:$0x20]  ;;  %v4450_v42 = vld [vmem:[#allocation2 + $0x10] ss:$32 sm:$0x8]  ;;  %v4449_v60 = vor.u32 %v4448_v34, %v4447_v35  ;;  %v9461_v20 = vor.u32 %v4347_v29, %v4346_v5  ;;  %7352 = vmatmul.mubr.msk.f32.vlgmr.msra.gmra.mrb[104].mxu1 %vm3508_vm6, %v4149_v22  ;;  %7244 = vmatmul.mubr.msk.f32.gmra.mrb[48].mxu0 %vm2651_vm7, %v8905_v28 }
 0x373   : > { %v4363_v15 = vld [vmem:[#allocation2 + $0xf] ss:$32 sm:$0x40]  ;;  %v4452_v30 = vld [vmem:[#allocation2 + $0x10] ss:$32 sm:$0x10]  ;;  %v4465_v13 = vor.u32 %v4464_v37, %v4463_v46  ;;  %v4362_v63 = vor.u32 %v4361_v12, %v4360_v32  ;;  %7554 = vmatpush3.bf16.msra.mxu1 %v7553_v11  ;;  %7358 = vmatprep.mubr.msk.f32.mxu1 %vm7956_vm5, %v9968_v27 }
 0x374   : > { %v4466_v9 = vld [vmem:[#allocation2 + $0x11] ss:$32 sm:$0x8]  ;;  %v9444_v26 = vld [vmem:[%s9918_s4 + $0x78] sm:$0xff]  ;;  %v4451_v57 = vor.u32 %v4450_v42, %v4449_v60  ;;  %v9470_v17 = vld [vmem:[%s9918_s4 + $0x80] sm:$0xff]  ;;  %7555 = vmatprep.subr.bf16.mxu1 %v9973_v8  ;;  %7246 = vmatprep.mubr.msk.f32.mxu0 %vm7956_vm5, %v9968_v27 }
 0x375   : > { %v4468_v51 = vld [vmem:[#allocation2 + $0x11] ss:$32 sm:$0x10]  ;;  %v4555_v44 = vld [vmem:[#allocation2 + $0x12] ss:$32 sm:$0x2]  ;;  %v4467_v14 = vor.u32 %v4466_v9, %v4465_v13  ;;  %v4364_v1 = vor.u32 %v4363_v15, %v4362_v63 }
 0x376   : > { %v9439_v54 = vld [vmem:[%s9918_s4 + $0x70] sm:$0xff]  ;;  %v9451_v61 = vld [vmem:[#allocation2 + $0xe] ss:$32 sm:$0x80]  ;;  %v4453_v33 = vor.u32 %v4452_v30, %v4451_v57  ;;  %v9502_v40 = vld [vmem:[%s9918_s4 + $0x98] sm:$0xff]  ;;  %7359 = vmatmul.mubr.msk.f32.vlgmr.msra.gmra.mrb[106].mxu1 %vm3508_vm6, %v4258_v4  ;;  %7247 = vmatmul.mubr.msk.f32.gmra.mrb[50].mxu0 %vm2651_vm7, %v8926_v50 }
 0x377   : > { %v4571_v21 = vld [vmem:[#allocation2 + $0x13] ss:$32 sm:$0x2]  ;;  %v9453_v16 = vld [vmem:[#allocation2 + $0xf] ss:$32 sm:$0x80]  ;;  %v4469_v7 = vor.u32 %v4468_v51, %v4467_v14  ;;  %v7556_v37 = vpack.c.bf16 %v9444_v26, %v9439_v54  ;;  %v4350_v46 = vor.u32 %v9451_v61, %v9461_v20  ;;  %7365 = vmatprep.mubr.msk.f32.mxu1 %vm7956_vm5, %v9968_v27  ;;  %7249 = vmatprep.mubr.msk.f32.mxu0 %vm7956_vm5, %v9968_v27 }
 0x378   : > { %v4454_v31 = vld [vmem:[#allocation2 + $0x10] ss:$32 sm:$0x20]  ;;  %v4470_v56 = vld [vmem:[#allocation2 + $0x11] ss:$32 sm:$0x20]  ;;  %v4366_v52 = vor.u32 %v9453_v16, %v4364_v1 }
 0x379   : > { %v4554_v62 = vld [vmem:[#allocation2 + $0x12] ss:$32 sm:$0x1]  ;;  %v4570_v39 = vld [vmem:[#allocation2 + $0x13] ss:$32 sm:$0x1]  ;;  %v4455_v41 = vor.u32 %v4454_v31, %v4453_v33  ;;  %v4471_v36 = vor.u32 %v4470_v56, %v4469_v7  ;;  %7557 = vmatpush3.bf16.msra.mxu1 %v7556_v37 }
 0x37a   : > { %v4557_v10 = vld [vmem:[#allocation2 + $0x12] ss:$32 sm:$0x4]  ;;  %v4573_v58 = vld [vmem:[#allocation2 + $0x13] ss:$32 sm:$0x4]  ;;  %v4556_v48 = vor.u32 %v4555_v44, %v4554_v62  ;;  %v4572_v0 = vor.u32 %v4571_v21, %v4570_v39  ;;  %v4367_v57 = vmax.f32 %v4350_v46, %v4366_v52  ;;  %7558 = vmatprep.subr.bf16.mxu1 %v9973_v8  ;;  %7250 = vmatmul.mubr.msk.f32.gmra.mrb[52].mxu0 %vm2651_vm7, %v8922_v19 }
 0x37b   : > { %v4456_v18 = vld [vmem:[#allocation2 + $0x10] ss:$32 sm:$0x40]  ;;  %v4472_v55 = vld [vmem:[#allocation2 + $0x11] ss:$32 sm:$0x40]  ;;  %7252 = vmatprep.mubr.msk.f32.mxu0 %vm7956_vm5, %v9968_v27 }
 0x37c   : > { %v4559_v43 = vld [vmem:[#allocation2 + $0x12] ss:$32 sm:$0x8]  ;;  %v4575_v34 = vld [vmem:[#allocation2 + $0x13] ss:$32 sm:$0x8]  ;;  %v4558_v25 = vor.u32 %v4557_v10, %v4556_v48  ;;  %v4574_v12 = vor.u32 %v4573_v58, %v4572_v0  ;;  %v4457_v13 = vor.u32 %v4456_v18, %v4455_v41  ;;  %v4473_v44 = vor.u32 %v4472_v55, %v4471_v36  ;;  %7366 = vmatmul.mubr.msk.f32.vlgmr.msra.gmra.mrb[108].mxu1 %vm3508_vm6, %v4367_v57 }
 0x37d   : > { %v9475_v38 = vld [vmem:[%s9918_s4 + $0x88] sm:$0xff]  ;;  %v4561_v49 = vld [vmem:[#allocation2 + $0x12] ss:$32 sm:$0x10]  ;;  %7372 = vmatprep.mubr.msk.f32.mxu1 %vm7956_vm5, %v9968_v27  ;;  %v4805_v50 = vld [vmem:[%s9918_s4 + $0xb8] sm:$0xff] }
 0x37e   : > { %v4577_v47 = vld [vmem:[#allocation2 + $0x13] ss:$32 sm:$0x10]  ;;  %v4664_v2 = vld [vmem:[#allocation2 + $0x14] ss:$32 sm:$0x2]  ;;  %v4560_v51 = vor.u32 %v4559_v43, %v4558_v25  ;;  %v4576_v54 = vor.u32 %v4575_v34, %v4574_v12  ;;  %v7559_v16 = vpack.c.bf16 %v9475_v38, %v9470_v17  ;;  %7253 = vmatmul.mubr.msk.f32.gmra.mrb[54].mxu0 %vm2651_vm7, %v8941_v53 }
 0x37f   : > { %v9480_v3 = vld [vmem:[#allocation2 + $0x10] ss:$32 sm:$0x80]  ;;  %v9482_v29 = vld [vmem:[#allocation2 + $0x11] ss:$32 sm:$0x80]  ;;  %7255 = vmatprep.mubr.msk.f32.mxu0 %vm7956_vm5, %v9968_v27 }
 0x380   : > { %v4663_v35 = vld [vmem:[#allocation2 + $0x14] ss:$32 sm:$0x1]  ;;  %v4680_v42 = vld [vmem:[#allocation2 + $0x15] ss:$32 sm:$0x2]  ;;  %v4562_v31 = vor.u32 %v4561_v49, %v4560_v51  ;;  %v4578_v56 = vor.u32 %v4577_v47, %v4576_v54  ;;  %v4459_v14 = vor.u32 %v9480_v3, %v4457_v13  ;;  %v4475_v39 = vor.u32 %v9482_v29, %v4473_v44  ;;  %7560 = vmatpush3.bf16.msra.mxu1 %v7559_v16 }
 0x381   : > { %v4563_v24 = vld [vmem:[#allocation2 + $0x12] ss:$32 sm:$0x20]  ;;  %v4579_v15 = vld [vmem:[#allocation2 + $0x13] ss:$32 sm:$0x20]  ;;  %v4665_v26 = vor.u32 %v4664_v2, %v4663_v35  ;;  %7561 = vmatprep.subr.bf16.mxu1 %v9973_v8 }
 0x382   : > { %v4666_v30 = vld [vmem:[#allocation2 + $0x14] ss:$32 sm:$0x4]  ;;  %v4679_v32 = vld [vmem:[#allocation2 + $0x15] ss:$32 sm:$0x1]  ;;  %v4564_v43 = vor.u32 %v4563_v24, %v4562_v31  ;;  %v4580_v0 = vor.u32 %v4579_v15, %v4578_v56  ;;  %v4476_v25 = vmax.f32 %v4459_v14, %v4475_v39 }
 0x383   : > { %v4668_v9 = vld [vmem:[#allocation2 + $0x14] ss:$32 sm:$0x8]  ;;  %v4682_v60 = vld [vmem:[#allocation2 + $0x15] ss:$32 sm:$0x4]  ;;  %v4681_v5 = vor.u32 %v4680_v42, %v4679_v32  ;;  %v4667_v62 = vor.u32 %v4666_v30, %v4665_v26 }
 0x384   : > { %v9497_v21 = vld [vmem:[%s9918_s4 + $0x90] sm:$0xff]  ;;  %v4695_v12 = vld [vmem:[%s9918_s4 + $0xa0] sm:$0xff]  ;;  %v4696_v35 = vld [vmem:[%s9918_s4 + $0xa8] sm:$0xff]  ;;  %7373 = vmatmul.mubr.msk.f32.vlgmr.msra.gmra.mrb[110].mxu1 %vm3508_vm6, %v4476_v25 }
 0x385   : > { %v4565_v11 = vld [vmem:[#allocation2 + $0x12] ss:$32 sm:$0x40]  ;;  %v4581_v6 = vld [vmem:[#allocation2 + $0x13] ss:$32 sm:$0x40]  ;;  %v4683_v18 = vor.u32 %v4682_v60, %v4681_v5  ;;  %v4669_v34 = vor.u32 %v4668_v9, %v4667_v62  ;;  %v7562_v23 = vpack.c.bf16 %v9502_v40, %v9497_v21  ;;  %v7565_v5 = vpack.c.bf16 %v4696_v35, %v4695_v12  ;;  %7379 = vmatprep.mubr.msk.f32.mxu1 %vm7956_vm5, %v9968_v27 }
 0x386   : > { %v4670_v45 = vld [vmem:[#allocation2 + $0x14] ss:$32 sm:$0x10]  ;;  %v4684_v61 = vld [vmem:[#allocation2 + $0x15] ss:$32 sm:$0x8]  ;;  %v4566_v2 = vor.u32 %v4565_v11, %v4564_v43  ;;  %v4582_v4 = vor.u32 %v4581_v6, %v4580_v0 }
 0x387   : > { %v4686_v10 = vld [vmem:[#allocation2 + $0x15] ss:$32 sm:$0x10]  ;;  %v4773_v22 = vld [vmem:[#allocation2 + $0x16] ss:$32 sm:$0x2]  ;;  %v4685_v33 = vor.u32 %v4684_v61, %v4683_v18  ;;  %v4671_v37 = vor.u32 %v4670_v45, %v4669_v34  ;;  %7563 = vmatpush3.bf16.msra.mxu1 %v7562_v23 }
 0x388   : > { %v4789_v63 = vld [vmem:[#allocation2 + $0x17] ss:$32 sm:$0x2]  ;;  %v4567_v58 = vld [vmem:[#allocation2 + $0x12] ss:$32 sm:$0x80]  ;;  %7564 = vmatprep.subr.bf16.mxu1 %v9973_v8 }
 0x389   : > { %v4583_v20 = vld [vmem:[#allocation2 + $0x13] ss:$32 sm:$0x80]  ;;  %v4772_v55 = vld [vmem:[#allocation2 + $0x16] ss:$32 sm:$0x1]  ;;  %v4687_v46 = vor.u32 %v4686_v10, %v4685_v33  ;;  %v4568_v24 = vor.u32 %v4567_v58, %v4566_v2 }
 0x38a   : > { %v4775_v48 = vld [vmem:[#allocation2 + $0x16] ss:$32 sm:$0x4]  ;;  %v4788_v1 = vld [vmem:[#allocation2 + $0x17] ss:$32 sm:$0x1]  ;;  %v4774_v49 = vor.u32 %v4773_v22, %v4772_v55  ;;  %v4584_v15 = vor.u32 %v4583_v20, %v4582_v4 }
 0x38b   : > { %v4791_v17 = vld [vmem:[#allocation2 + $0x17] ss:$32 sm:$0x4]  ;;  %v4672_v38 = vld [vmem:[#allocation2 + $0x14] ss:$32 sm:$0x20]  ;;  %v4790_v47 = vor.u32 %v4789_v63, %v4788_v1 }
 0x38c   : > { %v4688_v7 = vld [vmem:[#allocation2 + $0x15] ss:$32 sm:$0x20]  ;;  %v4777_v3 = vld [vmem:[#allocation2 + $0x16] ss:$32 sm:$0x8]  ;;  %v4776_v41 = vor.u32 %v4775_v48, %v4774_v49  ;;  %v4673_v30 = vor.u32 %v4672_v38, %v4671_v37  ;;  %v4585_v45 = vmax.f32 %v4568_v24, %v4584_v15 }
 0x38d   : > { %v4793_v29 = vld [vmem:[#allocation2 + $0x17] ss:$32 sm:$0x8]  ;;  %v4674_v42 = vld [vmem:[#allocation2 + $0x14] ss:$32 sm:$0x40]  ;;  %v4792_v36 = vor.u32 %v4791_v17, %v4790_v47  ;;  %v4689_v26 = vor.u32 %v4688_v7, %v4687_v46 }
 0x38e   : > { %v4690_v52 = vld [vmem:[#allocation2 + $0x15] ss:$32 sm:$0x40]  ;;  %v4779_v9 = vld [vmem:[#allocation2 + $0x16] ss:$32 sm:$0x10]  ;;  %v4778_v60 = vor.u32 %v4777_v3, %v4776_v41  ;;  %v4675_v28 = vor.u32 %v4674_v42, %v4673_v30  ;;  %7380 = vmatmul.mubr.msk.f32.vlgmr.msra.gmra.mrb[112].mxu1 %vm3508_vm6, %v4585_v45 }
 0x38f   : > { %v4795_v51 = vld [vmem:[#allocation2 + $0x17] ss:$32 sm:$0x10]  ;;  %v4676_v54 = vld [vmem:[#allocation2 + $0x14] ss:$32 sm:$0x80]  ;;  %v4794_v13 = vor.u32 %v4793_v29, %v4792_v36  ;;  %v4691_v40 = vor.u32 %v4690_v52, %v4689_v26  ;;  %7566 = vmatpush3.bf16.msra.mxu1 %v7565_v5  ;;  %7386 = vmatprep.mubr.msk.f32.mxu1 %vm7956_vm5, %v9968_v27 }
 0x390   : > { %v4692_v32 = vld [vmem:[#allocation2 + $0x15] ss:$32 sm:$0x80]  ;;  %v4781_v44 = vld [vmem:[#allocation2 + $0x16] ss:$32 sm:$0x20]  ;;  %v4780_v11 = vor.u32 %v4779_v9, %v4778_v60  ;;  %v4677_v61 = vor.u32 %v4676_v54, %v4675_v28  ;;  %7567 = vmatprep.subr.bf16.mxu1 %v9973_v8 }
 0x391   : > { %v4797_v21 = vld [vmem:[#allocation2 + $0x17] ss:$32 sm:$0x20]  ;;  %v4796_v6 = vor.u32 %v4795_v51, %v4794_v13  ;;  %v4783_v16 = vld [vmem:[#allocation2 + $0x16] ss:$32 sm:$0x40]  ;;  %v4693_v56 = vor.u32 %v4692_v32, %v4691_v40 }
 0x392   : > { %v4799_v31 = vld [vmem:[#allocation2 + $0x17] ss:$32 sm:$0x40]  ;;  %v4782_v10 = vor.u32 %v4781_v44, %v4780_v11  ;;  %v4785_v63 = vld [vmem:[#allocation2 + $0x16] ss:$32 sm:$0x80] }
 0x393   : > { %v4804_v62 = vld [vmem:[%s9918_s4 + $0xb0] sm:$0xff]  ;;  %v4798_v22 = vor.u32 %v4797_v21, %v4796_v6  ;;  %v4694_v20 = vmax.f32 %v4677_v61, %v4693_v56  ;;  %v9977_v48 = vld [vmem:[#allocation7_spill] sm:$0xff]  ;;  %v9978_v53 = vld [vmem:[#allocation9_spill] sm:$0xff] }
 0x394   : > { %v4801_v57 = vld [vmem:[#allocation2 + $0x17] ss:$32 sm:$0x80]  ;;  %v4784_v14 = vor.u32 %v4783_v16, %v4782_v10  ;;  %v7568_v58 = vpack.c.bf16 %v4805_v50, %v4804_v62  ;;  %7256 = vmatmul.mubr.msk.f32.gmra.mrb[56].mxu0 %vm2651_vm7, %v9977_v48  ;;  %v9980_v0 = vld [vmem:[#allocation11_spill] sm:$0xff]  ;;  %v9981_v34 = vld [vmem:[#allocation10_spill] sm:$0xff] }
 0x395   : > { %v4800_v39 = vor.u32 %v4799_v31, %v4798_v22  ;;  %7387 = vmatmul.mubr.msk.f32.vlgmr.msra.gmra.mrb[114].mxu1 %vm3508_vm6, %v4694_v20  ;;  %7258 = vmatprep.mubr.msk.f32.mxu0 %vm7956_vm5, %v9968_v27  ;;  %v9979_v43 = vld [vmem:[#allocation8_spill] sm:$0xff]  ;;  %v9982_v1 = vld [vmem:[#allocation13_spill] sm:$0xff]  ;;  %v9984_v38 = vld [vmem:[#allocation15_spill] sm:$0xff] }
 0x396   : > { %v4786_v18 = vor.u32 %v4785_v63, %v4784_v14  ;;  %7569 = vmatpush3.bf16.msra.mxu1 %v7568_v58  ;;  %7393 = vmatprep.mubr.msk.f32.mxu1 %vm7956_vm5, %v9968_v27  ;;  %v9983_v17 = vld [vmem:[#allocation12_spill] sm:$0xff]  ;;  %v9985_v33 = vld [vmem:[#allocation14_spill] sm:$0xff]  ;;  %v9986_v7 = vld [vmem:[#allocation17_spill] sm:$0xff] }
 0x397   : > { %v4802_v55 = vor.u32 %v4801_v57, %v4800_v39  ;;  %7570 = vmatprep.subr.bf16.mxu1 %v9973_v8  ;;  %v9987_v49 = vld [vmem:[#allocation16_spill] sm:$0xff]  ;;  %v9988_v2 = vld [vmem:[#allocation19_spill] sm:$0xff]  ;;  %v9989_v3 = vld [vmem:[#allocation18_spill] sm:$0xff] }
 0x398   : > { %7259 = vmatmul.mubr.msk.f32.gmra.mrb[58].mxu0 %vm2651_vm7, %v9978_v53  ;;  %v9990_v12 = vld [vmem:[#allocation21_spill] sm:$0xff]  ;;  %v9991_v46 = vld [vmem:[#allocation20_spill] sm:$0xff]  ;;  %v9992_v36 = vld [vmem:[#allocation23_spill] sm:$0xff] }
 0x399   : > { %v4803_v19 = vmax.f32 %v4786_v18, %v4802_v55  ;;  %7261 = vmatprep.mubr.msk.f32.mxu0 %vm7956_vm5, %v9968_v27  ;;  %v9993_v30 = vld [vmem:[#allocation22_spill] sm:$0xff]  ;;  %v9994_v32 = vld [vmem:[#allocation24_spill] sm:$0xff] }
 0x39a   : > { %v9995_v60 = vmax.f32 %v9994_v32, 0.0 }
 0x39b   : > { %7394 = vmatmul.mubr.msk.f32.vlgmr.msra.gmra.mrb[116].mxu1 %vm3508_vm6, %v4803_v19 }
 0x39c   : > { %7404 = vmatprep.mubr.msk.f32.mxu1 %vm7956_vm5, %v9968_v27  ;;  %7262 = vmatmul.mubr.msk.f32.gmra.mrb[60].mxu0 %vm2651_vm7, %v9979_v43 }
 0x39d   : > { %7264 = vmatprep.mubr.msk.f32.mxu0 %vm7956_vm5, %v9968_v27 }
 0x3a0   : > { %7265 = vmatmul.mubr.msk.f32.gmra.mrb[62].mxu0 %vm2651_vm7, %v9980_v0 }
 0x3a1   : > { %7267 = vmatprep.mubr.msk.f32.mxu0 %vm7956_vm5, %v9968_v27 }
 0x3a4   : > { %7268 = vmatmul.mubr.msk.f32.gmra.mrb[64].mxu0 %vm2651_vm7, %v9981_v34 }
 0x3a5   : > { %7270 = vmatprep.mubr.msk.f32.mxu0 %vm7956_vm5, %v9968_v27 }
 0x3a8   : > { %7271 = vmatmul.mubr.msk.f32.gmra.mrb[66].mxu0 %vm2651_vm7, %v9982_v1 }
 0x3a9   : > { %7273 = vmatprep.mubr.msk.f32.mxu0 %vm7956_vm5, %v9968_v27 }
 0x3ab   : > { %v9610_v47 = vpop.f32.mrb[32].mxu1 }
 0x3ac   : > { %7274 = vmatmul.mubr.msk.f32.gmra.mrb[68].mxu0 %vm2651_vm7, %v9983_v17  ;;  %v7011_v23 = vpop.f32.mrb[33].mxu1 }
 0x3ad   : > { %7276 = vmatprep.mubr.msk.f32.mxu0 %vm7956_vm5, %v9968_v27 }
 0x3af   : > { %v9616_v4 = vpop.f32.mrb[34].mxu1 }
 0x3b0   : > { %7277 = vmatmul.mubr.msk.f32.gmra.mrb[70].mxu0 %vm2651_vm7, %v9984_v38  ;;  %v7014_v37 = vpop.f32.mrb[35].mxu1 }
 0x3b1   : > { %7279 = vmatprep.mubr.msk.f32.mxu0 %vm7956_vm5, %v9968_v27 }
 0x3b3   : > { %v2790_v29 = vpop.f32.mrb[36].mxu1 }
 0x3b4   : > { %7280 = vmatmul.mubr.msk.f32.gmra.mrb[72].mxu0 %vm2651_vm7, %v9985_v33  ;;  %v7017_v25 = vpop.f32.mrb[37].mxu1 }
 0x3b5   : > { %7282 = vmatprep.mubr.msk.f32.mxu0 %vm7956_vm5, %v9968_v27 }
 0x3b7   : > { %v2795_v35 = vpop.f32.mrb[38].mxu1 }
 0x3b8   : > { %7283 = vmatmul.mubr.msk.f32.gmra.mrb[74].mxu0 %vm2651_vm7, %v9986_v7  ;;  %v7020_v42 = vpop.f32.mrb[39].mxu1  ;;  %v4913_v35 = vld [vmem:[%s9918_s4 + $0xc8] sm:$0xff] }
 0x3b9   : > { %7285 = vmatprep.mubr.msk.f32.mxu0 %vm7956_vm5, %v9968_v27  ;;  %v4914_v42 = vld [vmem:[%s9918_s4 + $0xd0] sm:$0xff] }
 0x3bb   : > { %v9630_v52 = vpop.f32.mrb[40].mxu1 }
 0x3bc   : > { %7286 = vmatmul.mubr.msk.f32.gmra.mrb[76].mxu0 %vm2651_vm7, %v9987_v49  ;;  %v7023_v41 = vpop.f32.mrb[41].mxu1 }
 0x3bd   : > { %7288 = vmatprep.mubr.msk.f32.mxu0 %vm7956_vm5, %v9968_v27  ;;  %v4915_v41 = vld [vmem:[%s9918_s4 + $0xd8] sm:$0xff] }
 0x3bf   : > { %v9636_v24 = vpop.f32.mrb[42].mxu1 }
 0x3c0   : > { %7289 = vmatmul.mubr.msk.f32.gmra.mrb[78].mxu0 %vm2651_vm7, %v9988_v2  ;;  %v7026_v15 = vpop.f32.mrb[43].mxu1 }
 0x3c1   : > { %7291 = vmatprep.mubr.msk.f32.mxu0 %vm7956_vm5, %v9968_v27 }
 0x3c3   : > { %v2810_v9 = vpop.f32.mrb[44].mxu1 }
 0x3c4   : > { %7292 = vmatmul.mubr.msk.f32.gmra.mrb[80].mxu0 %vm2651_vm7, %v9989_v3  ;;  %v7029_v51 = vpop.f32.mrb[45].mxu1  ;;  %v7574_v9 = vpack.c.bf16 %v4915_v41, %v4914_v42 }
 0x3c5   : > { %7294 = vmatprep.mubr.msk.f32.mxu0 %vm7956_vm5, %v9968_v27 }
 0x3c7   : > { %v2815_v54 = vpop.f32.mrb[46].mxu1 }
 0x3c8   : > { %7295 = vmatmul.mubr.msk.f32.gmra.mrb[82].mxu0 %vm2651_vm7, %v9990_v12  ;;  %v7032_v26 = vpop.f32.mrb[47].mxu1  ;;  %v4912_v12 = vld [vmem:[%s9918_s4 + $0xc0] sm:$0xff] }
 0x3c9   : > { %7297 = vmatprep.mubr.msk.f32.mxu0 %vm7956_vm5, %v9968_v27 }
 0x3cb   : > { %v9649_v13 = vpop.f32.mrb[48].mxu1 }
 0x3cc   : > { %7298 = vmatmul.mubr.msk.f32.gmra.mrb[84].mxu0 %vm2651_vm7, %v9991_v46  ;;  %v7035_v28 = vpop.f32.mrb[49].mxu1  ;;  %v7571_v46 = vpack.c.bf16 %v4913_v35, %v4912_v12 }
 0x3cd   : > { %7300 = vmatprep.mubr.msk.f32.mxu0 %vm7956_vm5, %v9968_v27 }
 0x3ce   : > { %7572 = vmatpush3.bf16.msra.mxu1 %v7571_v46 }
 0x3cf   : > { %v9651_v44 = vpop.f32.mrb[50].mxu1  ;;  %7573 = vmatprep.subr.bf16.mxu1 %v9973_v8 }
 0x3d0   : > { %7301 = vmatmul.mubr.msk.f32.gmra.mrb[86].mxu0 %vm2651_vm7, %v9992_v36  ;;  %v7038_v21 = vpop.f32.mrb[51].mxu1 }
 0x3d1   : > { %7303 = vmatprep.mubr.msk.f32.mxu0 %vm7956_vm5, %v9968_v27 }
 0x3d2   : > { %7575 = vmatpush3.bf16.msra.mxu1 %v7574_v9 }
 0x3d3   : > { %v2830_v40 = vpop.f32.mrb[52].mxu1  ;;  %7576 = vmatprep.subr.bf16.mxu1 %v9973_v8 }
 0x3d4   : > { %7304 = vmatmul.mubr.msk.f32.gmra.mrb[88].mxu0 %vm2651_vm7, %v9993_v30  ;;  %v7041_v11 = vpop.f32.mrb[53].mxu1 }
 0x3d5   : > { %7306 = vmatprep.mubr.msk.f32.mxu0 %vm7956_vm5, %v9968_v27 }
 0x3d7   : > { %v2835_v6 = vpop.f32.mrb[54].mxu1 }
 0x3d8   : > { %7307 = vmatmul.mubr.msk.f32.gmra.mrb[90].mxu0 %vm2651_vm7, %v9087_v59  ;;  %v7044_v45 = vpop.f32.mrb[55].mxu1 }
 0x3d9   : > { %7309 = vmatprep.mubr.msk.f32.mxu0 %vm7956_vm5, %v9968_v27 }
 0x3db   : > { %v9653_v59 = vpop.f32.mrb[56].mxu1 }
 0x3dc   : > { %7310 = vmatmul.mubr.msk.f32.gmra.mrb[92].mxu0 %vm2651_vm7, %v9995_v60  ;;  %v7047_v5 = vpop.f32.mrb[57].mxu1 }
 0x3df   : > { %v9655_v61 = vpop.f32.mrb[58].mxu1 }
 0x3e0   : > { %v7050_v16 = vpop.f32.mrb[59].mxu1 }
 0x3e3   : > { %v2850_v31 = vpop.f32.mrb[60].mxu1 }
 0x3e4   : > { %v7053_v56 = vpop.f32.mrb[61].mxu1 }
 0x3e7   : > { %v2855_v62 = vpop.f32.mrb[62].mxu1 }
 0x3e8   : > { %v7056_v50 = vpop.f32.mrb[63].mxu1 }
 0x3eb   : > { %v9657_v10 = vpop.f32.mrb[64].mxu1 }
 0x3ec   : > { %v7059_v22 = vpop.f32.mrb[65].mxu1 }
 0x3ef   : > { %v9659_v63 = vpop.f32.mrb[66].mxu1 }
 0x3f0   : > { %v7062_v57 = vpop.f32.mrb[67].mxu1 }
 0x3f3   : > { %v2870_v14 = vpop.f32.mrb[68].mxu1 }
 0x3f4   : > { %v7065_v39 = vpop.f32.mrb[69].mxu1 }
 0x3f7   : > { %v2875_v58 = vpop.f32.mrb[70].mxu1 }
 0x3f8   : > { %v7068_v20 = vpop.f32.mrb[71].mxu1 }
 0x3fb   : > { %v9661_v18 = vpop.f32.mrb[72].mxu1 }
 0x3fc   : > { %v7071_v55 = vpop.f32.mrb[73].mxu1 }
 0x3ff   : > { %v9663_v19 = vpop.f32.mrb[74].mxu1 }
 0x400   : > { %v7074_v48 = vpop.f32.mrb[75].mxu1 }
 0x403   : > { %v2890_v53 = vpop.f32.mrb[76].mxu1 }
 0x404   : > { %v7077_v43 = vpop.f32.mrb[77].mxu1 }
 0x407   : > { %v2895_v0 = vpop.f32.mrb[78].mxu1 }
 0x408   : > { %v7080_v34 = vpop.f32.mrb[79].mxu1 }
 0x40b   : > { %v9665_v1 = vpop.f32.mrb[80].mxu1 }
 0x40c   : > { %v7083_v17 = vpop.f32.mrb[81].mxu1 }
 0x40f   : > { %v9667_v38 = vpop.f32.mrb[82].mxu1 }
 0x410   : > { %v7086_v33 = vpop.f32.mrb[83].mxu1 }
 0x413   : > { %v2910_v7 = vpop.f32.mrb[84].mxu1 }
 0x414   : > { %v7089_v49 = vpop.f32.mrb[85].mxu1 }
 0x417   : > { %v2915_v23 = vpop.f32.mrb[86].mxu1 }
 0x418   : > { %v7092_v2 = vpop.f32.mrb[87].mxu1 }
 0x41b   : > { %v9669_v37 = vpop.f32.mrb[88].mxu1 }
 0x41c   : > { %v7095_v3 = vpop.f32.mrb[89].mxu1 }
 0x420   : > { %v9671_v29 = vpop.f32.mrb[90].mxu1 }
 0x421   : > { %v7098_v25 = vpop.f32.mrb[91].mxu1 }
 0x424   : > { %v2930_v36 = vpop.f32.mrb[92].mxu1  ;;  %v3292_v30 = vpop.f32.mrb[32].mxu0 }
 0x425   : > { %v7101_v15 = vpop.f32.mrb[93].mxu1  ;;  %v7624_v51 = vadd.f32 %v3292_v30, %v9610_v47  ;;  %v7221_v54 = vpop.f32.mrb[33].mxu0 }
 0x427   : > { %v3477_v26 = vmax.f32 %v7624_v51, 0.0 }
 0x428   : > { %v3713_v32 = vpop.f32.mrb[94].mxu1  ;;  %v3297_v60 = vpop.f32.mrb[34].mxu0 }
 0x429   : > { %v7318_v28 = vpop.f32.mrb[95].mxu1  ;;  %3543 = vst.msk [vmem:[#allocation3] sm:$0xff] %vm3542_vm8, %v3477_v26  ;;  %v7625_v21 = vadd.f32 %v3297_v60, %v9616_v4  ;;  %v7224_v40 = vpop.f32.mrb[35].mxu0 }
 0x42b   : > { %v3478_v11 = vmax.f32 %v7625_v21, 0.0 }
 0x42c   : > { %v3786_v6 = vpop.f32.mrb[96].mxu1  ;;  %v3302_v47 = vpop.f32.mrb[36].mxu0 }
 0x42d   : > { %v3787_v45 = vadd.f32 %v3786_v6, %v3713_v32  ;;  %v7325_v5 = vpop.f32.mrb[97].mxu1  ;;  %3544 = vst.msk [vmem:[#allocation3 + $0x8] sm:$0xff] %vm3542_vm8, %v3478_v11  ;;  %v7227_v16 = vpop.f32.mrb[37].mxu0 }
 0x430   : > { %v3307_v62 = vpop.f32.mrb[38].mxu0 }
 0x431   : > { %v7230_v22 = vpop.f32.mrb[39].mxu0 }
 0x435   : > { %v3312_v39 = vpop.f32.mrb[40].mxu0 }
 0x436   : > { %v7628_v58 = vadd.f32 %v3312_v39, %v9630_v52  ;;  %v7233_v20 = vpop.f32.mrb[41].mxu0 }
 0x437   : > { %v3894_v31 = vpop.f32.mrb[98].mxu1 }
 0x438   : > { %v3898_v56 = vadd.f32 %v3894_v31, %v3787_v45  ;;  %v7332_v50 = vpop.f32.mrb[99].mxu1  ;;  %v3481_v55 = vmax.f32 %v7628_v58, 0.0 }
 0x439   : > { %v3317_v43 = vpop.f32.mrb[42].mxu0 }
 0x43a   : > { %3547 = vst.msk [vmem:[#allocation3 + $0x20] sm:$0xff] %vm3542_vm8, %v3481_v55  ;;  %v7629_v34 = vadd.f32 %v3317_v43, %v9636_v24  ;;  %v7236_v17 = vpop.f32.mrb[43].mxu0 }
 0x43b   : > { %v4003_v57 = vpop.f32.mrb[100].mxu1 }
 0x43c   : > { %v4007_v14 = vadd.f32 %v4003_v57, %v3898_v56  ;;  %v7339_v4 = vpop.f32.mrb[101].mxu1  ;;  %v3482_v33 = vmax.f32 %v7629_v34, 0.0 }
 0x43d   : > { %v3322_v23 = vpop.f32.mrb[44].mxu0 }
 0x43e   : > { %3548 = vst.msk [vmem:[#allocation3 + $0x28] sm:$0xff] %vm3542_vm8, %v3482_v33  ;;  %v7239_v3 = vpop.f32.mrb[45].mxu0 }
 0x43f   : > { %v4112_v48 = vpop.f32.mrb[102].mxu1 }
 0x440   : > { %v4116_v53 = vadd.f32 %v4112_v48, %v4007_v14  ;;  %v7346_v0 = vpop.f32.mrb[103].mxu1 }
 0x441   : > { %v3327_v12 = vpop.f32.mrb[46].mxu0 }
 0x442   : > { %v7242_v42 = vpop.f32.mrb[47].mxu0 }
 0x445   : > { %v4221_v7 = vpop.f32.mrb[104].mxu1  ;;  %v3332_v36 = vpop.f32.mrb[48].mxu0 }
 0x446   : > { %v4225_v49 = vadd.f32 %v4221_v7, %v4116_v53  ;;  %v7353_v2 = vpop.f32.mrb[105].mxu1  ;;  %v7632_v24 = vadd.f32 %v3332_v36, %v9649_v13  ;;  %v7245_v30 = vpop.f32.mrb[49].mxu0 }
 0x448   : > { %v3485_v9 = vmax.f32 %v7632_v24, 0.0 }
 0x449   : > { %v4330_v52 = vpop.f32.mrb[106].mxu1  ;;  %v3337_v26 = vpop.f32.mrb[50].mxu0 }
 0x44a   : > { %v4334_v25 = vadd.f32 %v4330_v52, %v4225_v49  ;;  %v7360_v35 = vpop.f32.mrb[107].mxu1  ;;  %3551 = vst.msk [vmem:[#allocation3 + $0x40] sm:$0xff] %vm3542_vm8, %v3485_v9  ;;  %v7633_v60 = vadd.f32 %v3337_v26, %v9651_v44  ;;  %v7248_v28 = vpop.f32.mrb[51].mxu0 }
 0x44c   : > { %v3486_v21 = vmax.f32 %v7633_v60, 0.0 }
 0x44d   : > { %v3342_v6 = vpop.f32.mrb[52].mxu0 }
 0x44e   : > { %3552 = vst.msk [vmem:[#allocation3 + $0x48] sm:$0xff] %vm3542_vm8, %v3486_v21  ;;  %v7251_v47 = vpop.f32.mrb[53].mxu0 }
 0x44f   : > { %v4439_v46 = vpop.f32.mrb[108].mxu1  ;;  %v4881_v47 = vld [vmem:[#allocation3] ss:$32 sm:$0x2] }
 0x450   : > { %v4443_v41 = vadd.f32 %v4439_v46, %v4334_v25  ;;  %v7367_v15 = vpop.f32.mrb[109].mxu1 }
 0x451   : > { %v3347_v16 = vpop.f32.mrb[54].mxu0 }
 0x452   : > { %v7254_v56 = vpop.f32.mrb[55].mxu0 }
 0x457   : > { %v4548_v51 = vpop.f32.mrb[110].mxu1 }
 0x458   : > { %v4552_v54 = vadd.f32 %v4548_v51, %v4443_v41  ;;  %v7374_v32 = vpop.f32.mrb[111].mxu1 }
 0x461   : > { %v4657_v40 = vpop.f32.mrb[112].mxu1 }
 0x462   : > { %v4661_v11 = vadd.f32 %v4657_v40, %v4552_v54  ;;  %v7381_v45 = vpop.f32.mrb[113].mxu1 }
 0x463   : > { %v4880_v45 = vld [vmem:[#allocation3] ss:$32 sm:$0x1] }
 0x467   : > { %v3352_v22 = vpop.f32.mrb[56].mxu0 }
 0x468   : > { %v4766_v13 = vpop.f32.mrb[114].mxu1  ;;  %v7636_v44 = vadd.f32 %v3352_v22, %v9653_v59  ;;  %v7257_v14 = vpop.f32.mrb[57].mxu0  ;;  %v4882_v22 = vor.u32 %v4881_v47, %v4880_v45  ;;  %v5118_v45 = vld [vmem:[#allocation3 + $0x5] ss:$32 sm:$0x1] }
 0x469   : > { %v4770_v5 = vadd.f32 %v4766_v13, %v4661_v11  ;;  %v7388_v31 = vpop.f32.mrb[115].mxu1  ;;  %v4896_v13 = vld [vmem:[#allocation3 + $0x1] ss:$32 sm:$0x1] }
 0x46a   : > { %v3489_v39 = vmax.f32 %v7636_v44, 0.0  ;;  %v4899_v31 = vld [vmem:[#allocation3 + $0x1] ss:$32 sm:$0x4] }
 0x46b   : > { %v3357_v4 = vpop.f32.mrb[58].mxu0 }
 0x46c   : > { %3555 = vst.msk [vmem:[#allocation3 + $0x60] sm:$0xff] %vm3542_vm8, %v3489_v39  ;;  %v7637_v58 = vadd.f32 %v3357_v4, %v9655_v61  ;;  %v7260_v20 = vpop.f32.mrb[59].mxu0  ;;  %v5008_v39 = vld [vmem:[#allocation3 + $0x3] ss:$32 sm:$0x2] }
 0x46e   : > { %v4875_v62 = vpop.f32.mrb[116].mxu1  ;;  %v3490_v55 = vmax.f32 %v7637_v58, 0.0 }
 0x46f   : > { %v9699_v50 = vadd.f32 %v4875_v62, %v4770_v5  ;;  %v7395_v57 = vpop.f32.mrb[117].mxu1  ;;  %v3362_v48 = vpop.f32.mrb[60].mxu0  ;;  %v4897_v5 = vld [vmem:[#allocation3 + $0x1] ss:$32 sm:$0x2] }
 0x470   : > { %3556 = vst.msk [vmem:[#allocation3 + $0x68] sm:$0xff] %vm3542_vm8, %v3490_v55  ;;  %v7263_v53 = vpop.f32.mrb[61].mxu0  ;;  %v4992_v57 = vld [vmem:[#allocation3 + $0x2] ss:$32 sm:$0x2] }
 0x471   : > { %v4991_v48 = vld [vmem:[#allocation3 + $0x2] ss:$32 sm:$0x1] }
 0x472   : > { %v4994_v53 = vld [vmem:[#allocation3 + $0x2] ss:$32 sm:$0x4] }
 0x473   : > { %v3367_v43 = vpop.f32.mrb[62].mxu0  ;;  %v4885_v44 = vld [vmem:[#allocation3] ss:$32 sm:$0x8] }
 0x474   : > { %v7266_v0 = vpop.f32.mrb[63].mxu0  ;;  %v4901_v14 = vld [vmem:[#allocation3 + $0x1] ss:$32 sm:$0x8] }
 0x477   : > { %v3372_v34 = vpop.f32.mrb[64].mxu0 }
 0x478   : > { %v7640_v17 = vadd.f32 %v3372_v34, %v9657_v10  ;;  %v7269_v33 = vpop.f32.mrb[65].mxu0  ;;  %v5007_v34 = vld [vmem:[#allocation3 + $0x3] ss:$32 sm:$0x1] }
 0x47a   : > { %v3493_v59 = vmax.f32 %v7640_v17, 0.0  ;;  %v5010_v17 = vld [vmem:[#allocation3 + $0x3] ss:$32 sm:$0x4] }
 0x47b   : > { %v3377_v7 = vpop.f32.mrb[66].mxu0 }
 0x47c   : > { %3559 = vst.msk [vmem:[#allocation3 + $0x80] sm:$0xff] %vm3542_vm8, %v3493_v59  ;;  %v7641_v49 = vadd.f32 %v3377_v7, %v9659_v63  ;;  %v7272_v23 = vpop.f32.mrb[67].mxu0 }
 0x47e   : > { %v3494_v61 = vmax.f32 %v7641_v49, 0.0  ;;  %v4996_v49 = vld [vmem:[#allocation3 + $0x2] ss:$32 sm:$0x8] }
 0x47f   : > { %v3382_v2 = vpop.f32.mrb[68].mxu0 }
 0x480   : > { %3560 = vst.msk [vmem:[#allocation3 + $0x88] sm:$0xff] %vm3542_vm8, %v3494_v61  ;;  %v7275_v3 = vpop.f32.mrb[69].mxu0  ;;  %v4993_v2 = vor.u32 %v4992_v57, %v4991_v48 }
 0x481   : > { %v5012_v3 = vld [vmem:[#allocation3 + $0x3] ss:$32 sm:$0x8] }
 0x483   : > { %v3387_v52 = vpop.f32.mrb[70].mxu0  ;;  %v4887_v20 = vld [vmem:[#allocation3] ss:$32 sm:$0x10] }
 0x484   : > { %v7278_v25 = vpop.f32.mrb[71].mxu0  ;;  %v4903_v0 = vld [vmem:[#allocation3 + $0x1] ss:$32 sm:$0x10] }
 0x487   : > { %v3392_v12 = vpop.f32.mrb[72].mxu0 }
 0x488   : > { %v7644_v35 = vadd.f32 %v3392_v12, %v9661_v18  ;;  %v7281_v42 = vpop.f32.mrb[73].mxu0 }
 0x489   : > { %v5009_v42 = vor.u32 %v5008_v39, %v5007_v34  ;;  %v5134_v34 = vld [vmem:[%s9918_s4 + $0x100] sm:$0xff] }
 0x48a   : > { %v3497_v10 = vmax.f32 %v7644_v35, 0.0 }
 0x48b   : > { %v3397_v46 = vpop.f32.mrb[74].mxu0 }
 0x48c   : > { %3563 = vst.msk [vmem:[#allocation3 + $0xa0] sm:$0xff] %vm3542_vm8, %v3497_v10  ;;  %v7645_v41 = vadd.f32 %v3397_v46, %v9663_v19  ;;  %v7284_v36 = vpop.f32.mrb[75].mxu0 }
 0x48e   : > { %v3498_v63 = vmax.f32 %v7645_v41, 0.0  ;;  %v4995_v41 = vor.u32 %v4994_v53, %v4993_v2 }
 0x48f   : > { %v3402_v15 = vpop.f32.mrb[76].mxu0 }
 0x490   : > { %3564 = vst.msk [vmem:[#allocation3 + $0xa8] sm:$0xff] %vm3542_vm8, %v3498_v63  ;;  %v7287_v24 = vpop.f32.mrb[77].mxu0  ;;  %v4998_v15 = vld [vmem:[#allocation3 + $0x2] ss:$32 sm:$0x10] }
 0x491   : > { %v5011_v24 = vor.u32 %v5010_v17, %v5009_v42  ;;  %v5135_v17 = vld [vmem:[%s9918_s4 + $0x108] sm:$0xff] }
 0x493   : > { %v3407_v30 = vpop.f32.mrb[78].mxu0  ;;  %v4889_v23 = vld [vmem:[#allocation3] ss:$32 sm:$0x20] }
 0x494   : > { %v7290_v9 = vpop.f32.mrb[79].mxu0  ;;  %v4905_v61 = vld [vmem:[#allocation3 + $0x1] ss:$32 sm:$0x20] }
 0x495   : > { %v5103_v30 = vld [vmem:[#allocation3 + $0x4] ss:$32 sm:$0x2]  ;;  %v4997_v9 = vor.u32 %v4996_v49, %v4995_v41  ;;  %v5125_v49 = vld [vmem:[#allocation3 + $0x5] ss:$32 sm:$0x10] }
 0x496   : > { %v5127_v42 = vld [vmem:[#allocation3 + $0x5] ss:$32 sm:$0x20]  ;;  %v5137_v41 = vld [vmem:[%s9918_s4 + $0x118] sm:$0xff] }
 0x497   : > { %v3412_v51 = vpop.f32.mrb[80].mxu0 }
 0x498   : > { %v7648_v54 = vadd.f32 %v3412_v51, %v9665_v1  ;;  %v7293_v26 = vpop.f32.mrb[81].mxu0  ;;  %v4883_v1 = vld [vmem:[#allocation3] ss:$32 sm:$0x4] }
 0x499   : > { %v4884_v58 = vor.u32 %v4883_v1, %v4882_v22  ;;  %v5000_v51 = vld [vmem:[#allocation3 + $0x2] ss:$32 sm:$0x20]  ;;  %v5119_v26 = vld [vmem:[#allocation3 + $0x5] ss:$32 sm:$0x2] }
 0x49a   : > { %v3501_v18 = vmax.f32 %v7648_v54, 0.0  ;;  %v5014_v54 = vld [vmem:[#allocation3 + $0x3] ss:$32 sm:$0x10]  ;;  %v5026_v1 = vld [vmem:[%s9918_s4 + $0xf8] sm:$0xff] }
 0x49b   : > { %v3417_v32 = vpop.f32.mrb[82].mxu0  ;;  %v4886_v59 = vor.u32 %v4885_v44, %v4884_v58  ;;  %v5107_v58 = vld [vmem:[#allocation3 + $0x4] ss:$32 sm:$0x8] }
 0x49c   : > { %3567 = vst.msk [vmem:[#allocation3 + $0xc0] sm:$0xff] %vm3542_vm8, %v3501_v18  ;;  %v7649_v60 = vadd.f32 %v3417_v32, %v9667_v38  ;;  %v7296_v28 = vpop.f32.mrb[83].mxu0  ;;  %v4898_v38 = vor.u32 %v4897_v5, %v4896_v13  ;;  %v5025_v5 = vld [vmem:[%s9918_s4 + $0xf0] sm:$0xff] }
 0x49d   : > { %v4888_v25 = vor.u32 %v4887_v20, %v4886_v59  ;;  %v5024_v28 = vld [vmem:[%s9918_s4 + $0xe8] sm:$0xff]  ;;  %v5120_v20 = vor.u32 %v5119_v26, %v5118_v45  ;;  %v7580_v59 = vpack.c.bf16 %v5026_v1, %v5025_v5  ;;  %v5220_v1 = vld [vmem:[#allocation3 + $0x6] ss:$32 sm:$0x10] }
 0x49e   : > { %v3502_v19 = vmax.f32 %v7649_v60, 0.0  ;;  %v4900_v55 = vor.u32 %v4899_v31, %v4898_v38  ;;  %v5023_v60 = vld [vmem:[%s9918_s4 + $0xe0] sm:$0xff]  ;;  %v5246_v45 = vld [vmem:[%s9918_s4 + $0x128] sm:$0xff] }
 0x49f   : > { %v3422_v21 = vpop.f32.mrb[84].mxu0  ;;  %v7577_v22 = vpack.c.bf16 %v5024_v28, %v5023_v60  ;;  %v5234_v28 = vld [vmem:[#allocation3 + $0x7] ss:$32 sm:$0x8] }
 0x4a0   : > { %3568 = vst.msk [vmem:[#allocation3 + $0xc8] sm:$0xff] %vm3542_vm8, %v3502_v19  ;;  %v7299_v40 = vpop.f32.mrb[85].mxu0  ;;  %v4902_v7 = vor.u32 %v4901_v14, %v4900_v55  ;;  %v5013_v19 = vor.u32 %v5012_v3, %v5011_v24  ;;  %v5016_v21 = vld [vmem:[#allocation3 + $0x3] ss:$32 sm:$0x20]  ;;  %v7583_v24 = vpack.c.bf16 %v5135_v17, %v5134_v34 }
 0x4a1   : > { %v5102_v40 = vld [vmem:[#allocation3 + $0x4] ss:$32 sm:$0x1]  ;;  %v5123_v55 = vld [vmem:[#allocation3 + $0x5] ss:$32 sm:$0x8] }
 0x4a2   : > { %v4904_v35 = vor.u32 %v4903_v0, %v4902_v7  ;;  %v5015_v31 = vor.u32 %v5014_v54, %v5013_v19  ;;  %v5104_v44 = vor.u32 %v5103_v30, %v5102_v40  ;;  %v5109_v7 = vld [vmem:[#allocation3 + $0x4] ss:$32 sm:$0x10] }
 0x4a3   : > { %v3427_v11 = vpop.f32.mrb[86].mxu0  ;;  %v4891_v12 = vld [vmem:[#allocation3] ss:$32 sm:$0x40] }
 0x4a4   : > { %v7302_v6 = vpop.f32.mrb[87].mxu0  ;;  %v4907_v46 = vld [vmem:[#allocation3 + $0x1] ss:$32 sm:$0x40]  ;;  %v4906_v63 = vor.u32 %v4905_v61, %v4904_v35 }
 0x4a5   : > { %v5002_v38 = vld [vmem:[#allocation3 + $0x2] ss:$32 sm:$0x40]  ;;  %v5018_v57 = vld [vmem:[#allocation3 + $0x3] ss:$32 sm:$0x40] }
 0x4a6   : > { %v4908_v32 = vor.u32 %v4907_v46, %v4906_v63  ;;  %v5111_v35 = vld [vmem:[#allocation3 + $0x4] ss:$32 sm:$0x20]  ;;  %v5136_v46 = vld [vmem:[%s9918_s4 + $0x110] sm:$0xff] }
 0x4a7   : > { %v3432_v16 = vpop.f32.mrb[88].mxu0  ;;  %v5216_v63 = vld [vmem:[#allocation3 + $0x6] ss:$32 sm:$0x4]  ;;  %v7586_v5 = vpack.c.bf16 %v5137_v41, %v5136_v46 }
 0x4a8   : > { %v7652_v56 = vadd.f32 %v3432_v16, %v9669_v37  ;;  %v7305_v62 = vpop.f32.mrb[89].mxu0  ;;  %v4999_v16 = vor.u32 %v4998_v15, %v4997_v9  ;;  %v5232_v15 = vld [vmem:[#allocation3 + $0x7] ss:$32 sm:$0x4] }
 0x4a9   : > { %v5121_v62 = vld [vmem:[#allocation3 + $0x5] ss:$32 sm:$0x4]  ;;  %v5113_v30 = vld [vmem:[#allocation3 + $0x4] ss:$32 sm:$0x40] }
 0x4aa   : > { %v3505_v4 = vmax.f32 %v7652_v56, 0.0  ;;  %v5105_v56 = vld [vmem:[#allocation3 + $0x4] ss:$32 sm:$0x4]  ;;  %v5001_v39 = vor.u32 %v5000_v51, %v4999_v16 }
 0x4ab   : > { %v3437_v43 = vpop.f32.mrb[90].mxu0  ;;  %v5129_v9 = vld [vmem:[#allocation3 + $0x5] ss:$32 sm:$0x40] }
 0x4ac   : > { %3571 = vst.msk [vmem:[#allocation3 + $0xe0] sm:$0xff] %vm3542_vm8, %v3505_v4  ;;  %v7653_v37 = vadd.f32 %v3437_v43, %v9671_v29  ;;  %v7308_v33 = vpop.f32.mrb[91].mxu0  ;;  %v4890_v29 = vor.u32 %v4889_v23, %v4888_v25  ;;  %v5017_v4 = vor.u32 %v5016_v21, %v5015_v31  ;;  %v5003_v43 = vor.u32 %v5002_v38, %v5001_v39  ;;  %v5214_v25 = vld [vmem:[#allocation3 + $0x6] ss:$32 sm:$0x2] }
 0x4ad   : > { %v5122_v33 = vor.u32 %v5121_v62, %v5120_v20  ;;  %v5236_v16 = vld [vmem:[#allocation3 + $0x7] ss:$32 sm:$0x10]  ;;  %v5324_v38 = vld [vmem:[#allocation3 + $0x8] ss:$32 sm:$0x1] }
 0x4ae   : > { %v3506_v52 = vmax.f32 %v7653_v37, 0.0  ;;  %v4892_v18 = vor.u32 %v4891_v12, %v4890_v29  ;;  %v5019_v0 = vor.u32 %v5018_v57, %v5017_v4  ;;  %v5106_v37 = vor.u32 %v5105_v56, %v5104_v44  ;;  %v5230_v12 = vld [vmem:[#allocation3 + $0x7] ss:$32 sm:$0x2]  ;;  %v5248_v20 = vld [vmem:[%s9918_s4 + $0x138] sm:$0xff] }
 0x4af   : > { %v3442_v10 = vpop.f32.mrb[92].mxu0  ;;  %v5124_v3 = vor.u32 %v5123_v55, %v5122_v33  ;;  %v5325_v57 = vld [vmem:[#allocation3 + $0x8] ss:$32 sm:$0x2] }
 0x4b0   : > { %3572 = vst.msk [vmem:[#allocation3 + $0xe8] sm:$0xff] %vm3542_vm8, %v3506_v52  ;;  %v7311_v36 = vpop.f32.mrb[93].mxu0  ;;  %v5108_v2 = vor.u32 %v5107_v58, %v5106_v37  ;;  %v5213_v52 = vld [vmem:[#allocation3 + $0x6] ss:$32 sm:$0x1]  ;;  %v5247_v58 = vld [vmem:[%s9918_s4 + $0x130] sm:$0xff]  ;;  %v5326_v37 = vor.u32 %v5325_v57, %v5324_v38 }
 0x4b1   : > { %v5229_v10 = vld [vmem:[#allocation3 + $0x7] ss:$32 sm:$0x1]  ;;  %v5126_v29 = vor.u32 %v5125_v49, %v5124_v3  ;;  %v5215_v51 = vor.u32 %v5214_v25, %v5213_v52  ;;  %v5341_v44 = vld [vmem:[#allocation3 + $0x9] ss:$32 sm:$0x2]  ;;  %v7592_v46 = vpack.c.bf16 %v5248_v20, %v5247_v58 }
 0x4b2   : > { %v5110_v36 = vor.u32 %v5109_v7, %v5108_v2  ;;  %v5231_v60 = vor.u32 %v5230_v12, %v5229_v10  ;;  %v5238_v39 = vld [vmem:[#allocation3 + $0x7] ss:$32 sm:$0x20]  ;;  %v5340_v4 = vld [vmem:[#allocation3 + $0x9] ss:$32 sm:$0x1] }
 0x4b3   : > { %v4893_v11 = vld [vmem:[#allocation3] ss:$32 sm:$0x80]  ;;  %v4909_v6 = vld [vmem:[#allocation3 + $0x1] ss:$32 sm:$0x80] }
 0x4b4   : > { %v4894_v47 = vor.u32 %v4893_v11, %v4892_v18  ;;  %v4910_v13 = vor.u32 %v4909_v6, %v4908_v32  ;;  %v5004_v48 = vld [vmem:[#allocation3 + $0x2] ss:$32 sm:$0x80]  ;;  %v5020_v53 = vld [vmem:[#allocation3 + $0x3] ss:$32 sm:$0x80]  ;;  %v5112_v26 = vor.u32 %v5111_v35, %v5110_v36  ;;  %v5128_v18 = vor.u32 %v5127_v42, %v5126_v29 }
 0x4b5   : > { %v5005_v23 = vor.u32 %v5004_v48, %v5003_v43  ;;  %v5021_v61 = vor.u32 %v5020_v53, %v5019_v0  ;;  %v5218_v32 = vld [vmem:[#allocation3 + $0x6] ss:$32 sm:$0x8]  ;;  %v5115_v19 = vld [vmem:[#allocation3 + $0x4] ss:$32 sm:$0x80] }
 0x4b6   : > { %v4911_v14 = vmax.f32 %v4894_v47, %v4910_v13  ;;  %v5131_v21 = vld [vmem:[#allocation3 + $0x5] ss:$32 sm:$0x80]  ;;  %v5114_v40 = vor.u32 %v5113_v30, %v5112_v26  ;;  %v5130_v11 = vor.u32 %v5129_v9, %v5128_v18  ;;  %v5217_v47 = vor.u32 %v5216_v63, %v5215_v51  ;;  %v5327_v53 = vld [vmem:[#allocation3 + $0x8] ss:$32 sm:$0x4] }
 0x4b7   : > { %v5022_v54 = vmax.f32 %v5005_v23, %v5021_v61  ;;  %v5245_v6 = vld [vmem:[%s9918_s4 + $0x120] sm:$0xff]  ;;  %v5233_v13 = vor.u32 %v5232_v15, %v5231_v60  ;;  %v5343_v43 = vld [vmem:[#allocation3 + $0x9] ss:$32 sm:$0x4]  ;;  %v5342_v23 = vor.u32 %v5341_v44, %v5340_v4  ;;  %v5328_v42 = vor.u32 %v5327_v53, %v5326_v37  ;;  %v5359_v60 = vld [vmem:[%s9918_s4 + $0x158] sm:$0xff] }
 0x4b8   : > { %7405 = vmatmul.mubr.msk.f32.vlgmr.msra.gmra.mrb[118].mxu1 %vm3542_vm8, %v4911_v14  ;;  %v5116_v31 = vor.u32 %v5115_v19, %v5114_v40  ;;  %v5132_v56 = vor.u32 %v5131_v21, %v5130_v11  ;;  %v5219_v62 = vor.u32 %v5218_v32, %v5217_v47  ;;  %v5222_v14 = vld [vmem:[#allocation3 + $0x6] ss:$32 sm:$0x20]  ;;  %v7589_v0 = vpack.c.bf16 %v5246_v45, %v5245_v6  ;;  %v5240_v17 = vld [vmem:[#allocation3 + $0x7] ss:$32 sm:$0x40] }
 0x4b9   : > { %7578 = vmatpush3.bf16.msra.mxu1 %v7577_v22  ;;  %7415 = vmatprep.mubr.msk.f32.mxu1 %vm7956_vm5, %v9968_v27  ;;  %v5235_v22 = vor.u32 %v5234_v28, %v5233_v13  ;;  %v5224_v34 = vld [vmem:[#allocation3 + $0x6] ss:$32 sm:$0x40]  ;;  %v5329_v49 = vld [vmem:[#allocation3 + $0x8] ss:$32 sm:$0x8]  ;;  %v5344_v10 = vor.u32 %v5343_v43, %v5342_v23 }
 0x4ba   : > { %7579 = vmatprep.subr.bf16.mxu1 %v9973_v8  ;;  %v5221_v55 = vor.u32 %v5220_v1, %v5219_v62  ;;  %v5133_v33 = vmax.f32 %v5116_v31, %v5132_v56  ;;  %v5345_v61 = vld [vmem:[#allocation3 + $0x9] ss:$32 sm:$0x8]  ;;  %v5226_v2 = vld [vmem:[#allocation3 + $0x6] ss:$32 sm:$0x80]  ;;  %v5330_v15 = vor.u32 %v5329_v49, %v5328_v42 }
 0x4bb   : > { %v5237_v48 = vor.u32 %v5236_v16, %v5235_v22  ;;  %v5242_v3 = vld [vmem:[#allocation3 + $0x7] ss:$32 sm:$0x80]  ;;  %v5357_v35 = vld [vmem:[%s9918_s4 + $0x148] sm:$0xff]  ;;  %v5358_v32 = vld [vmem:[%s9918_s4 + $0x150] sm:$0xff] }
 0x4bc   : > { %v5356_v12 = vld [vmem:[%s9918_s4 + $0x140] sm:$0xff]  ;;  %v5331_v41 = vld [vmem:[#allocation3 + $0x8] ss:$32 sm:$0x10]  ;;  %v7598_v58 = vpack.c.bf16 %v5359_v60, %v5358_v32  ;;  %v5469_v49 = vld [vmem:[%s9918_s4 + $0x170] sm:$0xff] }
 0x4bd   : > { %7581 = vmatpush3.bf16.msra.mxu1 %v7580_v59  ;;  %v5223_v59 = vor.u32 %v5222_v14, %v5221_v55  ;;  %v5239_v7 = vor.u32 %v5238_v39, %v5237_v48  ;;  %v5347_v36 = vld [vmem:[#allocation3 + $0x9] ss:$32 sm:$0x10]  ;;  %v5435_v30 = vld [vmem:[#allocation3 + $0xa] ss:$32 sm:$0x1]  ;;  %v5332_v28 = vor.u32 %v5331_v41, %v5330_v15  ;;  %v7595_v11 = vpack.c.bf16 %v5357_v35, %v5356_v12 }
 0x4be   : > { %7582 = vmatprep.subr.bf16.mxu1 %v9973_v8  ;;  %v5436_v9 = vld [vmem:[#allocation3 + $0xa] ss:$32 sm:$0x2]  ;;  %v5452_v51 = vld [vmem:[#allocation3 + $0xb] ss:$32 sm:$0x2] }
 0x4bf   : > { %v5225_v52 = vor.u32 %v5224_v34, %v5223_v59  ;;  %v5241_v25 = vor.u32 %v5240_v17, %v5239_v7  ;;  %v5349_v26 = vld [vmem:[#allocation3 + $0x9] ss:$32 sm:$0x20]  ;;  %v5451_v18 = vld [vmem:[#allocation3 + $0xb] ss:$32 sm:$0x1]  ;;  %v5437_v47 = vor.u32 %v5436_v9, %v5435_v30 }
 0x4c0   : > { %7416 = vmatmul.mubr.msk.f32.vlgmr.msra.gmra.mrb[120].mxu1 %vm3542_vm8, %v5022_v54  ;;  %v5333_v54 = vld [vmem:[#allocation3 + $0x8] ss:$32 sm:$0x20]  ;;  %v5438_v21 = vld [vmem:[#allocation3 + $0xa] ss:$32 sm:$0x4]  ;;  %v5453_v31 = vor.u32 %v5452_v51, %v5451_v18 }
 0x4c1   : > { %7584 = vmatpush3.bf16.msra.mxu1 %v7583_v24  ;;  %7426 = vmatprep.mubr.msk.f32.mxu1 %vm7956_vm5, %v9968_v27  ;;  %v5227_v29 = vor.u32 %v5226_v2, %v5225_v52  ;;  %v5243_v63 = vor.u32 %v5242_v3, %v5241_v25  ;;  %v5346_v24 = vor.u32 %v5345_v61, %v5344_v10  ;;  %v5454_v40 = vld [vmem:[#allocation3 + $0xb] ss:$32 sm:$0x4]  ;;  %v5335_v6 = vld [vmem:[#allocation3 + $0x8] ss:$32 sm:$0x40] }
 0x4c2   : > { %7585 = vmatprep.subr.bf16.mxu1 %v9973_v8  ;;  %v5351_v45 = vld [vmem:[#allocation3 + $0x9] ss:$32 sm:$0x40]  ;;  %v5440_v16 = vld [vmem:[#allocation3 + $0xa] ss:$32 sm:$0x8]  ;;  %v5439_v39 = vor.u32 %v5438_v21, %v5437_v47  ;;  %v5455_v4 = vor.u32 %v5454_v40, %v5453_v31 }
 0x4c3   : > { %v5348_v19 = vor.u32 %v5347_v36, %v5346_v24  ;;  %v5244_v13 = vmax.f32 %v5227_v29, %v5243_v63  ;;  %v5456_v56 = vld [vmem:[#allocation3 + $0xb] ss:$32 sm:$0x8]  ;;  %v5337_v62 = vld [vmem:[#allocation3 + $0x8] ss:$32 sm:$0x80] }
 0x4c4   : > { %v5353_v22 = vld [vmem:[#allocation3 + $0x9] ss:$32 sm:$0x80]  ;;  %v5467_v44 = vld [vmem:[%s9918_s4 + $0x160] sm:$0xff]  ;;  %v5441_v43 = vor.u32 %v5440_v16, %v5439_v39  ;;  %v5470_v23 = vld [vmem:[%s9918_s4 + $0x178] sm:$0xff] }
 0x4c5   : > { %7587 = vmatpush3.bf16.msra.mxu1 %v7586_v5  ;;  %v5334_v5 = vor.u32 %v5333_v54, %v5332_v28  ;;  %v5350_v1 = vor.u32 %v5349_v26, %v5348_v19  ;;  %v5468_v14 = vld [vmem:[%s9918_s4 + $0x168] sm:$0xff]  ;;  %v7604_v18 = vpack.c.bf16 %v5470_v23, %v5469_v49  ;;  %v5578_v21 = vld [vmem:[%s9918_s4 + $0x180] sm:$0xff]  ;;  %v5580_v16 = vld [vmem:[%s9918_s4 + $0x190] sm:$0xff] }
 0x4c6   : > { %7588 = vmatprep.subr.bf16.mxu1 %v9973_v8  ;;  %v5442_v20 = vld [vmem:[#allocation3 + $0xa] ss:$32 sm:$0x10]  ;;  %v5458_v55 = vld [vmem:[#allocation3 + $0xb] ss:$32 sm:$0x10]  ;;  %v7601_v25 = vpack.c.bf16 %v5468_v14, %v5467_v44 }
 0x4c7   : > { %v5336_v38 = vor.u32 %v5335_v6, %v5334_v5  ;;  %v5352_v57 = vor.u32 %v5351_v45, %v5350_v1  ;;  %v5546_v34 = vld [vmem:[#allocation3 + $0xc] ss:$32 sm:$0x1]  ;;  %v5563_v37 = vld [vmem:[#allocation3 + $0xd] ss:$32 sm:$0x2]  ;;  %v5443_v61 = vor.u32 %v5442_v20, %v5441_v43 }
 0x4c8   : > { %7427 = vmatmul.mubr.msk.f32.vlgmr.msra.gmra.mrb[122].mxu1 %vm3542_vm8, %v5133_v33  ;;  %v5547_v17 = vld [vmem:[#allocation3 + $0xc] ss:$32 sm:$0x2]  ;;  %v5444_v33 = vld [vmem:[#allocation3 + $0xa] ss:$32 sm:$0x20] }
 0x4c9   : > { %7590 = vmatpush3.bf16.msra.mxu1 %v7589_v0  ;;  %7437 = vmatprep.mubr.msk.f32.mxu1 %vm7956_vm5, %v9968_v27  ;;  %v5338_v48 = vor.u32 %v5337_v62, %v5336_v38  ;;  %v5354_v53 = vor.u32 %v5353_v22, %v5352_v57  ;;  %v5457_v0 = vor.u32 %v5456_v56, %v5455_v4  ;;  %v5460_v59 = vld [vmem:[#allocation3 + $0xb] ss:$32 sm:$0x20]  ;;  %v5562_v7 = vld [vmem:[#allocation3 + $0xd] ss:$32 sm:$0x1] }
 0x4ca   : > { %7591 = vmatprep.subr.bf16.mxu1 %v9973_v8  ;;  %v5549_v3 = vld [vmem:[#allocation3 + $0xc] ss:$32 sm:$0x4]  ;;  %v5565_v52 = vld [vmem:[#allocation3 + $0xd] ss:$32 sm:$0x4]  ;;  %v5548_v42 = vor.u32 %v5547_v17, %v5546_v34  ;;  %v5564_v29 = vor.u32 %v5563_v37, %v5562_v7 }
 0x4cb   : > { %v5459_v2 = vor.u32 %v5458_v55, %v5457_v0  ;;  %v5446_v12 = vld [vmem:[#allocation3 + $0xa] ss:$32 sm:$0x40]  ;;  %v5462_v35 = vld [vmem:[#allocation3 + $0xb] ss:$32 sm:$0x40]  ;;  %v5355_v10 = vmax.f32 %v5338_v48, %v5354_v53 }
 0x4cc   : > { %v5551_v36 = vld [vmem:[#allocation3 + $0xc] ss:$32 sm:$0x8]  ;;  %v5567_v63 = vld [vmem:[#allocation3 + $0xd] ss:$32 sm:$0x8]  ;;  %v5550_v51 = vor.u32 %v5549_v3, %v5548_v42  ;;  %v5566_v54 = vor.u32 %v5565_v52, %v5564_v29 }
 0x4cd   : > { %7593 = vmatpush3.bf16.msra.mxu1 %v7592_v46  ;;  %v5445_v46 = vor.u32 %v5444_v33, %v5443_v61  ;;  %v5461_v41 = vor.u32 %v5460_v59, %v5459_v2  ;;  %v5448_v15 = vld [vmem:[#allocation3 + $0xa] ss:$32 sm:$0x80]  ;;  %v5464_v24 = vld [vmem:[#allocation3 + $0xb] ss:$32 sm:$0x80] }
 0x4ce   : > { %7594 = vmatprep.subr.bf16.mxu1 %v9973_v8  ;;  %v5658_v26 = vld [vmem:[#allocation3 + $0xe] ss:$32 sm:$0x2]  ;;  %v5553_v32 = vld [vmem:[#allocation3 + $0xc] ss:$32 sm:$0x10]  ;;  %v5568_v6 = vor.u32 %v5567_v63, %v5566_v54 }
 0x4cf   : > { %v5447_v30 = vor.u32 %v5446_v12, %v5445_v46  ;;  %v5463_v9 = vor.u32 %v5462_v35, %v5461_v41  ;;  %v5569_v60 = vld [vmem:[#allocation3 + $0xd] ss:$32 sm:$0x10]  ;;  %v5657_v45 = vld [vmem:[#allocation3 + $0xe] ss:$32 sm:$0x1] }
 0x4d0   : > { %7438 = vmatmul.mubr.msk.f32.vlgmr.msra.gmra.mrb[124].mxu1 %vm3542_vm8, %v5244_v13  ;;  %v5579_v40 = vld [vmem:[%s9918_s4 + $0x188] sm:$0xff]  ;;  %v5581_v31 = vld [vmem:[%s9918_s4 + $0x198] sm:$0xff]  ;;  %v5570_v62 = vor.u32 %v5569_v60, %v5568_v6  ;;  %v5659_v39 = vor.u32 %v5658_v26, %v5657_v45  ;;  %v5689_v2 = vld [vmem:[%s9918_s4 + $0x1a0] sm:$0xff] }
 0x4d1   : > { %7596 = vmatpush3.bf16.msra.mxu1 %v7595_v11  ;;  %7448 = vmatprep.mubr.msk.f32.mxu1 %vm7956_vm5, %v9968_v27  ;;  %v5449_v28 = vor.u32 %v5448_v15, %v5447_v30  ;;  %v5465_v19 = vor.u32 %v5464_v24, %v5463_v9  ;;  %v5552_v11 = vor.u32 %v5551_v36, %v5550_v51  ;;  %v5674_v47 = vld [vmem:[#allocation3 + $0xf] ss:$32 sm:$0x2]  ;;  %v5555_v13 = vld [vmem:[#allocation3 + $0xc] ss:$32 sm:$0x20] }
 0x4d2   : > { %7597 = vmatprep.subr.bf16.mxu1 %v9973_v8  ;;  %v5571_v5 = vld [vmem:[#allocation3 + $0xd] ss:$32 sm:$0x20]  ;;  %v5673_v1 = vld [vmem:[#allocation3 + $0xf] ss:$32 sm:$0x1]  ;;  %v7607_v57 = vpack.c.bf16 %v5579_v40, %v5578_v21  ;;  %v7610_v59 = vpack.c.bf16 %v5581_v31, %v5580_v16 }
 0x4d3   : > { %v5554_v56 = vor.u32 %v5553_v32, %v5552_v11  ;;  %v5660_v22 = vld [vmem:[#allocation3 + $0xe] ss:$32 sm:$0x4]  ;;  %v5676_v38 = vld [vmem:[#allocation3 + $0xf] ss:$32 sm:$0x4]  ;;  %v5466_v4 = vmax.f32 %v5449_v28, %v5465_v19  ;;  %v5572_v20 = vor.u32 %v5571_v5, %v5570_v62  ;;  %v5675_v48 = vor.u32 %v5674_v47, %v5673_v1 }
 0x4d4   : > { %v5557_v44 = vld [vmem:[#allocation3 + $0xc] ss:$32 sm:$0x40]  ;;  %v5573_v14 = vld [vmem:[#allocation3 + $0xd] ss:$32 sm:$0x40]  ;;  %v5661_v37 = vor.u32 %v5660_v22, %v5659_v39 }
 0x4d5   : > { %7599 = vmatpush3.bf16.msra.mxu1 %v7598_v58  ;;  %v5556_v58 = vor.u32 %v5555_v13, %v5554_v56  ;;  %v5662_v55 = vld [vmem:[#allocation3 + $0xe] ss:$32 sm:$0x8]  ;;  %v5678_v53 = vld [vmem:[#allocation3 + $0xf] ss:$32 sm:$0x8]  ;;  %v5574_v17 = vor.u32 %v5573_v14, %v5572_v20  ;;  %v5677_v33 = vor.u32 %v5676_v38, %v5675_v48 }
 0x4d6   : > { %7600 = vmatprep.subr.bf16.mxu1 %v9973_v8  ;;  %v5559_v43 = vld [vmem:[#allocation3 + $0xc] ss:$32 sm:$0x80]  ;;  %v5575_v0 = vld [vmem:[#allocation3 + $0xd] ss:$32 sm:$0x80]  ;;  %v5663_v52 = vor.u32 %v5662_v55, %v5661_v37 }
 0x4d7   : > { %v5558_v34 = vor.u32 %v5557_v44, %v5556_v58  ;;  %v5664_v7 = vld [vmem:[#allocation3 + $0xe] ss:$32 sm:$0x10]  ;;  %v5680_v49 = vld [vmem:[#allocation3 + $0xf] ss:$32 sm:$0x10]  ;;  %v5576_v61 = vor.u32 %v5575_v0, %v5574_v17 }
 0x4d8   : > { %7449 = vmatmul.mubr.msk.f32.vlgmr.msra.gmra.mrb[126].mxu1 %vm3542_vm8, %v5355_v10  ;;  %v5690_v3 = vld [vmem:[%s9918_s4 + $0x1a8] sm:$0xff]  ;;  %v5665_v42 = vor.u32 %v5664_v7, %v5663_v52  ;;  %v5691_v63 = vld [vmem:[%s9918_s4 + $0x1b0] sm:$0xff]  ;;  %v5692_v15 = vld [vmem:[%s9918_s4 + $0x1b8] sm:$0xff] }
 0x4d9   : > { %7602 = vmatpush3.bf16.msra.mxu1 %v7601_v25  ;;  %7459 = vmatprep.mubr.msk.f32.mxu1 %vm7956_vm5, %v9968_v27  ;;  %v5560_v23 = vor.u32 %v5559_v43, %v5558_v34  ;;  %v5679_v25 = vor.u32 %v5678_v53, %v5677_v33  ;;  %v5666_v12 = vld [vmem:[#allocation3 + $0xe] ss:$32 sm:$0x20]  ;;  %v5682_v35 = vld [vmem:[#allocation3 + $0xf] ss:$32 sm:$0x20]  ;;  %v7613_v46 = vpack.c.bf16 %v5690_v3, %v5689_v2 }
 0x4da   : > { %7603 = vmatprep.subr.bf16.mxu1 %v9973_v8  ;;  %v5668_v41 = vld [vmem:[#allocation3 + $0xe] ss:$32 sm:$0x40]  ;;  %v5684_v36 = vld [vmem:[#allocation3 + $0xf] ss:$32 sm:$0x40]  ;;  %v5667_v24 = vor.u32 %v5666_v12, %v5665_v42 }
 0x4db   : > { %v5681_v10 = vor.u32 %v5680_v49, %v5679_v25  ;;  %v5577_v29 = vmax.f32 %v5560_v23, %v5576_v61  ;;  %v5670_v9 = vld [vmem:[#allocation3 + $0xe] ss:$32 sm:$0x80]  ;;  %v5686_v51 = vld [vmem:[#allocation3 + $0xf] ss:$32 sm:$0x80] }
 0x4dc   : > { %v5669_v54 = vor.u32 %v5668_v41, %v5667_v24  ;;  %v5775_v19 = vld [vmem:[%s9920_s6] sm:$0xff]  ;;  %v5776_v21 = vld [vmem:[%s9920_s6 + $0x8] sm:$0xff]  ;;  %v5777_v11 = vld [vmem:[%s9920_s6 + $0x10] sm:$0xff] }
 0x4dd   : > { %7605 = vmatpush3.bf16.msra.mxu1 %v7604_v18  ;;  %v5683_v30 = vor.u32 %v5682_v35, %v5681_v10  ;;  %v7616_v18 = vpack.c.bf16 %v5692_v15, %v5691_v63  ;;  %v7619_v40 = vpack.c.bf16 %v5776_v21, %v5775_v19  ;;  %v6282_v53 = vld [vmem:[%s9919_s5] ss:$0 sm:$0xff] }
 0x4de   : > { %7606 = vmatprep.subr.bf16.mxu1 %v9973_v8  ;;  %v5671_v32 = vor.u32 %v5670_v9, %v5669_v54  ;;  %v6283_v17 = vld [vmem:[%s9921_s7] ss:$0 sm:$0xff] }
 0x4df   : > { %v5685_v26 = vor.u32 %v5684_v36, %v5683_v30 }
 0x4e0   : > { %7460 = vmatmul.mubr.msk.f32.vlgmr.msra.gmra.mrb[128].mxu1 %vm3542_vm8, %v5466_v4 }
 0x4e1   : > { %7608 = vmatpush3.bf16.msra.mxu1 %v7607_v57  ;;  %7470 = vmatprep.mubr.msk.f32.mxu1 %vm7956_vm5, %v9968_v27  ;;  %v5687_v60 = vor.u32 %v5686_v51, %v5685_v26 }
 0x4e2   : > { %7609 = vmatprep.subr.bf16.mxu1 %v9973_v8 }
 0x4e3   : > { %v5688_v28 = vmax.f32 %v5671_v32, %v5687_v60 }
 0x4e5   : > { %7611 = vmatpush3.bf16.msra.mxu1 %v7610_v59 }
 0x4e6   : > { %7612 = vmatprep.subr.bf16.mxu1 %v9973_v8 }
 0x4e8   : > { %7471 = vmatmul.mubr.msk.f32.vlgmr.msra.gmra.mrb[130].mxu1 %vm3542_vm8, %v5577_v29 }
 0x4e9   : > { %7614 = vmatpush3.bf16.msra.mxu1 %v7613_v46  ;;  %7481 = vmatprep.mubr.msk.f32.mxu1 %vm7956_vm5, %v9968_v27 }
 0x4ea   : > { %7615 = vmatprep.subr.bf16.mxu1 %v9973_v8 }
 0x4ed   : > { %7617 = vmatpush3.bf16.msra.mxu1 %v7616_v18 }
 0x4ee   : > { %7618 = vmatprep.subr.bf16.mxu1 %v9973_v8 }
 0x4f0   : > { %7482 = vmatmul.mubr.msk.f32.vlgmr.msra.gmra.mrb[132].mxu1 %vm3542_vm8, %v5688_v28 }
 0x4f1   : > { %7492 = vmatprep.mubr.msk.f32.mxu1 %vm7956_vm5, %v9968_v27  ;;  %7620 = vmatpush3.bf16.msra.mxu1 %v7619_v40  ;;  %v5778_v27 = vld [vmem:[%s9920_s6 + $0x18] sm:$0xff] }
 0x4f2   : > { %7621 = vmatprep.subr.bf16.mxu1 %v9973_v8  ;;  %v7622_v6 = vpack.c.bf16 %v5778_v27, %v5777_v11 }
 0x4f5   : > { %7623 = vmatpush3.bf16.msra.mxu1 %v7622_v6 }
 0x58b   : > { %v4985_v45 = vpop.f32.mrb[118].mxu1 }
 0x58c   : > { %v4989_v47 = vadd.f32 %v4985_v45, %v9699_v50  ;;  %v7406_v13 = vpop.f32.mrb[119].mxu1 }
 0x593   : > { %v5096_v5 = vpop.f32.mrb[120].mxu1 }
 0x594   : > { %v5100_v1 = vadd.f32 %v5096_v5, %v4989_v47  ;;  %v7417_v16 = vpop.f32.mrb[121].mxu1 }
 0x59b   : > { %v5207_v31 = vpop.f32.mrb[122].mxu1 }
 0x59c   : > { %v5211_v56 = vadd.f32 %v5207_v31, %v5100_v1  ;;  %v7428_v8 = vpop.f32.mrb[123].mxu1 }
 0x5a3   : > { %v5318_v62 = vpop.f32.mrb[124].mxu1 }
 0x5a4   : > { %v5322_v22 = vadd.f32 %v5318_v62, %v5211_v56  ;;  %v7439_v38 = vpop.f32.mrb[125].mxu1 }
 0x5ab   : > { %v5429_v57 = vpop.f32.mrb[126].mxu1 }
 0x5ac   : > { %v5433_v44 = vadd.f32 %v5429_v57, %v5322_v22  ;;  %v7450_v14 = vpop.f32.mrb[127].mxu1 }
 0x5b3   : > { %v5540_v39 = vpop.f32.mrb[128].mxu1 }
 0x5b4   : > { %v5544_v4 = vadd.f32 %v5540_v39, %v5433_v44  ;;  %v7461_v58 = vpop.f32.mrb[129].mxu1 }
 0x5bb   : > { %v5651_v20 = vpop.f32.mrb[130].mxu1 }
 0x5bc   : > { %v5655_v55 = vadd.f32 %v5651_v20, %v5544_v4  ;;  %v7472_v48 = vpop.f32.mrb[131].mxu1 }
 0x5c3   : > { %v5762_v50 = vpop.f32.mrb[132].mxu1 }
 0x5c4   : > { %v5766_v43 = vadd.f32 %v5762_v50, %v5655_v55  ;;  %v7483_v0 = vpop.f32.mrb[133].mxu1 }
 0x5c6   : > { %v5774_v34 = vadd.f32 %v6282_v53, %v5766_v43 }
 0x5c8   : > { %7493 = vmatmul.mubr.msk.f32.vlgmr.msra.gmra.mrb[134].mxu1 %vm3542_vm8, %v5774_v34 }
 0x69b   : > { %v5855_v37 = vpop.f32.mrb[134].mxu1 }
 0x69c   : > { %v5856_v33 = vadd.f32 %v6283_v17, %v5855_v37  ;;  %v7494_v59 = vpop.f32.mrb[135].mxu1 }
 0x69e   : > { %v5859_v7 = vsel %vm3508_vm6, %v5856_v33, -inf }
 0x69f   : > { %5860 = vmax.xlane.f32.xlu0 %v5859_v7 }
 0x72c   : > { %v5861_v49 = vpop.xlane.xlu0 %5860 }
 0x72d   : > { %v5862_v23 = vsub.f32 %v5856_v33, %v5861_v49 }
 0x72f   : > { %v5863_v61 = vmul.f32 1.442695, %v5862_v23 }
 0x731   : > { %7887 = vpow2.f32 %v5863_v61 }
 0x73b   : > { %v7888_v2 = vpop.eup %7887 }
 0x73c   : > { %v5865_v3 = vsel %vm3508_vm6, %v7888_v2, 0.0 }
 0x73d   : > { %5866 = vadd.xlane.f32.xlu0 %v5865_v3 }
 0x7ca   : > { %v5867_v52 = vpop.xlane.xlu0 %5866 }
 0x7cb   : > { %7889 = vrcp.f32 %v5867_v52 }
 0x7d5   : > { %v7890_v25 = vpop.eup %7889 }
 0x7d6   : > { %v5869_v12 = vmul.f32 %v7890_v25, %v5867_v52 }
 0x7d8   : > { %v5870_v35 = vsub.f32 2.0, %v5869_v12 }
 0x7da   : > { %v5871_v42 = vmul.f32 %v7890_v25, %v5870_v35 }
 0x7dc   : > { %v5872_v10 = vmul.f32 %v7888_v2, %v5871_v42 }
 0x7de   : > { %5873 = vst.msk [vmem:[%s299_s10] sm:$0xff] %vm3508_vm6, %v5872_v10 }
 0x7df   : > { %7904 = shalt.err (!%p7901_p3)
}
 0x7e0   : > { %s7905_s23 = scalar_lea.hbm %s9871_s18, 128  ;;  %s7909_s26 = scalar_lea.hbm %s9922_s8, 256 }
 0x7e1   : > { %p7906_p4 = scmp.ne.s32.totalorder %s9871_s18, %s7905_s23  ;;  %p7910_p9 = scmp.lt.u32.totalorder %s9871_s18, %s9922_s8 }
 0x7e2   : > { %p7911_p10 = scmp.lt.u32.totalorder %s7909_s26, %s7905_s23  ;;  %p7913_p12 = scmp.lt.u32.totalorder %s7905_s23, %s9871_s18 }
 0x7e3   : > { %p7907_p7 = pnand %p7906_p4, %p8042_p5 }
 0x7e4   : > { %p7912_p11 = por %p7911_p10, %p7910_p9 }
 0x7e5   : > { %p7908_p8 = pneg %p7907_p7 }
 0x7e6   : > { %p7914_p13 = por %p7913_p12, %p7912_p11 }
 0x7e8   : > { %p7915_p0 = pnand %p7914_p13, %p7908_p8 }
 0x7ea   : > { %7918 = shalt.err (!%p7915_p0)
}
 0x7eb   : > { %7845 = dma.vmem_to_hbm [thread:$0]  (%p8042_p5), %s9873_s12, 128, %s9871_s18, %s5875_s19  }
 0x7ec PF: > { %p7851_p1 = scmp.ge.s32.totalorder %s7953_s30, 2  ;;  %s5900_s17 = sand.u32 1, %s7941_s27  }
 0x7ed   : > { %s5901_s20 = scalar_lea.sflag [#allocation5], %s5900_s17 }
 0x7ee   : > { %p7848_p2 = pnand %p7851_p1, %p8046_p6 }
 0x7f0   : > { %7936 = dma.done.wait (!%p7848_p2), %s5901_s20, 128  }
 0x7f1   : > { %7938 = vsyncadd (!%p7848_p2), %s5901_s20, 4294967168  ;;  %p18_p3 = scmp.ge.s32.totalorder %s8029_s11, 4   ;;  %s9996_s27 = smov %s7945_s28 }
 0x7f2   : > { %s9997_s28 = smov %s7949_s29  ;;  %s9998_s29 = smov %s8040_s14 }
 0x7f3   : > { %s9999_s30 = smov %s8029_s11  ;;  %20 = sbr.rel (!%p18_p3) target bundleno = 3 (0x3), region = 131 }
 0x7fa   :  { %5906 = vsyncpa [#allocation5], 1 }
 0x7fb   :  { %5908 = vsyncpa [#allocation5 + $0x1], 1 }

</bundles_post_ra>
